<compile_context>
chip_gen: v7x
topology: tpu7x:2x2x1
jax: 0.10.0
libtpu: 0.0.40
codegen_flags: <defaults>
</compile_context>

<pallas_src>
import jax
import jax.numpy as jnp
from jax.experimental import pallas as pl
from jax.experimental.pallas import tpu as pltpu

_EPS = 1e-5
_LANE = 128      # TPU lane width: channel dims zero-padded to multiples of this


def _round_up(x, m):
    return (x + m - 1) // m * m


def _device_kind():
    try:
        return jax.devices()[0].device_kind.lower()
    except Exception:
        return ""


_KIND = _device_kind()
_IS_V5 = "v5" in _KIND
_IS_V7 = ("v7" in _KIND) or ("7x" in _KIND)
# v7x has 64 MiB VMEM/TC -> keep headroom; v5e/v6e have 128 MiB -> allow big tiles.
_VMEM_LIMIT = (48 if _IS_V7 else 100) * 1024 * 1024
try:  # clamp against the real part if the query is available
    _VMEM_LIMIT = min(_VMEM_LIMIT, int(pltpu.get_tpu_info().vmem_capacity_bytes * 3 // 4))
except Exception:
    pass


def _pick_co_block(cout_p):
    # 256-wide Cout tiles fill the 2x256^2 MXU on v6e/v7x; keep 128 on v5e (4x128^2).
    if (not _IS_V5) and cout_p % 256 == 0:
        return 256
    return 128


def _compiler_params():
    return pltpu.CompilerParams(
        dimension_semantics=("parallel", "parallel"),
        vmem_limit_bytes=_VMEM_LIMIT)


# ----------------------------- Pallas kernels ------------------------------

def _store_stats(st_ref, y):
    """Per-channel partial [sum, sum-of-squares] of an (M, C) f32 tile."""
    st_ref[0, pl.ds(0, 1), :] = jnp.sum(y, axis=0, keepdims=True)
    st_ref[0, pl.ds(1, 1), :] = jnp.sum(y * y, axis=0, keepdims=True)


def _make_conv1_kernel(Ho, Wo, stride, cin_p, proj):
    """Stage A: 3x3 conv1 (stride handled by wrapper-side space-to-depth, so every tap
    is a dense lane-aligned slice) [+ 1x1 projection-shortcut conv] + partial BN stats.
    One grid step = (one batch image) x (one Cout block)."""
    HoWo = Ho * Wo
    s = stride

    def window(x_ref, kh, kw):
        blk = (kh % s) * s + (kw % s)          # stride phase -> channel block
        v = x_ref[0, pl.ds(kh // s, Ho), pl.ds(kw // s, Wo),
                  pl.ds(blk * cin_p, cin_p)]
        # TODO(synk): the offset window slice + reshape may materialize a VMEM copy per
        # tap; a roll/dot_general formulation could avoid it.
        return v.reshape(HoWo, cin_p)

    if proj:
        def kernel(x_ref, w1_ref, ws_ref, y1_ref, s1_ref, ys_ref, ss_ref):
            acc = None
            ys = None
            for kh in range(3):
                for kw in range(3):
                    win = window(x_ref, kh, kw)
                    part = jnp.dot(win, w1_ref[kh, kw],
                                   preferred_element_type=jnp.float32)
                    acc = part if acc is None else acc + part
                    if kh == 1 and kw == 1:
                        # 1x1 stride-s shortcut conv == matmul on the centre tap.
                        ys = jnp.dot(win, ws_ref[...],
                                     preferred_element_type=jnp.float32)
            _store_stats(s1_ref, acc)                 # stats from f32 accumulator
            y1_ref[0] = acc.astype(y1_ref.dtype)      # bf16 store: halves HBM traffic
            _store_stats(ss_ref, ys)
            ys_ref[0] = ys.astype(ys_ref.dtype)
    else:
        def kernel(x_ref, w1_ref, y1_ref, s1_ref):
            acc = None
            for kh in range(3):
                for kw in range(3):
                    part = jnp.dot(window(x_ref, kh, kw), w1_ref[kh, kw],
                                   preferred_element_type=jnp.float32)
                    acc = part if acc is None else acc + part
            _store_stats(s1_ref, acc)
            y1_ref[0] = acc.astype(y1_ref.dtype)
    return kernel


def _make_conv2_kernel(Ho, Wo):
    """Stage B: bn1 scale/shift + ReLU fused directly into the 3x3 conv2 + partial BN
    stats.  The normalized activation is cast once to bf16 into a halo scratch whose
    border (only) is zeroed each step, so out1 never touches HBM."""
    HoWo = Ho * Wo

    def kernel(y1_ref, sc1_ref, sh1_ref, w2_ref, y2_ref, s2_ref, pad_ref):
        c = y1_ref.shape[-1]
        dt = pad_ref.dtype
        # bn1 + ReLU in f32.
        a = jnp.maximum(y1_ref[0] * sc1_ref[...] + sh1_ref[...], 0.0)
        # Zero only the 1-px halo border; the interior is fully overwritten below.
        zrow = jnp.zeros((1, Wo + 2, c), dt)
        zcol = jnp.zeros((Ho, 1, c), dt)
        pad_ref[pl.ds(0, 1), :, :] = zrow
        pad_ref[pl.ds(Ho + 1, 1), :, :] = zrow
        pad_ref[pl.ds(1, Ho), pl.ds(0, 1), :] = zcol
        pad_ref[pl.ds(1, Ho), pl.ds(Wo + 1, 1), :] = zcol
        pad_ref[pl.ds(1, Ho), pl.ds(1, Wo), :] = a.astype(dt).reshape(Ho, Wo, c)

        acc = None
        for kh in range(3):
            for kw in range(3):
                win = pad_ref[pl.ds(kh, Ho), pl.ds(kw, Wo), :].reshape(HoWo, c)
                part = jnp.dot(win, w2_ref[kh, kw],
                               preferred_element_type=jnp.float32)
                acc = part if acc is None else acc + part
        _store_stats(s2_ref, acc)
        y2_ref[0] = acc.astype(y2_ref.dtype)
    return kernel


def _bn_add_relu_proj_kernel(y2_ref, sc2_ref, sh2_ref, ys_ref, scs_ref, shs_ref, o_ref):
    shortcut = ys_ref[0] * scs_ref[...] + shs_ref[...]
    o_ref[0] = jnp.maximum(y2_ref[0] * sc2_ref[...] + sh2_ref[...] + shortcut, 0.0)


def _bn_add_relu_id_kernel(y2_ref, sc2_ref, sh2_ref, xs_ref, o_ref):
    o_ref[0] = jnp.maximum(
        y2_ref[0] * sc2_ref[...] + sh2_ref[...] + xs_ref[0].astype(jnp.float32), 0.0)


# ------------------------------ JAX glue ------------------------------------

def _w3x3_to_hwio(w_oihw, cin_p, cout_p):
    co, ci, _, _ = w_oihw.shape
    w = jnp.transpose(w_oihw.astype(jnp.float32), (2, 3, 1, 0))     # (kh,kw,ci,co)
    w = jnp.pad(w, ((0, 0), (0, 0), (0, cin_p - ci), (0, cout_p - co)))
    return w.astype(jnp.bfloat16)


def _w1x1_to_io(w, cin_p, cout_p):
    co, ci = w.shape[:2]
    w = jnp.transpose(w.reshape(co, ci).astype(jnp.float32), (1, 0))
    w = jnp.pad(w, ((0, cin_p - ci), (0, cout_p - co)))
    return w.astype(jnp.bfloat16)


def _pad_vec(v, c_p):
    return jnp.pad(v.astype(jnp.float32), (0, c_p - v.shape[0]))


def _bn_scale_shift(stats, m, gamma, beta):
    """Finalize training-mode BN from per-step partial stats (N, 2, C): per-channel
    scale = gamma*rsqrt(var+eps), shift = beta - mean*scale.  Tiny O(C) glue."""
    s = jnp.sum(stats[:, 0, :], axis=0)
    sq = jnp.sum(stats[:, 1, :], axis=0)
    mean = s / m
    var = jnp.maximum(sq / m - mean * mean, 0.0)
    scale = gamma * jax.lax.rsqrt(var + _EPS)
    shift = beta - mean * scale
    return scale.reshape(1, -1), shift.reshape(1, -1)


def _space_to_depth(x_pad, s):
    """Pack the sxs stride phase into channel blocks so strided conv taps become dense."""
    if s == 1:
        return x_pad
    N, Hp, Wp, C = x_pad.shape
    x = x_pad.reshape(N, Hp // s, s, Wp // s, s, C)
    x = jnp.transpose(x, (0, 1, 3, 2, 4, 5))
    return x.reshape(N, Hp // s, Wp // s, s * s * C)


def init_params(key, in_planes, planes, stride):
    ks = jax.random.split(key, 8)
    p = {
        "w1": 0.1 * jax.random.normal(ks[0], (planes, in_planes, 3, 3), jnp.float32),
        "g1": 1.0 + 0.1 * jax.random.normal(ks[1], (planes,), jnp.float32),
        "b1": 0.1 * jax.random.normal(ks[2], (planes,), jnp.float32),
        "w2": 0.1 * jax.random.normal(ks[3], (planes, planes, 3, 3), jnp.float32),
        "g2": 1.0 + 0.1 * jax.random.normal(ks[4], (planes,), jnp.float32),
        "b2": 0.1 * jax.random.normal(ks[5], (planes,), jnp.float32),
    }
    if stride != 1 or in_planes != planes:   # projection shortcut
        p["ws"] = 0.1 * jax.random.normal(ks[6], (planes, in_planes, 1, 1), jnp.float32)
        p["gs"] = 1.0 + 0.05 * jax.random.normal(ks[7], (planes,), jnp.float32)
        p["bs"] = jnp.zeros((planes,), jnp.float32)
    else:
        p["ws"] = p["gs"] = p["bs"] = None
    return p


def basic_block_forward(x_nchw, params, stride=1):
    assert stride in (1, 2)
    x = jnp.transpose(x_nchw, (0, 2, 3, 1))                          # NCHW -> NHWC
    N, H, W, cin = x.shape
    planes = params["w1"].shape[0]
    proj = params["ws"] is not None
    if stride != 1:
        # TODO(synk): odd spatial sizes with stride=2 are not handled by the
        # space-to-depth path.
        assert H % stride == 0 and W % stride == 0

    cin_p = _round_up(cin, _LANE)
    cout_p = _round_up(planes, _LANE)
    co_blk = _pick_co_block(cout_p)
    J = cout_p // co_blk
    Ho = (H - 1) // stride + 1
    Wo = (W - 1) // stride + 1
    HoWo = Ho * Wo
    M = N * HoWo

    # bf16 input, channel pad (zero channels x zero weights contribute nothing),
    # 1px spatial pad, then stride-phase space-to-depth.
    x_cp = jnp.pad(x.astype(jnp.bfloat16), ((0, 0), (0, 0), (0, 0), (0, cin_p - cin)))
    x_pad = jnp.pad(x_cp, ((0, 0), (1, 1), (1, 1), (0, 0)))
    x_s2d = _space_to_depth(x_pad, stride)
    _, Hs, Ws, Cs = x_s2d.shape

    w1 = _w3x3_to_hwio(params["w1"], cin_p, cout_p)
    w2 = _w3x3_to_hwio(params["w2"], cout_p, cout_p)
    g1, b1 = _pad_vec(params["g1"], cout_p), _pad_vec(params["b1"], cout_p)
    g2, b2 = _pad_vec(params["g2"], cout_p), _pad_vec(params["b2"], cout_p)

    # Grid order: keep the bigger of {weight blocks, per-image activations} constant
    # along the inner axis so Pallas skips its re-DMA between consecutive steps.
    act_bytes = (Hs * Ws * Cs + HoWo * cout_p) * 2           # per image (bf16)
    w_blk_bytes = 9 * (cin_p + cout_p) * co_blk * 2          # per Cout block (A + B)
    n_inner = (J - 1) * N * act_bytes <= (N - 1) * J * w_blk_bytes
    if n_inner:
        grid = (J, N)
        nj = lambda a, b: (b, a)      # -> (n, j)
    else:
        grid = (N, J)
        nj = lambda a, b: (a, b)

    idx_x = lambda a, b: (nj(a, b)[0], 0, 0, 0)
    idx_w3 = lambda a, b: (0, 0, 0, nj(a, b)[1])
    idx_w1 = lambda a, b: (0, nj(a, b)[1])
    idx_y = lambda a, b: (nj(a, b)[0], 0, nj(a, b)[1])
    idx_yfull = lambda a, b: (nj(a, b)[0], 0, 0)
    idx_vec = lambda a, b: (0, nj(a, b)[1])
    idx_vecfull = lambda a, b: (0, 0)

    bf16, f32 = jnp.bfloat16, jnp.float32
    y_shape = jax.ShapeDtypeStruct((N, HoWo, cout_p), bf16)     # bf16 HBM intermediates
    st_shape = jax.ShapeDtypeStruct((N, 2, cout_p), f32)
    y_spec = pl.BlockSpec((1, HoWo, co_blk), idx_y)
    st_spec = pl.BlockSpec((1, 2, co_blk), idx_y)
    vec_spec = pl.BlockSpec((1, co_blk), idx_vec)

    # ---------------- stage A: conv1 (+ projection shortcut) + stats --------
    x_spec = pl.BlockSpec((1, Hs, Ws, Cs), idx_x)
    w1_spec = pl.BlockSpec((3, 3, cin_p, co_blk), idx_w3)
    flops_a = 2 * M * 9 * cin_p * cout_p
    bytes_a = x_s2d.size * 2 + w1.size * 2 + N * HoWo * cout_p * 2
    if proj:
        ws = _w1x1_to_io(params["ws"], cin_p, cout_p)
        gs, bs = _pad_vec(params["gs"], cout_p), _pad_vec(params["bs"], cout_p)
        ws_spec = pl.BlockSpec((cin_p, co_blk), idx_w1)
        y1, st1, ys, sts = pl.pallas_call(
            _make_conv1_kernel(Ho, Wo, stride, cin_p, True),
            grid=grid,
            in_specs=[x_spec, w1_spec, ws_spec],
            out_specs=(y_spec, st_spec, y_spec, st_spec),
            out_shape=(y_shape, st_shape, y_shape, st_shape),
            compiler_params=_compiler_params(),
            cost_estimate=pl.CostEstimate(
                flops=flops_a + 2 * M * cin_p * cout_p,
                transcendentals=0,
                bytes_accessed=bytes_a + ws.size * 2 + N * HoWo * cout_p * 2),
        )(x_s2d, w1, ws)
    else:
        y1, st1 = pl.pallas_call(
            _make_conv1_kernel(Ho, Wo, stride, cin_p, False),
            grid=grid,
            in_specs=[x_spec, w1_spec],
            out_specs=(y_spec, st_spec),
            out_shape=(y_shape, st_shape),
            compiler_params=_compiler_params(),
            cost_estimate=pl.CostEstimate(
                flops=flops_a, transcendentals=0, bytes_accessed=bytes_a),
        )(x_s2d, w1)

    sc1, sh1 = _bn_scale_shift(st1, M, g1, b1)

    # ---------------- stage B: bn1 + ReLU fused into conv2 + stats ----------
    y1_spec = pl.BlockSpec((1, HoWo, cout_p), idx_yfull)
    cvec_full = pl.BlockSpec((1, cout_p), idx_vecfull)
    w2_spec = pl.BlockSpec((3, 3, cout_p, co_blk), idx_w3)
    y2, st2 = pl.pallas_call(
        _make_conv2_kernel(Ho, Wo),
        grid=grid,
        in_specs=[y1_spec, cvec_full, cvec_full, w2_spec],
        out_specs=(y_spec, st_spec),
        out_shape=(y_shape, st_shape),
        scratch_shapes=[pltpu.VMEM((Ho + 2, Wo + 2, cout_p), bf16)],  # bf16 halo scratch
        compiler_params=_compiler_params(),
        cost_estimate=pl.CostEstimate(
            flops=2 * M * 9 * cout_p * cout_p,
            transcendentals=0,
            bytes_accessed=2 * N * HoWo * cout_p * 2 + w2.size * 2),
    )(y1, sc1, sh1, w2)

    sc2, sh2 = _bn_scale_shift(st2, M, g2, b2)

    # ---------------- stage C: bn2 + shortcut + add + ReLU ------------------
    # TODO(synk): for deep 14x14/7x7 layers, pack several images per grid step so the
    # matmul M dim and stage-C tiles stay fat; not needed at these test sizes.
    out_shape = jax.ShapeDtypeStruct((N, HoWo, cout_p), f32)
    if proj:
        scs, shs = _bn_scale_shift(sts, M, gs, bs)
        out = pl.pallas_call(
            _bn_add_relu_proj_kernel,
            grid=grid,
            in_specs=[y_spec, vec_spec, vec_spec, y_spec, vec_spec, vec_spec],
            out_specs=y_spec,
            out_shape=out_shape,
            compiler_params=_compiler_params(),
        )(y2, sc2, sh2, ys, scs, shs)
    else:
        xs = x_cp.reshape(N, H * W, cin_p)       # identity: stride==1 and cin_p==cout_p
        out = pl.pallas_call(
            _bn_add_relu_id_kernel,
            grid=grid,
            in_specs=[y_spec, vec_spec, vec_spec, y_spec],
            out_specs=y_spec,
            out_shape=out_shape,
            compiler_params=_compiler_params(),
        )(y2, sc2, sh2, xs)

    out = out.reshape(N, Ho, Wo, cout_p)[:, :, :, :planes]
    return jnp.transpose(out, (0, 3, 1, 2)).astype(x_nchw.dtype)   # NHWC -> NCHW


# ------------------------- pure-JAX reference --------------------------------

def _ref_bn(y, g, b):
    mean = jnp.mean(y, axis=(0, 2, 3), keepdims=True)
    var = jnp.mean((y - mean) ** 2, axis=(0, 2, 3), keepdims=True)
    return (y - mean) * jax.lax.rsqrt(var + _EPS) * g.reshape(1, -1, 1, 1) \
        + b.reshape(1, -1, 1, 1)


def ref_forward(x, params, stride):
    dn = ("NCHW", "OIHW", "NCHW")
    conv = lambda a, w, s, p: jax.lax.conv_general_dilated(
        a, w, (s, s), ((p, p), (p, p)), dimension_numbers=dn,
        precision=jax.lax.Precision.HIGHEST)
    out = jax.nn.relu(_ref_bn(conv(x, params["w1"], stride, 1),
                              params["g1"], params["b1"]))
    out = _ref_bn(conv(out, params["w2"], 1, 1), params["g2"], params["b2"])
    if params["ws"] is not None:
        sc = _ref_bn(conv(x, params["ws"], stride, 0), params["gs"], params["bs"])
    else:
        sc = x
    return jax.nn.relu(out + sc)


# --------------------------------- main --------------------------------------

if __name__ == "__main__":
    configs = [
        (2, 4, 8, 16, 16, 1),    # projection shortcut (in_planes != planes), stride 1
        (2, 8, 8, 16, 16, 1),    # identity shortcut
        (2, 8, 16, 16, 16, 2),   # downsampling block: projection shortcut, stride 2
    ]
    key = jax.random.PRNGKey(0)
    for (N, cin, planes, H, W, stride) in configs:
        key, kx, kp = jax.random.split(key, 3)
        x = jax.random.normal(kx, (N, cin, H, W), jnp.float32)
        params = init_params(kp, cin, planes, stride)

        out = jax.block_until_ready(basic_block_forward(x, params, stride))
        ref = ref_forward(x, params, stride)
        Ho = (H - 1) // stride + 1
        Wo = (W - 1) // stride + 1
        assert out.shape == ref.shape == (N, planes, Ho, Wo), (out.shape, ref.shape)

        # bf16 MXU operands + bf16 HBM intermediates (f32 accumulation & BN stats)
        # vs an f32 HIGHEST-precision reference.
        max_err = float(jnp.max(jnp.abs(out - ref)))
        mean_err = float(jnp.mean(jnp.abs(out - ref)))
        if max_err > 5e-2 or mean_err > 8e-3:
            raise AssertionError(
                f"Pallas BasicBlock mismatch: max|diff|={max_err:.4g} "
                f"mean|diff|={mean_err:.4g}")
    print("KERNEL_OK")
</pallas_src>

<mosaic_0001>
module attributes {stable_mosaic.version = 11 : i64} {
  func.func @kernel(%arg0: i32, %arg1: i32, %arg2: memref<1x18x18x128xbf16, #tpu.memory_space<vmem>>, %arg3: memref<3x3x128x128xbf16, #tpu.memory_space<vmem>>, %arg4: memref<128x128xbf16, #tpu.memory_space<vmem>>, %arg5: memref<1x256x128xbf16, #tpu.memory_space<vmem>>, %arg6: memref<1x2x128xf32, #tpu.memory_space<vmem>>, %arg7: memref<1x256x128xbf16, #tpu.memory_space<vmem>>, %arg8: memref<1x2x128xf32, #tpu.memory_space<vmem>>) attributes {dimension_semantics = [#tpu.dimension_semantics<parallel>, #tpu.dimension_semantics<parallel>], iteration_bounds = array<i64: 1, 2>, scalar_prefetch = 0 : i64, scratch_operands = 0 : i64, tpu.core_type = #tpu.core_type<tc>, window_params = [{transform_indices = @transform_0, window_bounds = array<i64: 1, 18, 18, 128>}, {transform_indices = @transform_1, window_bounds = array<i64: 3, 3, 128, 128>}, {transform_indices = @transform_2, window_bounds = array<i64: 128, 128>}, {transform_indices = @transform_3, window_bounds = array<i64: 1, 256, 128>}, {transform_indices = @transform_4, window_bounds = array<i64: 1, 2, 128>}, {transform_indices = @transform_5, window_bounds = array<i64: 1, 256, 128>}, {transform_indices = @transform_6, window_bounds = array<i64: 1, 2, 128>}]} {
    %c0 = arith.constant 0 : index
    %c0_0 = arith.constant 0 : index
    %c0_1 = arith.constant 0 : index
    %c0_2 = arith.constant 0 : index
    %0 = vector.load %arg2[%c0, %c0_0, %c0_1, %c0_2] : memref<1x18x18x128xbf16, #tpu.memory_space<vmem>>, vector<1x16x16x128xbf16>
    %1 = vector.shape_cast %0 : vector<1x16x16x128xbf16> to vector<16x16x128xbf16>
    %2 = vector.shape_cast %1 : vector<16x16x128xbf16> to vector<256x128xbf16>
    %c0_3 = arith.constant 0 : index
    %c0_4 = arith.constant 0 : index
    %c0_5 = arith.constant 0 : index
    %c0_6 = arith.constant 0 : index
    %3 = vector.load %arg3[%c0_3, %c0_4, %c0_5, %c0_6] : memref<3x3x128x128xbf16, #tpu.memory_space<vmem>>, vector<1x1x128x128xbf16>
    %4 = vector.shape_cast %3 : vector<1x1x128x128xbf16> to vector<128x128xbf16>
    %cst = arith.constant dense<0.000000e+00> : vector<256x128xf32>
    %5 = tpu.matmul %2, %4, %cst {dimension_numbers = #tpu.dot_dimension_numbers<[1], [0], [0], [1], [0, 0, 1, 1], [], []>} : vector<256x128xbf16>, vector<128x128xbf16>, vector<256x128xf32> -> vector<256x128xf32>
    %c0_7 = arith.constant 0 : index
    %c0_8 = arith.constant 0 : index
    %c1 = arith.constant 1 : index
    %c0_9 = arith.constant 0 : index
    %6 = vector.load %arg2[%c0_7, %c0_8, %c1, %c0_9] : memref<1x18x18x128xbf16, #tpu.memory_space<vmem>>, vector<1x16x16x128xbf16>
    %7 = vector.shape_cast %6 : vector<1x16x16x128xbf16> to vector<16x16x128xbf16>
    %8 = vector.shape_cast %7 : vector<16x16x128xbf16> to vector<256x128xbf16>
    %c0_10 = arith.constant 0 : index
    %c1_11 = arith.constant 1 : index
    %c0_12 = arith.constant 0 : index
    %c0_13 = arith.constant 0 : index
    %9 = vector.load %arg3[%c0_10, %c1_11, %c0_12, %c0_13] : memref<3x3x128x128xbf16, #tpu.memory_space<vmem>>, vector<1x1x128x128xbf16>
    %10 = vector.shape_cast %9 : vector<1x1x128x128xbf16> to vector<128x128xbf16>
    %cst_14 = arith.constant dense<0.000000e+00> : vector<256x128xf32>
    %11 = tpu.matmul %8, %10, %cst_14 {dimension_numbers = #tpu.dot_dimension_numbers<[1], [0], [0], [1], [0, 0, 1, 1], [], []>} : vector<256x128xbf16>, vector<128x128xbf16>, vector<256x128xf32> -> vector<256x128xf32>
    %12 = arith.addf %5, %11 : vector<256x128xf32>
    %c0_15 = arith.constant 0 : index
    %c0_16 = arith.constant 0 : index
    %c2 = arith.constant 2 : index
    %c0_17 = arith.constant 0 : index
    %13 = vector.load %arg2[%c0_15, %c0_16, %c2, %c0_17] : memref<1x18x18x128xbf16, #tpu.memory_space<vmem>>, vector<1x16x16x128xbf16>
    %14 = vector.shape_cast %13 : vector<1x16x16x128xbf16> to vector<16x16x128xbf16>
    %15 = vector.shape_cast %14 : vector<16x16x128xbf16> to vector<256x128xbf16>
    %c0_18 = arith.constant 0 : index
    %c2_19 = arith.constant 2 : index
    %c0_20 = arith.constant 0 : index
    %c0_21 = arith.constant 0 : index
    %16 = vector.load %arg3[%c0_18, %c2_19, %c0_20, %c0_21] : memref<3x3x128x128xbf16, #tpu.memory_space<vmem>>, vector<1x1x128x128xbf16>
    %17 = vector.shape_cast %16 : vector<1x1x128x128xbf16> to vector<128x128xbf16>
    %cst_22 = arith.constant dense<0.000000e+00> : vector<256x128xf32>
    %18 = tpu.matmul %15, %17, %cst_22 {dimension_numbers = #tpu.dot_dimension_numbers<[1], [0], [0], [1], [0, 0, 1, 1], [], []>} : vector<256x128xbf16>, vector<128x128xbf16>, vector<256x128xf32> -> vector<256x128xf32>
    %19 = arith.addf %12, %18 : vector<256x128xf32>
    %c0_23 = arith.constant 0 : index
    %c1_24 = arith.constant 1 : index
    %c0_25 = arith.constant 0 : index
    %c0_26 = arith.constant 0 : index
    %20 = vector.load %arg2[%c0_23, %c1_24, %c0_25, %c0_26] : memref<1x18x18x128xbf16, #tpu.memory_space<vmem>>, vector<1x16x16x128xbf16>
    %21 = vector.shape_cast %20 : vector<1x16x16x128xbf16> to vector<16x16x128xbf16>
    %22 = vector.shape_cast %21 : vector<16x16x128xbf16> to vector<256x128xbf16>
    %c1_27 = arith.constant 1 : index
    %c0_28 = arith.constant 0 : index
    %c0_29 = arith.constant 0 : index
    %c0_30 = arith.constant 0 : index
    %23 = vector.load %arg3[%c1_27, %c0_28, %c0_29, %c0_30] : memref<3x3x128x128xbf16, #tpu.memory_space<vmem>>, vector<1x1x128x128xbf16>
    %24 = vector.shape_cast %23 : vector<1x1x128x128xbf16> to vector<128x128xbf16>
    %cst_31 = arith.constant dense<0.000000e+00> : vector<256x128xf32>
    %25 = tpu.matmul %22, %24, %cst_31 {dimension_numbers = #tpu.dot_dimension_numbers<[1], [0], [0], [1], [0, 0, 1, 1], [], []>} : vector<256x128xbf16>, vector<128x128xbf16>, vector<256x128xf32> -> vector<256x128xf32>
    %26 = arith.addf %19, %25 : vector<256x128xf32>
    %c0_32 = arith.constant 0 : index
    %c1_33 = arith.constant 1 : index
    %c1_34 = arith.constant 1 : index
    %c0_35 = arith.constant 0 : index
    %27 = vector.load %arg2[%c0_32, %c1_33, %c1_34, %c0_35] : memref<1x18x18x128xbf16, #tpu.memory_space<vmem>>, vector<1x16x16x128xbf16>
    %28 = vector.shape_cast %27 : vector<1x16x16x128xbf16> to vector<16x16x128xbf16>
    %29 = vector.shape_cast %28 : vector<16x16x128xbf16> to vector<256x128xbf16>
    %c1_36 = arith.constant 1 : index
    %c1_37 = arith.constant 1 : index
    %c0_38 = arith.constant 0 : index
    %c0_39 = arith.constant 0 : index
    %30 = vector.load %arg3[%c1_36, %c1_37, %c0_38, %c0_39] : memref<3x3x128x128xbf16, #tpu.memory_space<vmem>>, vector<1x1x128x128xbf16>
    %31 = vector.shape_cast %30 : vector<1x1x128x128xbf16> to vector<128x128xbf16>
    %cst_40 = arith.constant dense<0.000000e+00> : vector<256x128xf32>
    %32 = tpu.matmul %29, %31, %cst_40 {dimension_numbers = #tpu.dot_dimension_numbers<[1], [0], [0], [1], [0, 0, 1, 1], [], []>} : vector<256x128xbf16>, vector<128x128xbf16>, vector<256x128xf32> -> vector<256x128xf32>
    %33 = arith.addf %26, %32 : vector<256x128xf32>
    %c0_41 = arith.constant 0 : index
    %c0_42 = arith.constant 0 : index
    %34 = vector.load %arg4[%c0_41, %c0_42] : memref<128x128xbf16, #tpu.memory_space<vmem>>, vector<128x128xbf16>
    %cst_43 = arith.constant dense<0.000000e+00> : vector<256x128xf32>
    %35 = tpu.matmul %29, %34, %cst_43 {dimension_numbers = #tpu.dot_dimension_numbers<[1], [0], [0], [1], [0, 0, 1, 1], [], []>} : vector<256x128xbf16>, vector<128x128xbf16>, vector<256x128xf32> -> vector<256x128xf32>
    %c0_44 = arith.constant 0 : index
    %c1_45 = arith.constant 1 : index
    %c2_46 = arith.constant 2 : index
    %c0_47 = arith.constant 0 : index
    %36 = vector.load %arg2[%c0_44, %c1_45, %c2_46, %c0_47] : memref<1x18x18x128xbf16, #tpu.memory_space<vmem>>, vector<1x16x16x128xbf16>
    %37 = vector.shape_cast %36 : vector<1x16x16x128xbf16> to vector<16x16x128xbf16>
    %38 = vector.shape_cast %37 : vector<16x16x128xbf16> to vector<256x128xbf16>
    %c1_48 = arith.constant 1 : index
    %c2_49 = arith.constant 2 : index
    %c0_50 = arith.constant 0 : index
    %c0_51 = arith.constant 0 : index
    %39 = vector.load %arg3[%c1_48, %c2_49, %c0_50, %c0_51] : memref<3x3x128x128xbf16, #tpu.memory_space<vmem>>, vector<1x1x128x128xbf16>
    %40 = vector.shape_cast %39 : vector<1x1x128x128xbf16> to vector<128x128xbf16>
    %cst_52 = arith.constant dense<0.000000e+00> : vector<256x128xf32>
    %41 = tpu.matmul %38, %40, %cst_52 {dimension_numbers = #tpu.dot_dimension_numbers<[1], [0], [0], [1], [0, 0, 1, 1], [], []>} : vector<256x128xbf16>, vector<128x128xbf16>, vector<256x128xf32> -> vector<256x128xf32>
    %42 = arith.addf %33, %41 : vector<256x128xf32>
    %c0_53 = arith.constant 0 : index
    %c2_54 = arith.constant 2 : index
    %c0_55 = arith.constant 0 : index
    %c0_56 = arith.constant 0 : index
    %43 = vector.load %arg2[%c0_53, %c2_54, %c0_55, %c0_56] : memref<1x18x18x128xbf16, #tpu.memory_space<vmem>>, vector<1x16x16x128xbf16>
    %44 = vector.shape_cast %43 : vector<1x16x16x128xbf16> to vector<16x16x128xbf16>
    %45 = vector.shape_cast %44 : vector<16x16x128xbf16> to vector<256x128xbf16>
    %c2_57 = arith.constant 2 : index
    %c0_58 = arith.constant 0 : index
    %c0_59 = arith.constant 0 : index
    %c0_60 = arith.constant 0 : index
    %46 = vector.load %arg3[%c2_57, %c0_58, %c0_59, %c0_60] : memref<3x3x128x128xbf16, #tpu.memory_space<vmem>>, vector<1x1x128x128xbf16>
    %47 = vector.shape_cast %46 : vector<1x1x128x128xbf16> to vector<128x128xbf16>
    %cst_61 = arith.constant dense<0.000000e+00> : vector<256x128xf32>
    %48 = tpu.matmul %45, %47, %cst_61 {dimension_numbers = #tpu.dot_dimension_numbers<[1], [0], [0], [1], [0, 0, 1, 1], [], []>} : vector<256x128xbf16>, vector<128x128xbf16>, vector<256x128xf32> -> vector<256x128xf32>
    %49 = arith.addf %42, %48 : vector<256x128xf32>
    %c0_62 = arith.constant 0 : index
    %c2_63 = arith.constant 2 : index
    %c1_64 = arith.constant 1 : index
    %c0_65 = arith.constant 0 : index
    %50 = vector.load %arg2[%c0_62, %c2_63, %c1_64, %c0_65] : memref<1x18x18x128xbf16, #tpu.memory_space<vmem>>, vector<1x16x16x128xbf16>
    %51 = vector.shape_cast %50 : vector<1x16x16x128xbf16> to vector<16x16x128xbf16>
    %52 = vector.shape_cast %51 : vector<16x16x128xbf16> to vector<256x128xbf16>
    %c2_66 = arith.constant 2 : index
    %c1_67 = arith.constant 1 : index
    %c0_68 = arith.constant 0 : index
    %c0_69 = arith.constant 0 : index
    %53 = vector.load %arg3[%c2_66, %c1_67, %c0_68, %c0_69] : memref<3x3x128x128xbf16, #tpu.memory_space<vmem>>, vector<1x1x128x128xbf16>
    %54 = vector.shape_cast %53 : vector<1x1x128x128xbf16> to vector<128x128xbf16>
    %cst_70 = arith.constant dense<0.000000e+00> : vector<256x128xf32>
    %55 = tpu.matmul %52, %54, %cst_70 {dimension_numbers = #tpu.dot_dimension_numbers<[1], [0], [0], [1], [0, 0, 1, 1], [], []>} : vector<256x128xbf16>, vector<128x128xbf16>, vector<256x128xf32> -> vector<256x128xf32>
    %56 = arith.addf %49, %55 : vector<256x128xf32>
    %c0_71 = arith.constant 0 : index
    %c2_72 = arith.constant 2 : index
    %c2_73 = arith.constant 2 : index
    %c0_74 = arith.constant 0 : index
    %57 = vector.load %arg2[%c0_71, %c2_72, %c2_73, %c0_74] : memref<1x18x18x128xbf16, #tpu.memory_space<vmem>>, vector<1x16x16x128xbf16>
    %58 = vector.shape_cast %57 : vector<1x16x16x128xbf16> to vector<16x16x128xbf16>
    %59 = vector.shape_cast %58 : vector<16x16x128xbf16> to vector<256x128xbf16>
    %c2_75 = arith.constant 2 : index
    %c2_76 = arith.constant 2 : index
    %c0_77 = arith.constant 0 : index
    %c0_78 = arith.constant 0 : index
    %60 = vector.load %arg3[%c2_75, %c2_76, %c0_77, %c0_78] : memref<3x3x128x128xbf16, #tpu.memory_space<vmem>>, vector<1x1x128x128xbf16>
    %61 = vector.shape_cast %60 : vector<1x1x128x128xbf16> to vector<128x128xbf16>
    %cst_79 = arith.constant dense<0.000000e+00> : vector<256x128xf32>
    %62 = tpu.matmul %59, %61, %cst_79 {dimension_numbers = #tpu.dot_dimension_numbers<[1], [0], [0], [1], [0, 0, 1, 1], [], []>} : vector<256x128xbf16>, vector<128x128xbf16>, vector<256x128xf32> -> vector<256x128xf32>
    %63 = arith.addf %56, %62 : vector<256x128xf32>
    %cst_80 = arith.constant dense<0.000000e+00> : vector<128xf32>
    %64 = vector.multi_reduction <add>, %63, %cst_80 [0] : vector<256x128xf32> to vector<128xf32>
    %65 = vector.shape_cast %64 : vector<128xf32> to vector<1x128xf32>
    %c0_81 = arith.constant 0 : index
    %c0_82 = arith.constant 0 : index
    %c0_83 = arith.constant 0 : index
    %66 = vector.load %arg6[%c0_81, %c0_82, %c0_83] : memref<1x2x128xf32, #tpu.memory_space<vmem>>, vector<1x1x128xf32>
    %67 = vector.shape_cast %66 : vector<1x1x128xf32> to vector<1x128xf32>
    %68 = vector.shape_cast %65 : vector<1x128xf32> to vector<1x1x128xf32>
    tpu.vector_store %arg6[%c0_81, %c0_82, %c0_83], %68 {strides = array<i32>} : memref<1x2x128xf32, #tpu.memory_space<vmem>>, vector<1x1x128xf32>,
    %69 = arith.mulf %63, %63 : vector<256x128xf32>
    %cst_84 = arith.constant dense<0.000000e+00> : vector<128xf32>
    %70 = vector.multi_reduction <add>, %69, %cst_84 [0] : vector<256x128xf32> to vector<128xf32>
    %71 = vector.shape_cast %70 : vector<128xf32> to vector<1x128xf32>
    %c0_85 = arith.constant 0 : index
    %c1_86 = arith.constant 1 : index
    %c0_87 = arith.constant 0 : index
    %72 = vector.load %arg6[%c0_85, %c1_86, %c0_87] : memref<1x2x128xf32, #tpu.memory_space<vmem>>, vector<1x1x128xf32>
    %73 = vector.shape_cast %72 : vector<1x1x128xf32> to vector<1x128xf32>
    %74 = vector.shape_cast %71 : vector<1x128xf32> to vector<1x1x128xf32>
    tpu.vector_store %arg6[%c0_85, %c1_86, %c0_87], %74 {strides = array<i32>} : memref<1x2x128xf32, #tpu.memory_space<vmem>>, vector<1x1x128xf32>,
    %75 = arith.truncf %63 : vector<256x128xf32> to vector<256x128xbf16>
    %c0_88 = arith.constant 0 : index
    %c0_89 = arith.constant 0 : index
    %c0_90 = arith.constant 0 : index
    %76 = vector.load %arg5[%c0_88, %c0_89, %c0_90] : memref<1x256x128xbf16, #tpu.memory_space<vmem>>, vector<1x256x128xbf16>
    %77 = vector.shape_cast %76 : vector<1x256x128xbf16> to vector<256x128xbf16>
    %78 = vector.shape_cast %75 : vector<256x128xbf16> to vector<1x256x128xbf16>
    tpu.vector_store %arg5[%c0_88, %c0_89, %c0_90], %78 {strides = array<i32>} : memref<1x256x128xbf16, #tpu.memory_space<vmem>>, vector<1x256x128xbf16>,
    %cst_91 = arith.constant dense<0.000000e+00> : vector<128xf32>
    %79 = vector.multi_reduction <add>, %35, %cst_91 [0] : vector<256x128xf32> to vector<128xf32>
    %80 = vector.shape_cast %79 : vector<128xf32> to vector<1x128xf32>
    %c0_92 = arith.constant 0 : index
    %c0_93 = arith.constant 0 : index
    %c0_94 = arith.constant 0 : index
    %81 = vector.load %arg8[%c0_92, %c0_93, %c0_94] : memref<1x2x128xf32, #tpu.memory_space<vmem>>, vector<1x1x128xf32>
    %82 = vector.shape_cast %81 : vector<1x1x128xf32> to vector<1x128xf32>
    %83 = vector.shape_cast %80 : vector<1x128xf32> to vector<1x1x128xf32>
    tpu.vector_store %arg8[%c0_92, %c0_93, %c0_94], %83 {strides = array<i32>} : memref<1x2x128xf32, #tpu.memory_space<vmem>>, vector<1x1x128xf32>,
    %84 = arith.mulf %35, %35 : vector<256x128xf32>
    %cst_95 = arith.constant dense<0.000000e+00> : vector<128xf32>
    %85 = vector.multi_reduction <add>, %84, %cst_95 [0] : vector<256x128xf32> to vector<128xf32>
    %86 = vector.shape_cast %85 : vector<128xf32> to vector<1x128xf32>
    %c0_96 = arith.constant 0 : index
    %c1_97 = arith.constant 1 : index
    %c0_98 = arith.constant 0 : index
    %87 = vector.load %arg8[%c0_96, %c1_97, %c0_98] : memref<1x2x128xf32, #tpu.memory_space<vmem>>, vector<1x1x128xf32>
    %88 = vector.shape_cast %87 : vector<1x1x128xf32> to vector<1x128xf32>
    %89 = vector.shape_cast %86 : vector<1x128xf32> to vector<1x1x128xf32>
    tpu.vector_store %arg8[%c0_96, %c1_97, %c0_98], %89 {strides = array<i32>} : memref<1x2x128xf32, #tpu.memory_space<vmem>>, vector<1x1x128xf32>,
    %90 = arith.truncf %35 : vector<256x128xf32> to vector<256x128xbf16>
    %c0_99 = arith.constant 0 : index
    %c0_100 = arith.constant 0 : index
    %c0_101 = arith.constant 0 : index
    %91 = vector.load %arg7[%c0_99, %c0_100, %c0_101] : memref<1x256x128xbf16, #tpu.memory_space<vmem>>, vector<1x256x128xbf16>
    %92 = vector.shape_cast %91 : vector<1x256x128xbf16> to vector<256x128xbf16>
    %93 = vector.shape_cast %90 : vector<256x128xbf16> to vector<1x256x128xbf16>
    tpu.vector_store %arg7[%c0_99, %c0_100, %c0_101], %93 {strides = array<i32>} : memref<1x256x128xbf16, #tpu.memory_space<vmem>>, vector<1x256x128xbf16>,
    return
  }
  func.func @transform_0(%arg0: i32, %arg1: i32) -> (i32, i32, i32, i32) {
    %c0_i32 = arith.constant 0 : i32
    %c0_i32_0 = arith.constant 0 : i32
    %c0_i32_1 = arith.constant 0 : i32
    %c0_i32_2 = arith.constant 0 : i32
    return %arg1, %c0_i32, %c0_i32_0, %c0_i32_1 : i32, i32, i32, i32
  }
  func.func @transform_1(%arg0: i32, %arg1: i32) -> (i32, i32, i32, i32) {
    %c0_i32 = arith.constant 0 : i32
    %c0_i32_0 = arith.constant 0 : i32
    %c0_i32_1 = arith.constant 0 : i32
    %c0_i32_2 = arith.constant 0 : i32
    return %c0_i32, %c0_i32_0, %c0_i32_1, %arg0 : i32, i32, i32, i32
  }
  func.func @transform_2(%arg0: i32, %arg1: i32) -> (i32, i32) {
    %c0_i32 = arith.constant 0 : i32
    %c0_i32_0 = arith.constant 0 : i32
    return %c0_i32, %arg0 : i32, i32
  }
  func.func @transform_3(%arg0: i32, %arg1: i32) -> (i32, i32, i32) {
    %c0_i32 = arith.constant 0 : i32
    %c0_i32_0 = arith.constant 0 : i32
    return %arg1, %c0_i32, %arg0 : i32, i32, i32
  }
  func.func @transform_4(%arg0: i32, %arg1: i32) -> (i32, i32, i32) {
    %c0_i32 = arith.constant 0 : i32
    %c0_i32_0 = arith.constant 0 : i32
    return %arg1, %c0_i32, %arg0 : i32, i32, i32
  }
  func.func @transform_5(%arg0: i32, %arg1: i32) -> (i32, i32, i32) {
    %c0_i32 = arith.constant 0 : i32
    %c0_i32_0 = arith.constant 0 : i32
    return %arg1, %c0_i32, %arg0 : i32, i32, i32
  }
  func.func @transform_6(%arg0: i32, %arg1: i32) -> (i32, i32, i32) {
    %c0_i32 = arith.constant 0 : i32
    %c0_i32_0 = arith.constant 0 : i32
    return %arg1, %c0_i32, %arg0 : i32, i32, i32
  }
}

</mosaic_0001>

<bundles_post_ra>
// kernel: tpu_custom_call.1
= control target key start
LH: loop header
LB: loop body
LE: loop exit
PB: predicated region body
PF: predicated region fallthrough
CT: control target
= control target key end

     0   :  { %s10717_s0 = inlined_call_operand.hbm [shape: bf16[2,18,18,128], index: 0, kind: input, shape index: {}]   ;;  %s10718_s1 = inlined_call_operand.hbm [shape: bf16[3,3,128,128], index: 1, kind: input, shape index: {}]   ;;  %s10719_s2 = inlined_call_operand.hbm [shape: bf16[128,128], index: 2, kind: input, shape index: {}]   ;;  %s10720_s3 = inlined_call_operand.hbm [shape: bf16[2,256,128], index: 3, kind: output, shape index: {0}]   ;;  %s10721_s4 = inlined_call_operand.hbm [shape: f32[2,2,128], index: 4, kind: output, shape index: {1}]   ;;  %s10722_s5 = inlined_call_operand.hbm [shape: bf16[2,256,128], index: 5, kind: output, shape index: {2}]   ;;  %s10723_s6 = inlined_call_operand.hbm [shape: f32[2,2,128], index: 6, kind: output, shape index: {3}]  }
   0x1   :  { %10765 = sst [smem:[#allocation48_spill]] %s10717_s0 }
   0x2   :  { %10766 = sst [smem:[#allocation49_spill]] %s10718_s1 }
   0x3   :  { %12 = vsyncpa [#allocation3], 0 }
   0x4   :  { %14 = vsyncpa [#allocation3 + $0x1], 0 }
   0x5   :  { %15 = vsyncpa [#allocation6], 0 }
   0x6   :  { %16 = vsyncpa [#allocation4], 0 }
   0x7   :  { %18 = vsyncpa [#allocation4 + $0x1], 0 }
   0x8   :  { %19 = vsyncpa [#allocation10], 0 }
   0x9   :  { %21 = vsyncpa [#allocation10 + $0x1], 0 }
   0xa   :  { %22 = vsyncpa [#allocation13], 0 }
   0xb   :  { %24 = vsyncpa [#allocation13 + $0x1], 0  ;;  %s8608_s21 = smov 0   ;;  %s8610_s22 = smov 0  }
   0xc   :  { %s8612_s23 = smov 0   ;;  %s8614_s24 = smov 0  }
   0xd   :  { %s8616_s25 = smov 0   ;;  %s8618_s26 = smov 0  }
   0xe LB: > { %s8639_s27 = sadd.s32 4294967295, %s8560_s26   ;;  %s10725_s28 = sadd.s32 4294967294, %s8560_s26   ;;  %s8560_s26 = sphi %s8618_s26, %s30_s26   ;;  %s8556_s25 = sphi %s8616_s25, %s10891_s25   ;;  %s8552_s24 = sphi %s8614_s24, %s10890_s24   ;;  %s8548_s23 = sphi %s8612_s23, %s10889_s23   ;;  %s8544_s22 = sphi %s8610_s22, %s10888_s22   ;;  %s8540_s21 = sphi %s8608_s21, %s10887_s21  }
   0xf   : > { %p62_p0 = scmp.ne.s32.totalorder %s8544_s22, %s8540_s21  ;;  %p10724_p1 = scmp.eq.s32.totalorder %s8639_s27, 0 }
  0x10   : > { %p146_p3 = scmp.eq.s32.totalorder %s10725_s28, 1  ;;  %p6212_p5 = scmp.ge.s32.totalorder %s8560_s26, 1 }
  0x11   : > { %p8650_p4 = por %p10724_p1, %p62_p0  ;;  %p237_p7 = scmp.lt.s32.totalorder %s8560_s26, 3 }
  0x12   : > { %p8655_p6 = por %p146_p3, %p62_p0  ;;  %s8562_s8 = smov [#allocation5]  }
  0x13   : > { %s10767_s29 = scalar_select %p8650_p4, 1, 0 }
  0x14   : > { %s10768_s30 = scalar_select %p8655_p6, 1, 0 }
  0x15   : > { %p8660_p8 = pnand %p6212_p5, %p237_p7  ;;  %s251_s9 = sshll.u32 %s8562_s8, 4  ;;  %s8664_s9 = int_to_ptr.vmem [resolvable:$true] %s251_s9 }
  0x16   : > { %s8563_s11 = smov [#allocation7]   ;;  %s10771_s1 = sld [smem:[#allocation49_spill]] }
  0x17   : > { %p8017_p9 = pneg %p8660_p8  ;;  %s266_s12 = sshll.u32 %s8563_s11, 4  ;;  %s8675_s12 = int_to_ptr.vmem [resolvable:$true] %s266_s12 }
  0x19   : > { %p8671_p11 = pnand %p8017_p9, %p10724_p1 }
  0x1b   : > { %p8298_p13 = pneg %p8671_p11 }
  0x1c   : > { %s8296_s15 = scalar_lea.hbm %s10771_s1, 9216 }
  0x1d   : > { %p8297_p12 = scmp.ne.s32.totalorder %s10771_s1, %s8296_s15  ;;  %p8303_p5 = scmp.lt.u32.totalorder %s8296_s15, %s10771_s1 }
  0x1f   : > { %p8299_p0 = pnand %p8298_p13, %p8297_p12 }
  0x21   : > { %p8300_p3 = pneg %p8299_p0 }
  0x23   : > { %p8305_p7 = pnand %p8303_p5, %p8300_p3 }
  0x25   : > { %8308 = shalt.err (!%p8305_p7)
}
  0x26   : > { %s8309_s20 = scalar_lea.vmem %s8664_s9, 9216  ;;  %p8317_p2 = scmp.lt.s32.totalorder %s8664_s9, %s8664_s9 }
  0x27   : > { %p8310_p9 = scmp.ne.s32.totalorder %s8664_s9, %s8309_s20  ;;  %p8318_p12 = scmp.lt.s32.totalorder %s8309_s20, %s8309_s20 }
  0x29   : > { %p8312_p10 = pnand %p8310_p9, %p8298_p13  ;;  %p8319_p0 = por %p8318_p12, %p8317_p2 }
  0x2b   : > { %p8313_p1 = pneg %p8312_p10 }
  0x2d   : > { %p8320_p6 = pnand %p8319_p0, %p8313_p1 }
  0x2f   : > { %8323 = shalt.err (!%p8320_p6)
}
  0x30   : > { %s10726_s8 = smov 64   ;;  %s10727_s11 = smov 4  }
  0x31   : > { %8020 = dma.hbm_to_vmem [thread:$0]  (!%p8671_p11), %s10771_s1, 9216, %s8664_s9, [#allocation6], %s10726_s8, %s10726_s8, %s10727_s11  }
  0x32   : > { %s8324_s17 = scalar_lea.hbm %s10719_s2, 1024 }
  0x33   : > { %p8325_p1 = scmp.ne.s32.totalorder %s10719_s2, %s8324_s17  ;;  %p8331_p10 = scmp.lt.u32.totalorder %s8324_s17, %s10719_s2 }
  0x35   : > { %p8327_p2 = pnand %p8325_p1, %p8298_p13 }
  0x37   : > { %p8328_p6 = pneg %p8327_p2 }
  0x39   : > { %p8333_p3 = pnand %p8331_p10, %p8328_p6 }
  0x3b   : > { %8336 = shalt.err (!%p8333_p3)
}
  0x3c   : > { %s8337_s9 = scalar_lea.vmem %s8675_s12, 1024  ;;  %p8345_p12 = scmp.lt.s32.totalorder %s8675_s12, %s8675_s12 }
  0x3d   : > { %p8338_p5 = scmp.ne.s32.totalorder %s8675_s12, %s8337_s9  ;;  %p8346_p0 = scmp.lt.s32.totalorder %s8337_s9, %s8337_s9 }
  0x3f   : > { %p8340_p7 = pnand %p8338_p5, %p8298_p13  ;;  %p8347_p1 = por %p8346_p0, %p8345_p12 }
  0x41   : > { %p8341_p9 = pneg %p8340_p7 }
  0x43   : > { %p8348_p2 = pnand %p8347_p1, %p8341_p9 }
  0x45   : > { %8351 = shalt.err (!%p8348_p2)
}
  0x46   : > { %8023 = dma.hbm_to_vmem [thread:$0]  (!%p8671_p11), %s10719_s2, 1024, %s8675_s12, [#allocation6], %s10726_s8, %s10726_s8, %s10727_s11  }
  0x47   : > { %s39_s10 = sadd.s32 1, %s8556_s25  ;;  %s49_s14 = sadd.s32 1, %s8548_s23 }
  0x48   : > { %p40_p13 = scmp.ge.s32.totalorder %s39_s10, 2  ;;  %p56_p6 = scmp.ne.s32.totalorder %s8548_s23, %s8544_s22 }
  0x49   : > { %p57_p10 = scmp.eq.s32.totalorder %s8560_s26, 0  ;;  %p8043_p3 = scmp.lt.s32.totalorder %s8560_s26, 2 }
  0x4a   : > { %s10893_s10 = smov (%p40_p13, %s39_s10), 0  ;;  %p10772_p7 = scmp.eq.s32.totalorder %s8639_s27, 1 }
  0x4b   : > { %p58_p5 = por %p57_p10, %p56_p6  ;;  %s46_s16 = ssub.s32 %s8556_s25, %s10893_s10 }
  0x4c   : > { %p8745_p9 = por %p10772_p7, %p56_p6  ;;  %s280_s17 = sand.u32 1, %s8548_s23  }
  0x4d   : > { %p47_p12 = scmp.eq.s32.totalorder %s46_s16, 0  ;;  %s7996_s12 = smul.u32 216, %s280_s17 }
  0x4e   : > { %s10773_s15 = scalar_select %p8745_p9, 1, 0 }
  0x4f   : > { %p8752_p11 = pnand %p8043_p3, %p58_p5  ;;  %s7997_s20 = smul.u32 3456, %s8556_s25 }
  0x50   : > { %s8757_s19 = scalar_select %p47_p12, %s8548_s23, %s49_s14  }
  0x51   : > { %s284_s9 = scalar_lea.vmem [#allocation2], %s7996_s12  ;;  %s10775_s0 = sld [smem:[#allocation48_spill]] }
  0x52   : > { %s291_s28 = sshll.u32 %s284_s9, 4  ;;  %s8767_s16 = scalar_lea.sflag [#allocation3], %s280_s17  ;;  %s8765_s28 = int_to_ptr.vmem [resolvable:$true] %s291_s28 }
  0x53   : > { %p8354_p1 = pneg %p8752_p11 }
  0x57   : > { %s8763_s11 = scalar_lea.hbm %s10775_s0, %s7997_s20  ;;  %s8357_s12 = scalar_lea.hbm %s10775_s0, 6912 }
  0x58   : > { %s8352_s1 = scalar_lea.hbm %s8763_s11, 3456  ;;  %p8358_p6 = scmp.lt.u32.totalorder %s8763_s11, %s10775_s0 }
  0x59   : > { %p8353_p0 = scmp.ne.s32.totalorder %s8763_s11, %s8352_s1  ;;  %p8359_p10 = scmp.lt.u32.totalorder %s8357_s12, %s8352_s1 }
  0x5a   : > { %p8361_p5 = scmp.lt.u32.totalorder %s8352_s1, %s8763_s11 }
  0x5b   : > { %p8355_p2 = pnand %p8354_p1, %p8353_p0  ;;  %p8360_p3 = por %p8359_p10, %p8358_p6 }
  0x5d   : > { %p8356_p13 = pneg %p8355_p2  ;;  %p8362_p7 = por %p8361_p5, %p8360_p3 }
  0x5f   : > { %p8363_p12 = pnand %p8362_p7, %p8356_p13 }
  0x61   : > { %8366 = shalt.err (!%p8363_p12)
}
  0x62   : > { %s8367_s17 = scalar_lea.vmem %s8765_s28, 3456  ;;  %s8566_s13 = smov [#allocation2]  }
  0x63   : > { %p8368_p0 = scmp.ne.s32.totalorder %s8765_s28, %s8367_s17  ;;  %s8372_s14 = sshll.u32 %s8566_s13, 4  ;;  %s8373_s14 = int_to_ptr.vmem [resolvable:$false] %s8372_s14 }
  0x64   : > { %s8374_s8 = scalar_lea.vmem %s8373_s14, 6912  ;;  %p8375_p4 = scmp.lt.s32.totalorder %s8765_s28, %s8373_s14 }
  0x65   : > { %p8370_p2 = pnand %p8368_p0, %p8354_p1  ;;  %p8376_p6 = scmp.lt.s32.totalorder %s8374_s8, %s8367_s17 }
  0x67   : > { %p8371_p9 = pneg %p8370_p2  ;;  %p8377_p10 = por %p8376_p6, %p8375_p4 }
  0x69   : > { %p8378_p3 = pnand %p8377_p10, %p8371_p9 }
  0x6b   : > { %8381 = shalt.err (!%p8378_p3)
}
  0x6c   : > { %s10776_s1 = smov 4   ;;  %s10777_s12 = smov 64  }
  0x6d   : > { %8027 = dma.hbm_to_vmem [thread:$0]  (!%p8752_p11), %s8763_s11, 3456, %s8765_s28, %s8767_s16, %s10777_s12, %s10777_s12, %s10776_s1  }
  0x6e   : > { %303 = sbr.rel (%p8660_p8) target bundleno = 841 (0x349), region = 32 }
  0x75   : > { %s8801_s20 = sand.u32 1, %s8544_s22   ;;  %p10778_p4 = scmp.ne.s32.totalorder %s10767_s29, 0 }
  0x76   : > { %s7998_s9 = smul.u32 216, %s8801_s20  ;;  %s306_s17 = scalar_lea.sflag [#allocation3], %s8801_s20 }
  0x78   : > { %s8805_s13 = scalar_lea.vmem [#allocation2], %s7998_s9 }
  0x79   : > { %8519 = dma.done.wait (%p10778_p4), %s306_s17, 3456  }
  0x7a   : > { %8521 = vsyncadd (%p10778_p4), %s306_s17, 4294963840  ;;  %p10779_p9 = scmp.eq.s32.totalorder %s8639_s27, 0 }
  0x7c   : > { %8523 = dma.done.wait (%p10779_p9), [#allocation6], 10240   ;;  %p10780_p8 = pmov %p10779_p9 }
  0x7d   : > { %v8101_v0 = vld [vmem:[#allocation5 + $0x40] sm:$0xff]   ;;  %v8103_v2 = vld [vmem:[#allocation5 + $0x48] sm:$0xff]   ;;  %v8105_v4 = vld [vmem:[#allocation5 + $0x50] sm:$0xff]   ;;  %vm426_vm0 = vsmask.f32 3328  ;;  %vm1456_vm3 = vcmask 1042432  }
  0x7e   : > { %8525 = vsyncadd (%p10780_p8), [#allocation6], 4294957056  ;;  %v8102_v1 = vld [vmem:[#allocation5 + $0x100] sm:$0xff]   ;;  %7260 = vmatprep.subr.bf16.mxu1 %v8101_v0  ;;  %v8104_v3 = vld [vmem:[#allocation5 + $0x108] sm:$0xff]   ;;  %vm427_vm1 = vsmask.f32 7440 }
  0x7f   : > { %7452 = vmatprep.subr.bf16.mxu0 %v8102_v1  ;;  %7261 = vmatpush3.bf16.msra.mxu1 %v8101_v0  ;;  %v8106_v5 = vld [vmem:[#allocation5 + $0x110] sm:$0xff]   ;;  %v8107_v6 = vld [vmem:[#allocation5 + $0x58] sm:$0xff]   ;;  %v8109_v8 = vld [vmem:[#allocation5 + $0x60] sm:$0xff]   ;;  %vm1457_vm4 = vcmask 1046532   ;;  %s6220_s29 = sshll.u32 %s8801_s20, 7  ;;  %s10763_s18 = sshll.u32 %s8552_s24, 11 }
  0x80   : > { %7453 = vmatpush3.bf16.msra.mxu0 %v8102_v1  ;;  %7262 = vmatprep.subr.bf16.mxu1 %v8103_v2  ;;  %v8108_v7 = vld [vmem:[#allocation5 + $0x118] sm:$0xff]   ;;  %v8110_v9 = vld [vmem:[#allocation5 + $0x120] sm:$0xff]   ;;  %v8111_v10 = vld [vmem:[#allocation5 + $0x68] sm:$0xff]   ;;  %s10475_s7 = scalar_lea.vmem [#allocation11], %s6220_s29  ;;  %s10481_s11 = scalar_lea.vmem [#allocation8], %s6220_s29 }
  0x81   : > { %7454 = vmatprep.subr.bf16.mxu0 %v8104_v3  ;;  %v8112_v11 = vld [vmem:[#allocation5 + $0x128] sm:$0xff]   ;;  %v410_v14 = vld [vmem:[%s8805_s13 + $0x8] sm:$0x1]  ;;  %v6368_v19 = vld [vmem:[%s8805_s13 + $0xc] sm:$0xf]  ;;  %s5962_s28 = sshll.u32 %s10481_s11, 4  ;;  %s10546_s8 = scalar_lea.hbm %s10720_s3, %s10763_s18  ;;  %s10548_s28 = int_to_ptr.vmem [resolvable:$true] %s5962_s28 }
  0x82   : > { %v362_v12 = vld [vmem:[%s8805_s13] sm:$0xf]  ;;  %v363_v13 = vld [vmem:[%s8805_s13 + $0x4] sm:$0xf]  ;;  %v449_v20 = vshll.u32 %v410_v14, 16  ;;  %v2329_v30 = vshrl.u32 %v6368_v19, 16  ;;  %vm8825_vm2 = vmor %vm426_vm0, %vm427_vm1 }
  0x83   : > { %7263 = vmatpush3.bf16.msra.mxu1 %v8103_v2  ;;  %v430_v15 = vshrl.u32 %v362_v12, 16  ;;  %v433_v16 = vshll.u32 %v362_v12, 16  ;;  %v439_v17 = vshll.u32 %v363_v13, 16  ;;  %v443_v18 = vshrl.u32 %v363_v13, 16  ;;  %v6369_v21 = vld [vmem:[%s8805_s13 + $0x10] sm:$0xf]  ;;  %vm9189_vm5 = vmor %vm1456_vm3, %vm1457_vm4 }
  0x84   : > { %7455 = vmatpush3.bf16.msra.mxu0 %v8104_v3  ;;  %7264 = vmatprep.subr.bf16.mxu1 %v8105_v4  ;;  %v6370_v22 = vld [vmem:[%s8805_s13 + $0x14] sm:$0x1]  ;;  %v364_v27 = vld [vmem:[%s8805_s13 + $0xc] sm:$0xf]  ;;  %v451_v29 = vrot.slane %v449_v20, 5  ;;  %v2332_v31 = vshll.u32 %v6368_v19, 16 }
  0x85   : > { %7456 = vmatprep.subr.bf16.mxu0 %v8106_v5  ;;  %v432_v23 = vrot.slane %v430_v15, 4  ;;  %v435_v24 = vrot.slane %v433_v16, 5  ;;  %v441_v25 = vrot.slane %v439_v17, 5  ;;  %v445_v26 = vrot.slane %v443_v18, 4  ;;  %v8113_v28 = vld [vmem:[#allocation5 + $0x70] sm:$0xff]   ;;  %v8115_v50 = vld [vmem:[#allocation5 + $0x78] sm:$0xff]  }
  0x86   : > { %v2338_v32 = vshll.u32 %v6369_v21, 16  ;;  %v8114_v33 = vld [vmem:[#allocation5 + $0x130] sm:$0xff]   ;;  %v2342_v36 = vshrl.u32 %v6369_v21, 16  ;;  %v2348_v37 = vshll.u32 %v6370_v22, 16  ;;  %v365_v38 = vld [vmem:[%s8805_s13 + $0x10] sm:$0xf] }
  0x87   : > { %7265 = vmatpush3.bf16.msra.mxu1 %v8105_v4  ;;  %v436_v34 = vor.u32 %v435_v24, %v432_v23  ;;  %v446_v35 = vor.u32 %v445_v26, %v441_v25  ;;  %v2331_v40 = vrot.slane %v2329_v30, 4  ;;  %v2334_v41 = vrot.slane %v2332_v31, 5  ;;  %v411_v43 = vld [vmem:[%s8805_s13 + $0x14] sm:$0x1]  ;;  %v6371_v49 = vld [vmem:[%s8805_s13 + $0x18] sm:$0xf] }
  0x88   : > { %7457 = vmatpush3.bf16.msra.mxu0 %v8106_v5  ;;  %7266 = vmatprep.subr.bf16.mxu1 %v8107_v6  ;;  %v2340_v42 = vrot.slane %v2338_v32, 5  ;;  %v454_v44 = vshrl.u32 %v364_v27, 16  ;;  %v2344_v47 = vrot.slane %v2342_v36, 4  ;;  %v2350_v48 = vrot.slane %v2348_v37, 5  ;;  %v8832_v55 = vld [vmem:[%s8805_s13 + $0x1c] sm:$0xf] }
  0x89   : > { %7458 = vmatprep.subr.bf16.mxu0 %v8108_v7  ;;  %v437_v45 = vrot.slane %v436_v34, 4  ;;  %v447_v46 = vrot.slane %v446_v35, 4  ;;  %v2335_v51 = vor.u32 %v2334_v41, %v2331_v40  ;;  %v457_v53 = vshll.u32 %v364_v27, 16  ;;  %v8116_v56 = vld [vmem:[#allocation5 + $0x138] sm:$0xff]   ;;  %v8846_v13 = vld [vmem:[#allocation5 + $0x140] sm:$0xff]   ;;  %v8120_v41 = vld [vmem:[#allocation5 + $0x8] sm:$0xff]  }
  0x8a   : > { %v456_v52 = vrot.slane %v454_v44, 4  ;;  %v463_v54 = vshll.u32 %v365_v38, 16  ;;  %v2345_v59 = vor.u32 %v2344_v47, %v2340_v42  ;;  %v467_v60 = vshrl.u32 %v365_v38, 16  ;;  %v8118_v14 = vld [vmem:[#allocation5] sm:$0xff]   ;;  %v6374_v34 = vld [vmem:[%s8805_s13 + $0x24] sm:$0xf] }
  0x8b   : > { %7267 = vmatpush3.bf16.msra.mxu1 %v8107_v6  ;;  %v442_v57 = vsel %vm8825_vm2, %v437_v45, %v441_v25  ;;  %v452_v58 = vsel %vm8825_vm2, %v447_v46, %v451_v29  ;;  %v2336_v62 = vrot.slane %v2335_v51, 4  ;;  %v459_v63 = vrot.slane %v457_v53, 5  ;;  %v8841_v6 = vld [vmem:[%s8805_s13 + $0x20] sm:$0x1]  ;;  %v366_v19 = vld [vmem:[%s8805_s13 + $0x18] sm:$0xf] }
  0x8c   : > { %7459 = vmatpush3.bf16.msra.mxu0 %v8108_v7  ;;  %7268 = vmatprep.subr.bf16.mxu1 %v8109_v8  ;;  %v6224_v61 = vcombine.low %v442_v57, %v452_v58  ;;  %v465_v0 = vrot.slane %v463_v54, 5  ;;  %v2346_v1 = vrot.slane %v2345_v59, 4  ;;  %v469_v2 = vrot.slane %v467_v60, 4  ;;  %v412_v29 = vld [vmem:[%s8805_s13 + $0x20] sm:$0x1]  ;;  %s5933_s1 = scalar_lea.sflag [#allocation4], %s8801_s20 }
  0x8d   : > { %7460 = vmatprep.subr.bf16.mxu0 %v8110_v9  ;;  %v473_v3 = vshll.u32 %v411_v43, 16  ;;  %v2341_v4 = vsel %vm8825_vm2, %v2336_v62, %v2340_v42  ;;  %v460_v5 = vor.u32 %v459_v63, %v456_v52  ;;  %v2353_v7 = vshrl.u32 %v6371_v49, 16  ;;  %v6375_v40 = vld [vmem:[%s8805_s13 + $0x28] sm:$0xf]  ;;  %v6376_v46 = vld [vmem:[%s8805_s13 + $0x2c] sm:$0x1] }
  0x8e   : > { %7276 = vmatprep.mubr.bf16.mxu1 %v6224_v61  ;;  %v2362_v12 = vshll.u32 %v8832_v55, 16  ;;  %v2366_v22 = vshrl.u32 %v8832_v55, 16  ;;  %v2372_v23 = vshll.u32 %v8841_v6, 16  ;;  %v10730_v26 = vrot.slane %v8832_v55, 5  ;;  %v368_v51 = vld [vmem:[%s8805_s13 + $0x24] sm:$0xf] }
  0x8f   : > { %7269 = vmatpush3.bf16.msra.mxu1 %v8109_v8  ;;  %v2356_v8 = vshll.u32 %v6371_v49, 16  ;;  %v461_v16 = vrot.slane %v460_v5, 4  ;;  %v2355_v17 = vrot.slane %v2353_v7, 4  ;;  %v481_v38 = vshll.u32 %v366_v19, 16  ;;  %v8122_v61 = vld [vmem:[#allocation5 + $0x10] sm:$0xff]   ;;  %s8382_s12 = scalar_lea.vmem %s10548_s28, 2048 }
  0x90   : > { %7461 = vmatpush3.bf16.msra.mxu0 %v8110_v9  ;;  %7270 = vmatprep.subr.bf16.mxu1 %v8111_v10  ;;  %v2351_v9 = vsel %vm8825_vm2, %v2346_v1, %v2350_v48  ;;  %v2364_v21 = vrot.slane %v2362_v12, 5  ;;  %v2368_v31 = vrot.slane %v2366_v22, 4  ;;  %v2374_v32 = vrot.slane %v2372_v23, 5  ;;  %v413_v12 = vld [vmem:[%s8805_s13 + $0x2c] sm:$0x1]  ;;  %p8383_p11 = scmp.ne.s32.totalorder %s10548_s28, %s8382_s12  ;;  %p10878_p1 = scmp.ne.s32.totalorder %s10773_s15, 0 }
  0x91   : > { %7462 = vmatprep.subr.bf16.mxu0 %v8112_v11  ;;  %v8848_v15 = vcombine.low %v2341_v4, %v2351_v9  ;;  %v2358_v18 = vrot.slane %v2356_v8, 5  ;;  %v466_v24 = vsel %vm8825_vm2, %v461_v16, %v465_v0  ;;  %v8866_v37 = vrot.slane %v10730_v26, 4  ;;  %v8119_v8 = vld [vmem:[#allocation5 + $0x148] sm:$0xff]   ;;  %v8231_v27 = vld [vmem:[%s8805_s13 + $0x10] sm:$0xf]  ;;  %s8567_s9 = smov [#allocation8]  }
  0x92   : > { %v2369_v42 = vor.u32 %v2368_v31, %v2364_v21  ;;  %v483_v48 = vrot.slane %v481_v38, 5  ;;  %v497_v49 = vshll.u32 %v412_v29, 16  ;;  %v2386_v60 = vshll.u32 %v6375_v40, 16  ;;  %p8384_p13 = pnand %p8383_p11, %p10878_p1  ;;  %s8386_s17 = sshll.u32 %s8567_s9, 4  ;;  %s8387_s17 = int_to_ptr.vmem [resolvable:$false] %s8386_s17 }
  0x93   : > { %7271 = vmatpush3.bf16.msra.mxu1 %v8111_v10  ;;  %v470_v10 = vor.u32 %v469_v2, %v465_v0  ;;  %10783 = vst [vmem:[#allocation19_spill] sm:$0xff] %v8848_v15  ;;  %7468 = vmatprep.mubr.bf16.mxu0 %v8848_v15  ;;  %v2359_v25 = vor.u32 %v2358_v18, %v2355_v17  ;;  %v2390_v1 = vshrl.u32 %v6375_v40, 16  ;;  %v369_v2 = vld [vmem:[%s8805_s13 + $0x28] sm:$0xf]  ;;  %v2396_v7 = vshll.u32 %v6376_v46, 16  ;;  %p8389_p7 = scmp.lt.s32.totalorder %s10548_s28, %s8387_s17 }
  0x94   : > { %7463 = vmatpush3.bf16.msra.mxu0 %v8112_v11  ;;  %7272 = vmatprep.subr.bf16.mxu1 %v8113_v28  ;;  %v475_v11 = vrot.slane %v473_v3, 5  ;;  %v2370_v52 = vrot.slane %v2369_v42, 4  ;;  %v499_v58 = vrot.slane %v497_v49, 5  ;;  %v2388_v5 = vrot.slane %v2386_v60, 5  ;;  %v6463_v15 = vld [vmem:[%s8805_s13 + $0xc0] sm:$0xe]  ;;  %p8385_p5 = pneg %p8384_p13 }
  0x95   : > { %7464 = vmatprep.subr.bf16.mxu0 %v8114_v33  ;;  %v471_v20 = vrot.slane %v470_v10, 4  ;;  %v2360_v36 = vrot.slane %v2359_v25, 4  ;;  %v2398_v17 = vrot.slane %v2396_v7, 5  ;;  %v505_v18 = vshll.u32 %v368_v51, 16 }
  0x96   : > { %v2375_v62 = vsel %vm8825_vm2, %v2370_v52, %v2374_v32  ;;  %v515_v32 = vshrl.u32 %v369_v2, 16 }
  0x97   : > { %7273 = vmatpush3.bf16.msra.mxu1 %v8113_v28  ;;  %v367_v28 = vld [vmem:[%s8805_s13 + $0x1c] sm:$0xf]  ;;  %v476_v30 = vsel %vm8825_vm2, %v471_v20, %v475_v11  ;;  %v2365_v47 = vsel %vm8825_vm2, %v2360_v36, %v2364_v21  ;;  %v2392_v11 = vrot.slane %v2390_v1, 4  ;;  %v6377_v20 = vld [vmem:[%s8805_s13 + $0x30] sm:$0xf]  ;;  %v521_v36 = vshll.u32 %v413_v12, 16 }
  0x98   : > { %7465 = vmatpush3.bf16.msra.mxu0 %v8114_v33  ;;  %7274 = vmatprep.subr.bf16.mxu1 %v8115_v50  ;;  %v478_v33 = vshrl.u32 %v366_v19, 16  ;;  %v6225_v35 = vcombine.low %v466_v24, %v476_v30  ;;  %v487_v44 = vshll.u32 %v367_v28, 16  ;;  %v491_v45 = vshrl.u32 %v367_v28, 16  ;;  %v8124_v21 = vld [vmem:[#allocation5 + $0x18] sm:$0xff]  }
  0x99   : > { %7466 = vmatprep.subr.bf16.mxu0 %v8116_v56  ;;  %v8876_v3 = vcombine.low %v2365_v47, %v2375_v62  ;;  %v511_v19 = vshll.u32 %v369_v2, 16  ;;  %v2393_v24 = vor.u32 %v2392_v11, %v2388_v5  ;;  %v6378_v28 = vld [vmem:[%s8805_s13 + $0x34] sm:$0xf]  ;;  %v507_v30 = vrot.slane %v505_v18, 5 }
  0x9a   : > { %v480_v43 = vrot.slane %v478_v33, 4  ;;  %v489_v53 = vrot.slane %v487_v44, 5  ;;  %v493_v54 = vrot.slane %v491_v45, 4  ;;  %v8121_v33 = vld [vmem:[#allocation5 + $0x150] sm:$0xff]   ;;  %v2401_v38 = vshrl.u32 %v6377_v20, 16  ;;  %v8126_v45 = vld [vmem:[#allocation5 + $0x20] sm:$0xff]  }
  0x9b   : > { %7275 = vmatpush3.bf16.msra.mxu1 %v8115_v50  ;;  %v2377_v50 = vshrl.u32 %v6374_v34, 16  ;;  %10784 = vst [vmem:[#allocation20_spill] sm:$0xff] %v8876_v3  ;;  %v513_v31 = vrot.slane %v511_v19, 5  ;;  %v2404_v42 = vshll.u32 %v6377_v20, 16  ;;  %v370_v44 = vld [vmem:[%s8805_s13 + $0x30] sm:$0xf] }
  0x9c   : > { %7467 = vmatpush3.bf16.msra.mxu0 %v8116_v56  ;;  %7308 = vmatprep.subr.bf16.mxu1 %v8118_v14  ;;  %v2380_v56 = vshll.u32 %v6374_v34, 16  ;;  %v484_v57 = vor.u32 %v483_v48, %v480_v43  ;;  %v494_v63 = vor.u32 %v493_v54, %v489_v53  ;;  %v2410_v43 = vshll.u32 %v6378_v28, 16 }
  0x9d   : > { %7548 = vmatprep.subr.bf16.mxu0 %v8846_v13  ;;  %v2379_v59 = vrot.slane %v2377_v50, 4  ;;  %v523_v47 = vrot.slane %v521_v36, 5  ;;  %v2403_v48 = vrot.slane %v2401_v38, 4  ;;  %v2414_v49 = vshrl.u32 %v6378_v28, 16  ;;  %v371_v50 = vld [vmem:[%s8805_s13 + $0x34] sm:$0xf] }
  0x9e   : > { %7277 = vmatmul.mubr.bf16.vlgmr.msra.gmra.mrb[0].mxu1 %v6225_v35  ;;  %v2382_v0 = vrot.slane %v2380_v56, 5  ;;  %v485_v4 = vrot.slane %v484_v57, 4  ;;  %v495_v9 = vrot.slane %v494_v63, 4  ;;  %v2394_v35 = vrot.slane %v2393_v24, 4  ;;  %v414_v56 = vld [vmem:[%s8805_s13 + $0x38] sm:$0x1] }
  0x9f   : > { %7309 = vmatpush3.bf16.msra.mxu1 %v8118_v14  ;;  %v502_v14 = vshrl.u32 %v368_v51, 16  ;;  %7469 = vmatmul.mubr.bf16.vlgmr.msra.gmra.mrb[0].mxu0 %v8876_v3  ;;  %v2406_v54 = vrot.slane %v2404_v42, 5  ;;  %v8123_v57 = vld [vmem:[#allocation5 + $0x158] sm:$0xff]   ;;  %v2416_v60 = vrot.slane %v2414_v49, 4  ;;  %v526_v62 = vshrl.u32 %v370_v44, 16  ;;  %v8151_v3 = vld [vmem:[#allocation5 + $0x1a0] sm:$0xff]  }
  0xa0   : > { %7310 = vmatprep.subr.bf16.mxu1 %v8120_v41  ;;  %v2383_v10 = vor.u32 %v2382_v0, %v2379_v59  ;;  %v490_v16 = vsel %vm8825_vm2, %v485_v4, %v489_v53  ;;  %7549 = vmatpush3.bf16.msra.mxu0 %v8846_v13  ;;  %v500_v22 = vsel %vm8825_vm2, %v495_v9, %v499_v58  ;;  %v6379_v13 = vld [vmem:[%s8805_s13 + $0x38] sm:$0x1]  ;;  %v2412_v59 = vrot.slane %v2410_v43, 5  ;;  %v6380_v63 = vld [vmem:[%s8805_s13 + $0x3c] sm:$0xf] }
  0xa1   : > { %v504_v25 = vrot.slane %v502_v14, 4  ;;  %v6226_v29 = vcombine.low %v490_v16, %v500_v22  ;;  %7550 = vmatprep.subr.bf16.mxu0 %v8119_v8  ;;  %v2399_v46 = vsel %vm8825_vm2, %v2394_v35, %v2398_v17  ;;  %v8128_v58 = vld [vmem:[#allocation5 + $0x28] sm:$0xff]   ;;  %v2407_v2 = vor.u32 %v2406_v54, %v2403_v48  ;;  %v8125_v17 = vld [vmem:[#allocation5 + $0x160] sm:$0xff]  }
  0xa2   : > { %v2384_v23 = vrot.slane %v2383_v10, 4  ;;  %v529_v4 = vshll.u32 %v370_v44, 16  ;;  %v535_v9 = vshll.u32 %v371_v50, 16  ;;  %v539_v14 = vshrl.u32 %v371_v50, 16  ;;  %v6381_v16 = vld [vmem:[%s8805_s13 + $0x40] sm:$0xf] }
  0xa3   : > { %7311 = vmatpush3.bf16.msra.mxu1 %v8120_v41  ;;  %7280 = vmatprep.mubr.bf16.mxu1 %v6226_v29  ;;  %v508_v40 = vor.u32 %v507_v30, %v504_v25  ;;  %v517_v41 = vrot.slane %v515_v32, 4  ;;  %v2408_v11 = vrot.slane %v2407_v2, 4  ;;  %v6382_v25 = vld [vmem:[%s8805_s13 + $0x44] sm:$0x1]  ;;  %v2425_v28 = vshrl.u32 %v6380_v63, 16 }
  0xa4   : > { %7312 = vmatprep.subr.bf16.mxu1 %v8122_v61  ;;  %v2389_v34 = vsel %vm8825_vm2, %v2384_v23, %v2388_v5  ;;  %7551 = vmatpush3.bf16.msra.mxu0 %v8119_v8  ;;  %v2417_v5 = vor.u32 %v2416_v60, %v2412_v59  ;;  %v528_v8 = vrot.slane %v526_v62, 4  ;;  %v531_v12 = vrot.slane %v529_v4, 5  ;;  %v8130_v29 = vld [vmem:[#allocation5 + $0x30] sm:$0xff]  }
  0xa5   : > { %v8894_v51 = vcombine.low %v2389_v34, %v2399_v46  ;;  %v509_v52 = vrot.slane %v508_v40, 4  ;;  %v518_v53 = vor.u32 %v517_v41, %v513_v31  ;;  %7552 = vmatprep.subr.bf16.mxu0 %v8121_v33  ;;  %v537_v20 = vrot.slane %v535_v9, 5  ;;  %v372_v34 = vld [vmem:[%s8805_s13 + $0x3c] sm:$0xf]  ;;  %v373_v40 = vld [vmem:[%s8805_s13 + $0x40] sm:$0xf] }
  0xa6   : > { %v2418_v19 = vrot.slane %v2417_v5, 4  ;;  %v2413_v22 = vsel %vm8825_vm2, %v2408_v11, %v2412_v59  ;;  %v532_v23 = vor.u32 %v531_v12, %v528_v8  ;;  %v541_v24 = vrot.slane %v539_v14, 4  ;;  %v8127_v41 = vld [vmem:[#allocation5 + $0x168] sm:$0xff]   ;;  %v6383_v59 = vld [vmem:[%s8805_s13 + $0x48] sm:$0xf]  ;;  %v8136_v14 = vld [vmem:[#allocation5 + $0x80] sm:$0xff]  }
  0xa7   : > { %7313 = vmatpush3.bf16.msra.mxu1 %v8122_v61  ;;  %10785 = vst [vmem:[#allocation21_spill] sm:$0xff] %v8894_v51  ;;  %v2420_v61 = vshll.u32 %v6379_v13, 16  ;;  %7472 = vmatprep.mubr.bf16.mxu0 %v8894_v51  ;;  %v514_v0 = vsel %vm8825_vm2, %v509_v52, %v513_v31  ;;  %v519_v1 = vrot.slane %v518_v53, 4  ;;  %v2428_v32 = vshll.u32 %v6380_v63, 16  ;;  %v415_v48 = vld [vmem:[%s8805_s13 + $0x44] sm:$0x1] }
  0xa8   : > { %7314 = vmatprep.subr.bf16.mxu1 %v8124_v21  ;;  %7553 = vmatpush3.bf16.msra.mxu0 %v8121_v33  ;;  %v2434_v33 = vshll.u32 %v6381_v16, 16  ;;  %v533_v36 = vrot.slane %v532_v23, 4  ;;  %v542_v13 = vor.u32 %v541_v24, %v537_v20  ;;  %v2427_v38 = vrot.slane %v2425_v28, 4  ;;  %v8132_v52 = vld [vmem:[#allocation5 + $0x38] sm:$0xff]  }
  0xa9   : > { %v2422_v7 = vrot.slane %v2420_v61, 5  ;;  %v524_v10 = vsel %vm8825_vm2, %v519_v1, %v523_v47  ;;  %7554 = vmatprep.subr.bf16.mxu0 %v8123_v57  ;;  %v2430_v42 = vrot.slane %v2428_v32, 5  ;;  %v2438_v44 = vshrl.u32 %v6381_v16, 16  ;;  %v6384_v63 = vld [vmem:[%s8805_s13 + $0x4c] sm:$0xf] }
  0xaa   : > { %v6227_v18 = vcombine.low %v514_v0, %v524_v10  ;;  %v2436_v43 = vrot.slane %v2434_v33, 5  ;;  %v538_v46 = vsel %vm8825_vm2, %v533_v36, %v537_v20  ;;  %v543_v47 = vrot.slane %v542_v13, 4  ;;  %v8129_v0 = vld [vmem:[#allocation5 + $0x170] sm:$0xff]   ;;  %v8131_v24 = vld [vmem:[#allocation5 + $0x178] sm:$0xff]  }
  0xab   : > { %7315 = vmatpush3.bf16.msra.mxu1 %v8124_v21  ;;  %v545_v21 = vshll.u32 %v414_v56, 16  ;;  %v2423_v30 = vsel %vm8825_vm2, %v2418_v19, %v2422_v7  ;;  %v550_v49 = vshrl.u32 %v372_v34, 16  ;;  %v553_v50 = vshll.u32 %v372_v34, 16  ;;  %v6385_v7 = vld [vmem:[%s8805_s13 + $0x50] sm:$0x1] }
  0xac   : > { %7316 = vmatprep.subr.bf16.mxu1 %v8126_v45  ;;  %7281 = vmatmul.mubr.bf16.gmra.mrb[4].mxu1 %v6227_v18  ;;  %v8910_v35 = vcombine.low %v2413_v22, %v2423_v30  ;;  %v2431_v53 = vor.u32 %v2430_v42, %v2427_v38  ;;  %v2440_v54 = vrot.slane %v2438_v44, 4  ;;  %v563_v62 = vshrl.u32 %v373_v40, 16  ;;  %v374_v12 = vld [vmem:[%s8805_s13 + $0x48] sm:$0xf]  ;;  %v8263_v51 = vld [vmem:[%s8805_s13 + $0x74] sm:$0x1] }
  0xad   : > { %v547_v31 = vrot.slane %v545_v21, 5  ;;  %7555 = vmatpush3.bf16.msra.mxu0 %v8123_v57  ;;  %v559_v57 = vshll.u32 %v373_v40, 16  ;;  %v552_v60 = vrot.slane %v550_v49, 4  ;;  %v555_v61 = vrot.slane %v553_v50, 5  ;;  %v416_v40 = vld [vmem:[%s8805_s13 + $0x50] sm:$0x1] }
  0xae   : > { %10786 = vst [vmem:[#allocation22_spill] sm:$0xff] %v8910_v35  ;;  %7556 = vmatprep.subr.bf16.mxu0 %v8125_v17  ;;  %7473 = vmatmul.mubr.bf16.gmra.mrb[4].mxu0 %v8910_v35  ;;  %v2432_v2 = vrot.slane %v2431_v53, 4  ;;  %v2441_v4 = vor.u32 %v2440_v54, %v2436_v43  ;;  %v565_v9 = vrot.slane %v563_v62, 4  ;;  %v569_v10 = vshll.u32 %v415_v48, 16  ;;  %v8135_v48 = vld [vmem:[#allocation5 + $0x180] sm:$0xff]  }
  0xaf   : > { %7317 = vmatpush3.bf16.msra.mxu1 %v8126_v45  ;;  %v2444_v45 = vshll.u32 %v6382_v25, 16  ;;  %v561_v5 = vrot.slane %v559_v57, 5  ;;  %v556_v8 = vor.u32 %v555_v61, %v552_v60  ;;  %v2449_v11 = vshrl.u32 %v6383_v59, 16  ;;  %v6387_v54 = vld [vmem:[%s8805_s13 + $0x58] sm:$0xf] }
  0xb0   : > { %7318 = vmatprep.subr.bf16.mxu1 %v8128_v58  ;;  %v2437_v16 = vsel %vm8825_vm2, %v2432_v2, %v2436_v43  ;;  %v2452_v18 = vshll.u32 %v6383_v59, 16  ;;  %v2458_v19 = vshll.u32 %v6384_v63, 16  ;;  %v571_v22 = vrot.slane %v569_v10, 5 }
  0xb1   : > { %v2446_v56 = vrot.slane %v2444_v45, 5  ;;  %7557 = vmatpush3.bf16.msra.mxu0 %v8125_v17  ;;  %v2442_v17 = vrot.slane %v2441_v4, 4  ;;  %v557_v20 = vrot.slane %v556_v8, 4  ;;  %v566_v21 = vor.u32 %v565_v9, %v561_v5  ;;  %v6388_v4 = vld [vmem:[%s8805_s13 + $0x5c] sm:$0x1] }
  0xb2   : > { %7558 = vmatprep.subr.bf16.mxu0 %v8127_v41  ;;  %v2451_v23 = vrot.slane %v2449_v11, 4  ;;  %v2454_v28 = vrot.slane %v2452_v18, 5  ;;  %v2462_v30 = vshrl.u32 %v6384_v63, 16  ;;  %v2468_v36 = vshll.u32 %v6385_v7, 16  ;;  %v376_v7 = vld [vmem:[%s8805_s13 + $0x54] sm:$0xf] }
  0xb3   : > { %7319 = vmatpush3.bf16.msra.mxu1 %v8128_v58  ;;  %v548_v58 = vsel %vm8825_vm2, %v543_v47, %v547_v31  ;;  %v2447_v25 = vsel %vm8825_vm2, %v2442_v17, %v2446_v56  ;;  %v375_v31 = vld [vmem:[%s8805_s13 + $0x4c] sm:$0xf]  ;;  %v562_v33 = vsel %vm8825_vm2, %v557_v20, %v561_v5  ;;  %v567_v34 = vrot.slane %v566_v21, 4  ;;  %v6386_v47 = vld [vmem:[%s8805_s13 + $0x54] sm:$0xf] }
  0xb4   : > { %7320 = vmatprep.subr.bf16.mxu1 %v8130_v29  ;;  %v6228_v1 = vcombine.low %v538_v46, %v548_v58  ;;  %v8928_v32 = vcombine.low %v2437_v16, %v2447_v25  ;;  %v2455_v13 = vor.u32 %v2454_v28, %v2451_v23  ;;  %v2464_v38 = vrot.slane %v2462_v30, 4  ;;  %v6389_v20 = vld [vmem:[%s8805_s13 + $0x60] sm:$0xf] }
  0xb5   : > { %7559 = vmatpush3.bf16.msra.mxu0 %v8127_v41  ;;  %v574_v41 = vshrl.u32 %v374_v12, 16  ;;  %v577_v42 = vshll.u32 %v374_v12, 16  ;;  %v572_v43 = vsel %vm8825_vm2, %v567_v34, %v571_v22  ;;  %v2470_v44 = vrot.slane %v2468_v36, 5  ;;  %v377_v12 = vld [vmem:[%s8805_s13 + $0x58] sm:$0xf] }
  0xb6   : > { %7284 = vmatprep.mubr.bf16.mxu1 %v6228_v1  ;;  %7560 = vmatprep.subr.bf16.mxu0 %v8129_v0  ;;  %10787 = vst [vmem:[#allocation23_spill] sm:$0xff] %v8928_v32  ;;  %v583_v45 = vshll.u32 %v375_v31, 16  ;;  %v587_v46 = vshrl.u32 %v375_v31, 16  ;;  %v6229_v49 = vcombine.low %v562_v33, %v572_v43  ;;  %v2456_v50 = vrot.slane %v2455_v13, 4  ;;  %v6390_v13 = vld [vmem:[%s8805_s13 + $0x64] sm:$0xf] }
  0xb7   : > { %7321 = vmatpush3.bf16.msra.mxu1 %v8130_v29  ;;  %v2460_v29 = vrot.slane %v2458_v19, 5  ;;  %7476 = vmatprep.mubr.bf16.mxu0 %v8928_v32  ;;  %v576_v53 = vrot.slane %v574_v41, 4  ;;  %v579_v56 = vrot.slane %v577_v42, 5  ;;  %v593_v58 = vshll.u32 %v416_v40, 16  ;;  %v417_v19 = vld [vmem:[%s8805_s13 + $0x5c] sm:$0x1] }
  0xb8   : > { %7322 = vmatprep.subr.bf16.mxu1 %v8132_v52  ;;  %v585_v57 = vrot.slane %v583_v45, 5  ;;  %v589_v59 = vrot.slane %v587_v46, 4  ;;  %7285 = vmatmul.mubr.bf16.gmra.mrb[8].mxu1 %v6229_v49  ;;  %v2473_v62 = vshrl.u32 %v6386_v47, 16  ;;  %v2476_v63 = vshll.u32 %v6386_v47, 16  ;;  %v6391_v46 = vld [vmem:[%s8805_s13 + $0x68] sm:$0x1] }
  0xb9   : > { %7561 = vmatpush3.bf16.msra.mxu0 %v8129_v0  ;;  %v2461_v60 = vsel %vm8825_vm2, %v2456_v50, %v2460_v29  ;;  %v580_v0 = vor.u32 %v579_v56, %v576_v53  ;;  %v595_v2 = vrot.slane %v593_v58, 5  ;;  %v2482_v5 = vshll.u32 %v6387_v54, 16  ;;  %v378_v53 = vld [vmem:[%s8805_s13 + $0x60] sm:$0xf] }
  0xba   : > { %7562 = vmatprep.subr.bf16.mxu0 %v8131_v24  ;;  %v590_v1 = vor.u32 %v589_v59, %v585_v57  ;;  %v2475_v9 = vrot.slane %v2473_v62, 4  ;;  %v2478_v10 = vrot.slane %v2476_v63, 5  ;;  %v2486_v11 = vshrl.u32 %v6387_v54, 16  ;;  %v379_v63 = vld [vmem:[%s8805_s13 + $0x64] sm:$0xf] }
  0xbb   : > { %7323 = vmatpush3.bf16.msra.mxu1 %v8132_v52  ;;  %v2465_v52 = vor.u32 %v2464_v38, %v2460_v29  ;;  %v581_v16 = vrot.slane %v580_v0, 4  ;;  %v2484_v18 = vrot.slane %v2482_v5, 5  ;;  %v2492_v23 = vshll.u32 %v6388_v4, 16 }
  0xbc   : > { %7356 = vmatprep.subr.bf16.mxu1 %v8136_v14  ;;  %v591_v17 = vrot.slane %v590_v1, 4  ;;  %v2479_v21 = vor.u32 %v2478_v10, %v2475_v9  ;;  %v2488_v22 = vrot.slane %v2486_v11, 4  ;;  %v601_v29 = vshll.u32 %v376_v7, 16  ;;  %v418_v9 = vld [vmem:[%s8805_s13 + $0x68] sm:$0x1] }
  0xbd   : > { %v2466_v61 = vrot.slane %v2465_v52, 4  ;;  %7563 = vmatpush3.bf16.msra.mxu0 %v8131_v24  ;;  %v598_v24 = vshrl.u32 %v376_v7, 16  ;;  %v586_v25 = vsel %vm8825_vm2, %v581_v16, %v585_v57  ;;  %v607_v30 = vshll.u32 %v377_v12, 16  ;;  %v6392_v11 = vld [vmem:[%s8805_s13 + $0x6c] sm:$0xf] }
  0xbe   : > { %7596 = vmatprep.subr.bf16.mxu0 %v8135_v48  ;;  %v596_v28 = vsel %vm8825_vm2, %v591_v17, %v595_v2  ;;  %v2480_v33 = vrot.slane %v2479_v21, 4  ;;  %v2489_v34 = vor.u32 %v2488_v22, %v2484_v18  ;;  %v2494_v36 = vrot.slane %v2492_v23, 5 }
  0xbf   : > { %v2471_v8 = vsel %vm8825_vm2, %v2466_v61, %v2470_v44  ;;  %v6230_v31 = vcombine.low %v586_v25, %v596_v28  ;;  %v600_v38 = vrot.slane %v598_v24, 4  ;;  %v603_v40 = vrot.slane %v601_v29, 5  ;;  %v6394_v24 = vld [vmem:[%s8805_s13 + $0x74] sm:$0x1] }
  0xc0   : > { %v8945_v14 = vcombine.low %v2461_v60, %v2471_v8  ;;  %v609_v41 = vrot.slane %v607_v30, 5  ;;  %v611_v42 = vshrl.u32 %v377_v12, 16  ;;  %v2485_v43 = vsel %vm8825_vm2, %v2480_v33, %v2484_v18 }
  0xc1   : > { %7288 = vmatprep.mubr.bf16.mxu1 %v6230_v31  ;;  %v2490_v44 = vrot.slane %v2489_v34, 4  ;;  %v617_v45 = vshll.u32 %v417_v19, 16  ;;  %v2497_v47 = vshrl.u32 %v6389_v20, 16  ;;  %v604_v48 = vor.u32 %v603_v40, %v600_v38  ;;  %v8970_v19 = vld [vmem:[%s8805_s13 + $0x70] sm:$0xf] }
  0xc2   : > { %10788 = vst [vmem:[#allocation24_spill] sm:$0xff] %v8945_v14  ;;  %7477 = vmatmul.mubr.bf16.gmra.mrb[8].mxu0 %v8945_v14  ;;  %v613_v49 = vrot.slane %v611_v42, 4  ;;  %v2500_v50 = vshll.u32 %v6389_v20, 16  ;;  %v2506_v52 = vshll.u32 %v6390_v13, 16  ;;  %v2510_v59 = vshrl.u32 %v6390_v13, 16 }
  0xc3   : > { %v2495_v54 = vsel %vm8825_vm2, %v2490_v44, %v2494_v36  ;;  %v619_v56 = vrot.slane %v617_v45, 5  ;;  %v2499_v57 = vrot.slane %v2497_v47, 4  ;;  %v605_v60 = vrot.slane %v604_v48, 4  ;;  %v380_v42 = vld [vmem:[%s8805_s13 + $0x6c] sm:$0xf] }
  0xc4   : > { %v8961_v58 = vcombine.low %v2485_v43, %v2495_v54  ;;  %v614_v61 = vor.u32 %v613_v49, %v609_v41  ;;  %v2502_v62 = vrot.slane %v2500_v50, 5  ;;  %v2508_v0 = vrot.slane %v2506_v52, 5  ;;  %v381_v47 = vld [vmem:[%s8805_s13 + $0x70] sm:$0xf]  ;;  %v6460_v14 = vld [vmem:[%s8805_s13 + $0x9c] sm:$0xe] }
  0xc5   : > { %v2512_v1 = vrot.slane %v2510_v59, 4  ;;  %v2516_v2 = vshll.u32 %v6391_v46, 16  ;;  %v622_v4 = vshrl.u32 %v378_v53, 16  ;;  %v610_v5 = vsel %vm8825_vm2, %v605_v60, %v609_v41 }
  0xc6   : > { %10789 = vst [vmem:[#allocation25_spill] sm:$0xff] %v8961_v58  ;;  %7480 = vmatprep.mubr.bf16.mxu0 %v8961_v58  ;;  %v615_v7 = vrot.slane %v614_v61, 4  ;;  %v2503_v8 = vor.u32 %v2502_v62, %v2499_v57  ;;  %v625_v10 = vshll.u32 %v378_v53, 16  ;;  %v631_v18 = vshll.u32 %v379_v63, 16  ;;  %v6459_v58 = vld [vmem:[%s8805_s13 + $0x90] sm:$0xe] }
  0xc7   : > { %v2513_v12 = vor.u32 %v2512_v1, %v2508_v0  ;;  %v2518_v16 = vrot.slane %v2516_v2, 5  ;;  %v624_v17 = vrot.slane %v622_v4, 4  ;;  %v635_v23 = vshrl.u32 %v379_v63, 16 }
  0xc8   : > { %v620_v20 = vsel %vm8825_vm2, %v615_v7, %v619_v56  ;;  %v2504_v21 = vrot.slane %v2503_v8, 4  ;;  %v627_v22 = vrot.slane %v625_v10, 5  ;;  %v633_v29 = vrot.slane %v631_v18, 5  ;;  %v419_v56 = vld [vmem:[%s8805_s13 + $0x74] sm:$0x1] }
  0xc9   : > { %v6231_v25 = vcombine.low %v610_v5, %v620_v20  ;;  %v2514_v28 = vrot.slane %v2513_v12, 4  ;;  %v641_v30 = vshll.u32 %v418_v9, 16  ;;  %v637_v34 = vrot.slane %v635_v23, 4  ;;  %v6396_v7 = vld [vmem:[%s8805_s13 + $0x7c] sm:$0xf] }
  0xca   : > { %v2509_v31 = vsel %vm8825_vm2, %v2504_v21, %v2508_v0  ;;  %v628_v33 = vor.u32 %v627_v22, %v624_v17  ;;  %v2521_v36 = vshrl.u32 %v6392_v11, 16  ;;  %v2524_v40 = vshll.u32 %v6392_v11, 16  ;;  %v6395_v0 = vld [vmem:[%s8805_s13 + $0x78] sm:$0xf]  ;;  %v6397_v18 = vld [vmem:[%s8805_s13 + $0x80] sm:$0x1] }
  0xcb   : > { %7289 = vmatmul.mubr.bf16.gmra.mrb[12].mxu1 %v6231_v25  ;;  %v2519_v13 = vsel %vm8825_vm2, %v2514_v28, %v2518_v16  ;;  %v643_v38 = vrot.slane %v641_v30, 5  ;;  %v2530_v41 = vshll.u32 %v8970_v19, 16  ;;  %v638_v45 = vor.u32 %v637_v34, %v633_v29  ;;  %v382_v25 = vld [vmem:[%s8805_s13 + $0x78] sm:$0xf] }
  0xcc   : > { %v8981_v43 = vcombine.low %v2509_v31, %v2519_v13  ;;  %v629_v44 = vrot.slane %v628_v33, 4  ;;  %v2523_v46 = vrot.slane %v2521_v36, 4  ;;  %v2526_v48 = vrot.slane %v2524_v40, 5  ;;  %v383_v33 = vld [vmem:[%s8805_s13 + $0x7c] sm:$0xf] }
  0xcd   : > { %v2532_v49 = vrot.slane %v2530_v41, 5  ;;  %v2534_v50 = vshrl.u32 %v8970_v19, 16  ;;  %v2540_v52 = vshll.u32 %v6394_v24, 16  ;;  %v639_v54 = vrot.slane %v638_v45, 4  ;;  %v420_v40 = vld [vmem:[%s8805_s13 + $0x80] sm:$0x1] }
  0xce   : > { %10790 = vst [vmem:[#allocation26_spill] sm:$0xff] %v8981_v43  ;;  %7481 = vmatmul.mubr.bf16.gmra.mrb[12].mxu0 %v8981_v43  ;;  %v634_v53 = vsel %vm8825_vm2, %v629_v44, %v633_v29  ;;  %v646_v57 = vshrl.u32 %v380_v42, 16  ;;  %v649_v59 = vshll.u32 %v380_v42, 16  ;;  %v2527_v60 = vor.u32 %v2526_v48, %v2523_v46  ;;  %v9283_v43 = vld [vmem:[%s8805_s13 + $0x4c] sm:$0xf] }
  0xcf   : > { %v2536_v61 = vrot.slane %v2534_v50, 4  ;;  %v2542_v62 = vrot.slane %v2540_v52, 5  ;;  %v655_v63 = vshll.u32 %v381_v47, 16  ;;  %v644_v1 = vsel %vm8825_vm2, %v639_v54, %v643_v38 }
  0xd0   : > { %v648_v2 = vrot.slane %v646_v57, 4  ;;  %v651_v4 = vrot.slane %v649_v59, 5  ;;  %v659_v5 = vshrl.u32 %v381_v47, 16  ;;  %v6232_v8 = vcombine.low %v634_v53, %v644_v1 }
  0xd1   : > { %v2528_v9 = vrot.slane %v2527_v60, 4  ;;  %v2537_v10 = vor.u32 %v2536_v61, %v2532_v49  ;;  %v657_v11 = vrot.slane %v655_v63, 5  ;;  %v665_v17 = vshll.u32 %v419_v56, 16  ;;  %v6398_v56 = vld [vmem:[%s8805_s13 + $0x84] sm:$0xf] }
  0xd2   : > { %v652_v12 = vor.u32 %v651_v4, %v648_v2  ;;  %v661_v16 = vrot.slane %v659_v5, 4  ;;  %v2545_v20 = vshrl.u32 %v6395_v0, 16  ;;  %7292 = vmatprep.mubr.bf16.mxu1 %v6232_v8  ;;  %v2548_v23 = vshll.u32 %v6395_v0, 16 }
  0xd3   : > { %v2533_v21 = vsel %vm8825_vm2, %v2528_v9, %v2532_v49  ;;  %v2538_v22 = vrot.slane %v2537_v10, 4  ;;  %v2554_v24 = vshll.u32 %v6396_v7, 16  ;;  %v667_v30 = vrot.slane %v665_v17, 5  ;;  %v384_v17 = vld [vmem:[%s8805_s13 + $0x84] sm:$0xf] }
  0xd4   : > { %v653_v28 = vrot.slane %v652_v12, 4  ;;  %v662_v29 = vor.u32 %v661_v16, %v657_v11  ;;  %v2547_v31 = vrot.slane %v2545_v20, 4  ;;  %v2550_v36 = vrot.slane %v2548_v23, 5  ;;  %v9015_v12 = vld [vmem:[%s8805_s13 + $0x8c] sm:$0x1] }
  0xd5   : > { %v2543_v34 = vsel %vm8825_vm2, %v2538_v22, %v2542_v62  ;;  %v2556_v13 = vrot.slane %v2554_v24, 5  ;;  %v2558_v38 = vshrl.u32 %v6396_v7, 16  ;;  %v2564_v45 = vshll.u32 %v6397_v18, 16  ;;  %v9010_v62 = vld [vmem:[%s8805_s13 + $0x88] sm:$0xf] }
  0xd6   : > { %v9001_v41 = vcombine.low %v2533_v21, %v2543_v34  ;;  %v658_v42 = vsel %vm8825_vm2, %v653_v28, %v657_v11  ;;  %v663_v44 = vrot.slane %v662_v29, 4  ;;  %v2551_v46 = vor.u32 %v2550_v36, %v2547_v31  ;;  %v385_v23 = vld [vmem:[%s8805_s13 + $0x88] sm:$0xf]  ;;  %v421_v34 = vld [vmem:[%s8805_s13 + $0x8c] sm:$0x1] }
  0xd7   : > { %v2560_v47 = vrot.slane %v2558_v38, 4  ;;  %v670_v48 = vshrl.u32 %v382_v25, 16  ;;  %v673_v49 = vshll.u32 %v382_v25, 16  ;;  %v2566_v52 = vrot.slane %v2564_v45, 5  ;;  %v9034_v45 = vld [vmem:[%s8805_s13 + $0x94] sm:$0xf] }
  0xd8   : > { %10791 = vst [vmem:[#allocation27_spill] sm:$0xff] %v9001_v41  ;;  %7484 = vmatprep.mubr.bf16.mxu0 %v9001_v41  ;;  %v668_v50 = vsel %vm8825_vm2, %v663_v44, %v667_v30  ;;  %v679_v53 = vshll.u32 %v383_v33, 16  ;;  %v683_v54 = vshrl.u32 %v383_v33, 16  ;;  %v2552_v59 = vrot.slane %v2551_v46, 4  ;;  %v6401_v44 = vld [vmem:[%s8805_s13 + $0x90] sm:$0xf] }
  0xd9   : > { %v6233_v57 = vcombine.low %v658_v42, %v668_v50  ;;  %v2561_v60 = vor.u32 %v2560_v47, %v2556_v13  ;;  %v672_v61 = vrot.slane %v670_v48, 4  ;;  %v675_v63 = vrot.slane %v673_v49, 5  ;;  %v9275_v41 = vld [vmem:[%s8805_s13 + $0x40] sm:$0xf] }
  0xda   : > { %v681_v0 = vrot.slane %v679_v53, 5  ;;  %v685_v1 = vrot.slane %v683_v54, 4  ;;  %v689_v2 = vshll.u32 %v420_v40, 16  ;;  %v2557_v4 = vsel %vm8825_vm2, %v2552_v59, %v2556_v13 }
  0xdb   : > { %7293 = vmatmul.mubr.bf16.gmra.mrb[16].mxu1 %v6233_v57  ;;  %v2562_v5 = vrot.slane %v2561_v60, 4  ;;  %v2569_v7 = vshrl.u32 %v6398_v56, 16  ;;  %v2572_v8 = vshll.u32 %v6398_v56, 16  ;;  %v676_v9 = vor.u32 %v675_v63, %v672_v61  ;;  %v9037_v56 = vld [vmem:[%s8805_s13 + $0x98] sm:$0x1] }
  0xdc   : > { %v686_v10 = vor.u32 %v685_v1, %v681_v0  ;;  %v691_v11 = vrot.slane %v689_v2, 5  ;;  %v2578_v16 = vshll.u32 %v9010_v62, 16  ;;  %v2582_v22 = vshrl.u32 %v9010_v62, 16 }
  0xdd   : > { %v2567_v18 = vsel %vm8825_vm2, %v2562_v5, %v2566_v52  ;;  %v2571_v20 = vrot.slane %v2569_v7, 4  ;;  %v2574_v21 = vrot.slane %v2572_v8, 5  ;;  %v677_v25 = vrot.slane %v676_v9, 4 }
  0xde   : > { %v9023_v24 = vcombine.low %v2557_v4, %v2567_v18  ;;  %v687_v28 = vrot.slane %v686_v10, 4  ;;  %v2580_v29 = vrot.slane %v2578_v16, 5  ;;  %v2584_v31 = vrot.slane %v2582_v22, 4  ;;  %v9043_v4 = vld [vmem:[%s8805_s13 + $0x90] sm:$0xf] }
  0xdf   : > { %v2575_v30 = vor.u32 %v2574_v21, %v2571_v20  ;;  %v2588_v33 = vshll.u32 %v9015_v12, 16  ;;  %v694_v36 = vshrl.u32 %v384_v17, 16  ;;  %v682_v13 = vsel %vm8825_vm2, %v677_v25, %v681_v0  ;;  %v9049_v10 = vld [vmem:[%s8805_s13 + $0x94] sm:$0xf]  ;;  %v422_v20 = vld [vmem:[%s8805_s13 + $0x98] sm:$0x1] }
  0xe0   : > { %10792 = vst [vmem:[#allocation28_spill] sm:$0xff] %v9023_v24  ;;  %7485 = vmatmul.mubr.bf16.gmra.mrb[16].mxu0 %v9023_v24  ;;  %v692_v38 = vsel %vm8825_vm2, %v687_v28, %v691_v11  ;;  %v697_v40 = vshll.u32 %v384_v17, 16  ;;  %v703_v42 = vshll.u32 %v385_v23, 16  ;;  %v2585_v48 = vor.u32 %v2584_v31, %v2580_v29 }
  0xe1   : > { %v6234_v46 = vcombine.low %v682_v13, %v692_v38  ;;  %v2576_v47 = vrot.slane %v2575_v30, 4  ;;  %v2590_v49 = vrot.slane %v2588_v33, 5  ;;  %v696_v50 = vrot.slane %v694_v36, 4  ;;  %v6404_v33 = vld [vmem:[%s8805_s13 + $0x9c] sm:$0xf] }
  0xe2   : > { %v699_v52 = vrot.slane %v697_v40, 5  ;;  %v705_v53 = vrot.slane %v703_v42, 5  ;;  %v707_v54 = vshrl.u32 %v385_v23, 16  ;;  %v2586_v59 = vrot.slane %v2585_v48, 4  ;;  %v9063_v40 = vld [vmem:[%s8805_s13 + $0xa0] sm:$0xf] }
  0xe3   : > { %7296 = vmatprep.mubr.bf16.mxu1 %v6234_v46  ;;  %v2581_v57 = vsel %vm8825_vm2, %v2576_v47, %v2580_v29  ;;  %v713_v60 = vshll.u32 %v421_v34, 16  ;;  %v2593_v61 = vshrl.u32 %v6401_v44, 16  ;;  %v2596_v1 = vshll.u32 %v6401_v44, 16  ;;  %v9069_v48 = vld [vmem:[%s8805_s13 + $0xa4] sm:$0x1] }
  0xe4   : > { %v700_v63 = vor.u32 %v699_v52, %v696_v50  ;;  %v709_v0 = vrot.slane %v707_v54, 4  ;;  %v2602_v2 = vshll.u32 %v9034_v45, 16  ;;  %v2591_v5 = vsel %vm8825_vm2, %v2586_v59, %v2590_v49 }
  0xe5   : > { %v715_v7 = vrot.slane %v713_v60, 5  ;;  %v2595_v8 = vrot.slane %v2593_v61, 4  ;;  %v2606_v9 = vshrl.u32 %v9034_v45, 16  ;;  %v9051_v11 = vcombine.low %v2581_v57, %v2591_v5 }
  0xe6   : > { %v701_v16 = vrot.slane %v700_v63, 4  ;;  %v710_v17 = vor.u32 %v709_v0, %v705_v53  ;;  %v2598_v18 = vrot.slane %v2596_v1, 5  ;;  %v2604_v21 = vrot.slane %v2602_v2, 5  ;;  %v9077_v2 = vld [vmem:[%s8805_s13 + $0x9c] sm:$0xf] }
  0xe7   : > { %10793 = vst [vmem:[#allocation29_spill] sm:$0xff] %v9051_v11  ;;  %v2608_v22 = vrot.slane %v2606_v9, 4  ;;  %v2612_v23 = vshll.u32 %v9037_v56, 16  ;;  %v718_v25 = vshrl.u32 %v9043_v4, 16  ;;  %7488 = vmatprep.mubr.bf16.mxu0 %v9051_v11  ;;  %v721_v31 = vshll.u32 %v9043_v4, 16 }
  0xe8   : > { %v706_v28 = vsel %vm8825_vm2, %v701_v16, %v705_v53  ;;  %v711_v29 = vrot.slane %v710_v17, 4  ;;  %v2599_v30 = vor.u32 %v2598_v18, %v2595_v8  ;;  %v727_v38 = vshll.u32 %v9049_v10, 16  ;;  %v9082_v16 = vld [vmem:[%s8805_s13 + $0xa0] sm:$0xf] }
  0xe9   : > { %v2609_v34 = vor.u32 %v2608_v22, %v2604_v21  ;;  %v2614_v36 = vrot.slane %v2612_v23, 5  ;;  %v720_v13 = vrot.slane %v718_v25, 4  ;;  %v723_v46 = vrot.slane %v721_v31, 5  ;;  %v423_v22 = vld [vmem:[%s8805_s13 + $0xa4] sm:$0x1] }
  0xea   : > { %v716_v42 = vsel %vm8825_vm2, %v711_v29, %v715_v7  ;;  %v2600_v44 = vrot.slane %v2599_v30, 4  ;;  %v731_v47 = vshrl.u32 %v9049_v10, 16  ;;  %v729_v52 = vrot.slane %v727_v38, 5  ;;  %v6407_v23 = vld [vmem:[%s8805_s13 + $0xa8] sm:$0xf] }
  0xeb   : > { %v6235_v49 = vcombine.low %v706_v28, %v716_v42  ;;  %v2610_v50 = vrot.slane %v2609_v34, 4  ;;  %v737_v53 = vshll.u32 %v422_v20, 16  ;;  %v724_v57 = vor.u32 %v723_v46, %v720_v13  ;;  %v9098_v46 = vld [vmem:[%s8805_s13 + $0xac] sm:$0xf]  ;;  %v9262_v11 = vld [vmem:[%s8805_s13 + $0x60] sm:$0xe] }
  0xec   : > { %v2605_v54 = vsel %vm8825_vm2, %v2600_v44, %v2604_v21  ;;  %v733_v59 = vrot.slane %v731_v47, 4  ;;  %v2617_v60 = vshrl.u32 %v6404_v33, 16  ;;  %v2620_v0 = vshll.u32 %v6404_v33, 16 }
  0xed   : > { %7297 = vmatmul.mubr.bf16.gmra.mrb[20].mxu1 %v6235_v49  ;;  %v2615_v61 = vsel %vm8825_vm2, %v2610_v50, %v2614_v36  ;;  %v739_v63 = vrot.slane %v737_v53, 5  ;;  %v2626_v1 = vshll.u32 %v9063_v40, 16  ;;  %v725_v7 = vrot.slane %v724_v57, 4  ;;  %v9101_v53 = vld [vmem:[%s8805_s13 + $0xb0] sm:$0x1] }
  0xee   : > { %v9079_v5 = vcombine.low %v2605_v54, %v2615_v61  ;;  %v734_v8 = vor.u32 %v733_v59, %v729_v52  ;;  %v2619_v9 = vrot.slane %v2617_v60, 4  ;;  %v2622_v17 = vrot.slane %v2620_v0, 5  ;;  %v9104_v61 = vld [vmem:[%s8805_s13 + $0xa8] sm:$0xf] }
  0xef   : > { %v2628_v18 = vrot.slane %v2626_v1, 5  ;;  %v2630_v20 = vshrl.u32 %v9063_v40, 16  ;;  %v2636_v21 = vshll.u32 %v9069_v48, 16  ;;  %v730_v25 = vsel %vm8825_vm2, %v725_v7, %v729_v52 }
  0xf0   : > { %10794 = vst [vmem:[#allocation30_spill] sm:$0xff] %v9079_v5  ;;  %7489 = vmatmul.mubr.bf16.gmra.mrb[20].mxu0 %v9079_v5  ;;  %v735_v28 = vrot.slane %v734_v8, 4  ;;  %v742_v29 = vshrl.u32 %v9077_v2, 16  ;;  %v745_v30 = vshll.u32 %v9077_v2, 16  ;;  %v2623_v31 = vor.u32 %v2622_v17, %v2619_v9  ;;  %v9110_v8 = vld [vmem:[%s8805_s13 + $0xac] sm:$0xf] }
  0xf1   : > { %v2632_v33 = vrot.slane %v2630_v20, 4  ;;  %v2638_v34 = vrot.slane %v2636_v21, 5  ;;  %v751_v36 = vshll.u32 %v9082_v16, 16  ;;  %v755_v44 = vshrl.u32 %v9082_v16, 16 }
  0xf2   : > { %v740_v13 = vsel %vm8825_vm2, %v735_v28, %v739_v63  ;;  %v744_v38 = vrot.slane %v742_v29, 4  ;;  %v747_v42 = vrot.slane %v745_v30, 5  ;;  %v2624_v49 = vrot.slane %v2623_v31, 4  ;;  %v424_v30 = vld [vmem:[%s8805_s13 + $0xb0] sm:$0x1] }
  0xf3   : > { %v6236_v47 = vcombine.low %v730_v25, %v740_v13  ;;  %v2633_v50 = vor.u32 %v2632_v33, %v2628_v18  ;;  %v753_v52 = vrot.slane %v751_v36, 5  ;;  %v757_v57 = vrot.slane %v755_v44, 4  ;;  %v6410_v36 = vld [vmem:[%s8805_s13 + $0xb4] sm:$0xf] }
  0xf4   : > { %v748_v54 = vor.u32 %v747_v42, %v744_v38  ;;  %v761_v59 = vshll.u32 %v423_v22, 16  ;;  %v2641_v60 = vshrl.u32 %v6407_v23, 16  ;;  %v2629_v63 = vsel %vm8825_vm2, %v2624_v49, %v2628_v18 }
  0xf5   : > { %7300 = vmatprep.mubr.bf16.mxu1 %v6236_v47  ;;  %v2634_v0 = vrot.slane %v2633_v50, 4  ;;  %v2644_v1 = vshll.u32 %v6407_v23, 16  ;;  %v2650_v7 = vshll.u32 %v9098_v46, 16  ;;  %v758_v17 = vor.u32 %v757_v57, %v753_v52 }
  0xf6   : > { %v749_v9 = vrot.slane %v748_v54, 4  ;;  %v763_v20 = vrot.slane %v761_v59, 5  ;;  %v2643_v21 = vrot.slane %v2641_v60, 4  ;;  %v2654_v29 = vshrl.u32 %v9098_v46, 16  ;;  %v9130_v60 = vld [vmem:[%s8805_s13 + $0xb8] sm:$0xf] }
  0xf7   : > { %v2639_v22 = vsel %vm8825_vm2, %v2634_v0, %v2638_v34  ;;  %v2646_v25 = vrot.slane %v2644_v1, 5  ;;  %v2652_v28 = vrot.slane %v2650_v7, 5  ;;  %v759_v31 = vrot.slane %v758_v17, 4  ;;  %v9136_v17 = vld [vmem:[%s8805_s13 + $0xb4] sm:$0xf] }
  0xf8   : > { %v9116_v18 = vcombine.low %v2629_v63, %v2639_v22  ;;  %v754_v23 = vsel %vm8825_vm2, %v749_v9, %v753_v52  ;;  %v2660_v33 = vshll.u32 %v9101_v53, 16  ;;  %v2656_v38 = vrot.slane %v2654_v29, 4  ;;  %v9133_v9 = vld [vmem:[%s8805_s13 + $0xbc] sm:$0x1]  ;;  %v9141_v29 = vld [vmem:[%s8805_s13 + $0xb8] sm:$0xf] }
  0xf9   : > { %v2647_v13 = vor.u32 %v2646_v25, %v2643_v21  ;;  %v766_v42 = vshrl.u32 %v9104_v61, 16  ;;  %v769_v34 = vshll.u32 %v9104_v61, 16  ;;  %v764_v44 = vsel %vm8825_vm2, %v759_v31, %v763_v20 }
  0xfa   : > { %10795 = vst [vmem:[#allocation31_spill] sm:$0xff] %v9116_v18  ;;  %7492 = vmatprep.mubr.bf16.mxu0 %v9116_v18  ;;  %v2662_v47 = vrot.slane %v2660_v33, 5  ;;  %v775_v49 = vshll.u32 %v9110_v8, 16  ;;  %v779_v50 = vshrl.u32 %v9110_v8, 16  ;;  %v6237_v52 = vcombine.low %v754_v23, %v764_v44  ;;  %v8248_v18 = vld [vmem:[%s8805_s13 + $0x30] sm:$0xf] }
  0xfb   : > { %v2648_v54 = vrot.slane %v2647_v13, 4  ;;  %v2657_v57 = vor.u32 %v2656_v38, %v2652_v28  ;;  %v768_v59 = vrot.slane %v766_v42, 4  ;;  %v771_v63 = vrot.slane %v769_v34, 5 }
  0xfc   : > { %v777_v0 = vrot.slane %v775_v49, 5  ;;  %v781_v1 = vrot.slane %v779_v50, 4  ;;  %v785_v7 = vshll.u32 %v424_v30, 16  ;;  %7301 = vmatmul.mubr.bf16.gmra.mrb[24].mxu1 %v6237_v52  ;;  %v2665_v22 = vshrl.u32 %v6410_v36, 16  ;;  %v425_v50 = vld [vmem:[%s8805_s13 + $0xbc] sm:$0x1] }
  0xfd   : > { %v2653_v20 = vsel %vm8825_vm2, %v2648_v54, %v2652_v28  ;;  %v2658_v21 = vrot.slane %v2657_v57, 4  ;;  %v2668_v25 = vshll.u32 %v6410_v36, 16  ;;  %v772_v23 = vor.u32 %v771_v63, %v768_v59  ;;  %v6413_v52 = vld [vmem:[%s8805_s13 + $0xc0] sm:$0xf] }
  0xfe   : > { %v782_v31 = vor.u32 %v781_v1, %v777_v0  ;;  %v787_v33 = vrot.slane %v785_v7, 5  ;;  %v2674_v30 = vshll.u32 %v9130_v60, 16  ;;  %v2667_v38 = vrot.slane %v2665_v22, 4  ;;  %v9154_v1 = vld [vmem:[%s8805_s13 + $0xc4] sm:$0xf] }
  0xff   : > { %v2663_v13 = vsel %vm8825_vm2, %v2658_v21, %v2662_v47  ;;  %v2670_v42 = vrot.slane %v2668_v25, 5  ;;  %v2678_v28 = vshrl.u32 %v9130_v60, 16  ;;  %v773_v44 = vrot.slane %v772_v23, 4 }
 0x100   : > { %v9147_v34 = vcombine.low %v2653_v20, %v2663_v13  ;;  %v783_v49 = vrot.slane %v782_v31, 4  ;;  %v2676_v36 = vrot.slane %v2674_v30, 5  ;;  %v2684_v59 = vshll.u32 %v9133_v9, 16 }
 0x101   : > { %v2671_v54 = vor.u32 %v2670_v42, %v2667_v38  ;;  %v2680_v57 = vrot.slane %v2678_v28, 4  ;;  %v790_v63 = vshrl.u32 %v9136_v17, 16  ;;  %v778_v47 = vsel %vm8825_vm2, %v773_v44, %v777_v0  ;;  %v9167_v44 = vld [vmem:[%s8805_s13 + $0xc8] sm:$0x1] }
 0x102   : > { %10796 = vst [vmem:[#allocation32_spill] sm:$0xff] %v9147_v34  ;;  %7493 = vmatmul.mubr.bf16.gmra.mrb[24].mxu0 %v9147_v34  ;;  %v788_v7 = vsel %vm8825_vm2, %v783_v49, %v787_v33  ;;  %v793_v20 = vshll.u32 %v9136_v17, 16  ;;  %v799_v21 = vshll.u32 %v9141_v29, 16  ;;  %v2686_v31 = vrot.slane %v2684_v59, 5  ;;  %v8232_v34 = vld [vmem:[%s8805_s13 + $0x14] sm:$0x1] }
 0x103   : > { %v6238_v22 = vcombine.low %v778_v47, %v788_v7  ;;  %v2672_v25 = vrot.slane %v2671_v54, 4  ;;  %v2681_v23 = vor.u32 %v2680_v57, %v2676_v36  ;;  %v792_v30 = vrot.slane %v790_v63, 4  ;;  %v6448_v63 = vld [vmem:[%s8805_s13 + $0xc] sm:$0xe] }
 0x104   : > { %v795_v13 = vrot.slane %v793_v20, 5  ;;  %v801_v38 = vrot.slane %v799_v21, 5  ;;  %v803_v42 = vshrl.u32 %v9141_v29, 16  ;;  %v809_v33 = vshll.u32 %v425_v50, 16 }
 0x105   : > { %7304 = vmatprep.mubr.bf16.mxu1 %v6238_v22  ;;  %v2677_v0 = vsel %vm8825_vm2, %v2672_v25, %v2676_v36  ;;  %v2682_v28 = vrot.slane %v2681_v23, 4  ;;  %v2689_v49 = vshrl.u32 %v6413_v52, 16  ;;  %v2692_v57 = vshll.u32 %v6413_v52, 16 }
 0x106   : > { %v796_v26 = vor.u32 %v795_v13, %v792_v30  ;;  %v805_v54 = vrot.slane %v803_v42, 4  ;;  %v2698_v59 = vshll.u32 %v9154_v1, 16  ;;  %v811_v7 = vrot.slane %v809_v33, 5  ;;  %v8229_v13 = vld [vmem:[%s8805_s13] sm:$0xf] }
 0x107   : > { %v2687_v47 = vsel %vm8825_vm2, %v2682_v28, %v2686_v31  ;;  %v2691_v20 = vrot.slane %v2689_v49, 4  ;;  %v2702_v36 = vshrl.u32 %v9154_v1, 16  ;;  %v2694_v25 = vrot.slane %v2692_v57, 5  ;;  %v9179_v42 = vld [vmem:[%s8805_s13 + $0x4] sm:$0xf] }
 0x108   : > { %v9174_v50 = vcombine.low %v2677_v0, %v2687_v47  ;;  %v797_v21 = vrot.slane %v796_v26, 4  ;;  %v806_v22 = vor.u32 %v805_v54, %v801_v38  ;;  %v2700_v23 = vrot.slane %v2698_v59, 5  ;;  %v6449_v28 = vld [vmem:[%s8805_s13 + $0x18] sm:$0xe]  ;;  %v6450_v59 = vld [vmem:[%s8805_s13 + $0x24] sm:$0xe] }
 0x109   : > { %v2704_v30 = vrot.slane %v2702_v36, 4  ;;  %v2708_v52 = vshll.u32 %v9167_v44, 16  ;;  %v6248_v31 = vcombine.low %v8229_v13, %v9179_v42  ;;  %v2695_v33 = vor.u32 %v2694_v25, %v2691_v20 }
 0x10a   : > { %10797 = vst [vmem:[#allocation33_spill] sm:$0xff] %v9174_v50  ;;  %7496 = vmatprep.mubr.bf16.mxu0 %v9174_v50  ;;  %v802_v26 = vsel %vm8825_vm2, %v797_v21, %v801_v38  ;;  %v807_v0 = vrot.slane %v806_v22, 4  ;;  %v6464_v57 = vrot.slane %v6448_v63, 9  ;;  %v3325_v50 = vrot.slane %v8231_v27, 5 }
 0x10b   : > { %v2705_v49 = vor.u32 %v2704_v30, %v2700_v23  ;;  %v2710_v54 = vrot.slane %v2708_v52, 5  ;;  %v2696_v36 = vrot.slane %v2695_v33, 4  ;;  %v3328_v38 = vrot.slane %v8232_v34, 5  ;;  %v8234_v33 = vld [vmem:[%s8805_s13 + $0x2c] sm:$0x1] }
 0x10c   : > { %v812_v47 = vsel %vm8825_vm2, %v807_v0, %v811_v7  ;;  %v6465_v22 = vrot.slane %v6449_v28, 9  ;;  %v3326_v7 = vsel %vm9189_vm5, %v6464_v57, %v3325_v50  ;;  %v3327_v25 = vrot.slane %v3325_v50, 4  ;;  %v6451_v57 = vld [vmem:[%s8805_s13 + $0x30] sm:$0xe] }
 0x10d   : > { %v6239_v20 = vcombine.low %v802_v26, %v812_v47  ;;  %v2706_v21 = vrot.slane %v2705_v49, 4  ;;  %v2701_v63 = vsel %vm8825_vm2, %v2696_v36, %v2700_v23  ;;  %v10800_v30 = vrot.slane %v8841_v6, 5  ;;  %v8233_v26 = vld [vmem:[%s8805_s13 + $0x28] sm:$0xf]  ;;  %v8237_v36 = vld [vmem:[%s8805_s13 + $0x34] sm:$0xf] }
 0x10e   : > { %v10801_v52 = vrot.slane %v8832_v55, 5  ;;  %v6466_v28 = vrot.slane %v6450_v59, 9  ;;  %v3329_v6 = vsel %vm9189_vm5, %v3327_v25, %v3328_v38  ;;  %v3339_v0 = vrot.slane %v8233_v26, 5  ;;  %v9220_v59 = vld [vmem:[%s8805_s13 + $0x10] sm:$0xf] }
 0x10f   : > { %v3336_v27 = vsel %vm9189_vm5, %v8866_v37, %v10800_v30  ;;  %7305 = vmatmul.mubr.bf16.gmra.mrb[28].mxu1 %v6239_v20  ;;  %v2711_v34 = vsel %vm8825_vm2, %v2706_v21, %v2710_v54  ;;  %v6480_v55 = vcombine.low %v3326_v7, %v3329_v6  ;;  %v3342_v49 = vrot.slane %v8234_v33, 5  ;;  %v6452_v20 = vld [vmem:[%s8805_s13 + $0x3c] sm:$0xe]  ;;  %v8238_v21 = vld [vmem:[%s8805_s13 + $0x40] sm:$0xf] }
 0x110   : > { %v3333_v23 = vsel %vm9189_vm5, %v6465_v22, %v10801_v52  ;;  %v9210_v50 = vcombine.low %v2701_v63, %v2711_v34  ;;  %7324 = vmatprep.mubr.bf16.mxu1 %v6248_v31  ;;  %v3341_v54 = vrot.slane %v3339_v0, 4  ;;  %v8235_v31 = vld [vmem:[%s8805_s13 + $0xc] sm:$0xf]  ;;  %v3346_v38 = vrot.slane %v8237_v36, 5  ;;  %v8239_v63 = vld [vmem:[%s8805_s13 + $0x18] sm:$0xf] }
 0x111   : > { %v6481_v37 = vcombine.low %v3333_v23, %v3336_v27  ;;  %v6249_v47 = vcombine.low %v8235_v31, %v9220_v59  ;;  %v3353_v22 = vrot.slane %v8238_v21, 5  ;;  %v9228_v7 = vld [vmem:[%s8805_s13 + $0x1c] sm:$0xf]  ;;  %v3340_v30 = vsel %vm9189_vm5, %v6466_v28, %v3339_v0  ;;  %v9236_v23 = vld [vmem:[%s8805_s13 + $0x48] sm:$0xe] }
 0x112   : > { %10802 = vst [vmem:[#allocation34_spill] sm:$0xff] %v9210_v50  ;;  %7497 = vmatmul.mubr.bf16.gmra.mrb[28].mxu0 %v9210_v50  ;;  %v6250_v25 = vcombine.low %v8239_v63, %v9228_v7  ;;  %v3343_v27 = vsel %vm9189_vm5, %v3341_v54, %v3342_v49  ;;  %v6467_v34 = vrot.slane %v6451_v57, 9  ;;  %v8140_v52 = vld [vmem:[#allocation5 + $0x88] sm:$0xff]   ;;  %v6454_v33 = vld [vmem:[%s8805_s13 + $0x54] sm:$0xe]  ;;  %v3348_v36 = vrot.slane %v3346_v38, 4 }
 0x113   : > { %7564 = vmatprep.mubr.bf16.mxu0 %v6480_v55  ;;  %v8241_v6 = vld [vmem:[%s8805_s13 + $0x38] sm:$0x1]  ;;  %v6468_v55 = vrot.slane %v6452_v20, 9  ;;  %v6482_v31 = vcombine.low %v3340_v30, %v3343_v27  ;;  %v3355_v28 = vrot.slane %v3353_v22, 4  ;;  %v8242_v0 = vld [vmem:[%s8805_s13 + $0x44] sm:$0x1] }
 0x114   : > { %v3349_v26 = vrot.slane %v8241_v6, 5  ;;  %v8139_v21 = vld [vmem:[#allocation5 + $0x188] sm:$0xff]   ;;  %v3356_v49 = vrot.slane %v8242_v0, 5  ;;  %v8243_v54 = vld [vmem:[#allocation5 + $0x80] sm:$0xff]   ;;  %v8244_v57 = vld [vmem:[%s8805_s13 + $0x4c] sm:$0xf]  ;;  %v3347_v0 = vsel %vm9189_vm5, %v6467_v34, %v3346_v38 }
 0x115   : > { %v3360_v63 = vrot.slane %v8244_v57, 5  ;;  %v8245_v50 = vld [vmem:[%s8805_s13 + $0x58] sm:$0xf]  ;;  %v8246_v20 = vld [vmem:[%s8805_s13 + $0x24] sm:$0xf]  ;;  %v6470_v5 = vrot.slane %v6454_v33, 9 }
 0x116   : > { %v3367_v6 = vrot.slane %v8245_v50, 5  ;;  %v9245_v30 = vld [vmem:[%s8805_s13 + $0x28] sm:$0xf]  ;;  %v6469_v50 = vrot.slane %v9236_v23, 9  ;;  %v8250_v57 = vld [vmem:[#allocation5 + $0x180] sm:$0xff]   ;;  %v6476_v32 = vrot.slane %v6460_v14, 9 }
 0x117   : > { %7325 = vmatmul.mubr.bf16.vlgmr.msra.gmra.mrb[0].mxu1 %v6249_v47  ;;  %v8144_v47 = vld [vmem:[#allocation5 + $0x90] sm:$0xff]   ;;  %v6251_v27 = vcombine.low %v8246_v20, %v9245_v30  ;;  %v3354_v20 = vsel %vm9189_vm5, %v6468_v55, %v3353_v22  ;;  %v8251_v38 = vld [vmem:[%s8805_s13 + $0x50] sm:$0x1]  ;;  %v3362_v23 = vrot.slane %v3360_v63, 4  ;;  %v3409_v35 = vrot.slane %v9063_v40, 5 }
 0x118   : > { %7357 = vmatpush3.bf16.msra.mxu1 %v8243_v54  ;;  %7328 = vmatprep.mubr.bf16.mxu1 %v6250_v25  ;;  %v9252_v54 = vld [vmem:[%s8805_s13 + $0x34] sm:$0xf]  ;;  %v3363_v34 = vrot.slane %v8251_v38, 5  ;;  %v9268_v55 = vld [vmem:[%s8805_s13 + $0x6c] sm:$0xe] }
 0x119   : > { %7358 = vmatprep.subr.bf16.mxu1 %v8140_v52  ;;  %v6252_v25 = vcombine.low %v8248_v18, %v9252_v54  ;;  %v3357_v18 = vsel %vm9189_vm5, %v3355_v28, %v3356_v49  ;;  %v8253_v33 = vld [vmem:[%s8805_s13 + $0x64] sm:$0xf]  ;;  %v8148_v38 = vld [vmem:[#allocation5 + $0x98] sm:$0xff]   ;;  %v9350_v14 = vsel %vm9189_vm5, %v6476_v32, %v3409_v35  ;;  %v3411_v40 = vrot.slane %v3409_v35, 4 }
 0x11a   : > { %7565 = vmatmul.mubr.bf16.vlgmr.msra.gmra.mrb[0].mxu0 %v6481_v37  ;;  %v3350_v37 = vsel %vm9189_vm5, %v3348_v36, %v3349_v26  ;;  %v8143_v26 = vld [vmem:[#allocation5 + $0x190] sm:$0xff]   ;;  %v8252_v36 = vld [vmem:[%s8805_s13 + $0x5c] sm:$0x1] }
 0x11b   : > { %7597 = vmatpush3.bf16.msra.mxu0 %v8250_v57  ;;  %7568 = vmatprep.mubr.bf16.mxu0 %v6482_v31  ;;  %v3369_v31 = vrot.slane %v3367_v6, 4  ;;  %v3370_v22 = vrot.slane %v8252_v36, 5  ;;  %v3374_v57 = vrot.slane %v8253_v33, 5  ;;  %v6483_v24 = vcombine.low %v3347_v0, %v3350_v37  ;;  %v9280_v49 = vld [vmem:[%s8805_s13 + $0x48] sm:$0xf] }
 0x11c   : > { %7598 = vmatprep.subr.bf16.mxu0 %v8139_v21  ;;  %7359 = vmatpush3.bf16.msra.mxu1 %v8140_v52  ;;  %v9272_v52 = vld [vmem:[%s8805_s13 + $0x3c] sm:$0xf]  ;;  %v6484_v0 = vcombine.low %v3354_v20, %v3357_v18  ;;  %v9290_v37 = vsel %vm9189_vm5, %v6469_v50, %v3360_v63  ;;  %v9294_v33 = vsel %vm9189_vm5, %v6470_v5, %v3367_v6  ;;  %v6471_v63 = vrot.slane %v9262_v11, 9  ;;  %v9307_v5 = vld [vmem:[%s8805_s13 + $0x68] sm:$0x1] }
 0x11d   : > { %7360 = vmatprep.subr.bf16.mxu1 %v8144_v47  ;;  %v6253_v28 = vcombine.low %v9272_v52, %v9275_v41  ;;  %v8147_v52 = vld [vmem:[#allocation5 + $0x198] sm:$0xff]   ;;  %v9299_v36 = vsel %vm9189_vm5, %v3362_v23, %v3363_v34  ;;  %v3376_v50 = vrot.slane %v3374_v57, 4  ;;  %v6472_v20 = vrot.slane %v9268_v55, 9  ;;  %v9325_v6 = vld [vmem:[%s8805_s13 + $0x64] sm:$0xf] }
 0x11e   : > { %v3381_v34 = vrot.slane %v8970_v19, 5  ;;  %v6475_v18 = vrot.slane %v6459_v58, 9  ;;  %v9314_v23 = vld [vmem:[%s8805_s13 + $0x54] sm:$0xf]  ;;  %v3402_v19 = vrot.slane %v9034_v45, 5  ;;  %v3405_v58 = vrot.slane %v9037_v56, 5 }
 0x11f   : > { %7329 = vmatmul.mubr.bf16.gmra.mrb[4].mxu1 %v6251_v27  ;;  %7599 = vmatpush3.bf16.msra.mxu0 %v8139_v21  ;;  %v9303_v21 = vsel %vm9189_vm5, %v3369_v31, %v3370_v22  ;;  %v8152_v27 = vld [vmem:[#allocation5 + $0xa0] sm:$0xff]   ;;  %v9322_v22 = vld [vmem:[%s8805_s13 + $0x60] sm:$0xf]  ;;  %v6485_v55 = vcombine.low %v9290_v37, %v9299_v36 }
 0x120   : > { %7332 = vmatprep.mubr.bf16.mxu1 %v6252_v25  ;;  %7600 = vmatprep.subr.bf16.mxu0 %v8143_v26  ;;  %v6461_v25 = vld [vmem:[%s8805_s13 + $0xa8] sm:$0xe]  ;;  %v9317_v31 = vld [vmem:[%s8805_s13 + $0x58] sm:$0xf]  ;;  %v6486_v11 = vcombine.low %v9294_v33, %v9303_v21  ;;  %v9340_v45 = vsel %vm9189_vm5, %v6475_v18, %v3402_v19  ;;  %v3404_v56 = vrot.slane %v3402_v19, 4  ;;  %v3383_v36 = vrot.slane %v3381_v34, 4 }
 0x121   : > { %7361 = vmatpush3.bf16.msra.mxu1 %v8144_v47  ;;  %v3384_v47 = vrot.slane %v8263_v51, 5  ;;  %v6477_v51 = vrot.slane %v6461_v25, 9  ;;  %v8155_v33 = vld [vmem:[#allocation5 + $0x1a8] sm:$0xff]   ;;  %v3416_v21 = vrot.slane %v9098_v46, 5  ;;  %v10803_v25 = vcombine.low %v9280_v49, %v9283_v43 }
 0x122   : > { %7569 = vmatmul.mubr.bf16.gmra.mrb[4].mxu0 %v6483_v24  ;;  %7362 = vmatprep.subr.bf16.mxu1 %v8148_v38  ;;  %v6462_v24 = vld [vmem:[%s8805_s13 + $0xb4] sm:$0xe]  ;;  %v9354_v37 = vsel %vm9189_vm5, %v3404_v56, %v3405_v58  ;;  %v3382_v18 = vsel %vm9189_vm5, %v6472_v20, %v3381_v34  ;;  %v6479_v58 = vrot.slane %v6463_v15, 9  ;;  %v3433_v34 = vrot.slane %v9167_v44, 5 }
 0x123   : > { %7572 = vmatprep.mubr.bf16.mxu0 %v6484_v0  ;;  %7601 = vmatpush3.bf16.msra.mxu0 %v8143_v26  ;;  %v3412_v0 = vrot.slane %v9069_v48, 5  ;;  %v9346_v26 = vsel %vm9189_vm5, %v6471_v63, %v3374_v57  ;;  %v8156_v48 = vld [vmem:[#allocation5 + $0xa8] sm:$0xff]   ;;  %v3419_v57 = vrot.slane %v9101_v53, 5  ;;  %v6491_v32 = vcombine.low %v9340_v45, %v9354_v37  ;;  %v8273_v45 = vld [vmem:[%s8805_s13 + $0x14] sm:$0x1] }
 0x124   : > { %7602 = vmatprep.subr.bf16.mxu0 %v8147_v52  ;;  %v3423_v63 = vrot.slane %v9130_v60, 5  ;;  %v9372_v53 = vsel %vm9189_vm5, %v6477_v51, %v3416_v21  ;;  %v8160_v60 = vld [vmem:[#allocation5 + $0xb0] sm:$0xff]   ;;  %v3385_v15 = vsel %vm9189_vm5, %v3383_v36, %v3384_v47  ;;  %v8164_v47 = vld [vmem:[#allocation5 + $0xb8] sm:$0xff]   ;;  %v1471_v37 = vrot.slane %v8273_v45, 5  ;;  %v1418_v45 = vld [vmem:[%s8805_s13 + $0x78] sm:$0xe] }
 0x125   : > { %7363 = vmatpush3.bf16.msra.mxu1 %v8148_v38  ;;  %v9362_v35 = vsel %vm9189_vm5, %v3411_v40, %v3412_v0  ;;  %v6478_v38 = vrot.slane %v6462_v24, 9  ;;  %v10804_v24 = vrot.slane %v9307_v5, 5  ;;  %v6458_v0 = vld [vmem:[%s8805_s13 + $0x84] sm:$0xe] }
 0x126   : > { %7364 = vmatprep.subr.bf16.mxu1 %v8152_v27  ;;  %v6492_v46 = vcombine.low %v9350_v14, %v9362_v35  ;;  %v3425_v19 = vrot.slane %v3423_v63, 4  ;;  %v8159_v40 = vld [vmem:[#allocation5 + $0x1b0] sm:$0xff]   ;;  %v1475_v14 = vrot.slane %v9228_v7, 5  ;;  %v6263_v7 = vcombine.low %v9136_v17, %v9141_v29 }
 0x127   : > { %7333 = vmatmul.mubr.bf16.gmra.mrb[8].mxu1 %v6253_v28  ;;  %7603 = vmatpush3.bf16.msra.mxu0 %v8147_v52  ;;  %v3418_v28 = vrot.slane %v3416_v21, 4  ;;  %v3426_v52 = vrot.slane %v9133_v9, 5  ;;  %v9379_v49 = vsel %vm9189_vm5, %v6478_v38, %v3423_v63  ;;  %v3378_v56 = vsel %vm9189_vm5, %v3376_v50, %v10804_v24  ;;  %v6457_v9 = vld [vmem:[%s8805_s13 + $0x78] sm:$0xe]  ;;  %v9428_v24 = vld [vmem:[%s8805_s13 + $0x70] sm:$0xf] }
 0x128   : > { %7336 = vmatprep.mubr.bf16.mxu1 %v10803_v25  ;;  %7604 = vmatprep.subr.bf16.mxu0 %v8151_v3  ;;  %v6487_v36 = vcombine.low %v9346_v26, %v3378_v56  ;;  %v6473_v21 = vrot.slane %v6457_v9, 9  ;;  %v10805_v63 = vcombine.low %v9314_v23, %v9317_v31  ;;  %v6488_v25 = vcombine.low %v3382_v18, %v3385_v15  ;;  %v9424_v18 = vld [vmem:[#allocation5 + $0xc0] sm:$0xff]  }
 0x129   : > { %7365 = vmatpush3.bf16.msra.mxu1 %v8152_v27  ;;  %v9388_v20 = vsel %vm9189_vm5, %v3418_v28, %v3419_v57  ;;  %v3430_v27 = vrot.slane %v9154_v1, 5  ;;  %v9400_v51 = vsel %vm9189_vm5, %v3425_v19, %v3426_v52  ;;  %v3395_v1 = vrot.slane %v9010_v62, 5  ;;  %v8265_v57 = vld [vmem:[%s8805_s13 + $0x80] sm:$0x1]  ;;  %v8163_v52 = vld [vmem:[#allocation5 + $0x1b8] sm:$0xff]  }
 0x12a   : > { %7573 = vmatmul.mubr.bf16.gmra.mrb[8].mxu0 %v6485_v55  ;;  %7366 = vmatprep.subr.bf16.mxu1 %v8156_v48  ;;  %v8264_v55 = vld [vmem:[%s8805_s13 + $0x7c] sm:$0xf]  ;;  %v6493_v50 = vcombine.low %v9372_v53, %v9388_v20  ;;  %v6494_v44 = vcombine.low %v9379_v49, %v9400_v51  ;;  %v3391_v38 = vrot.slane %v8265_v57, 5  ;;  %v10806_v19 = vcombine.low %v9322_v22, %v9325_v6  ;;  %v8272_v57 = vld [vmem:[%s8805_s13 + $0x8] sm:$0x1] }
 0x12b   : > { %7576 = vmatprep.mubr.bf16.mxu0 %v6486_v11  ;;  %v3388_v5 = vrot.slane %v8264_v55, 5  ;;  %7605 = vmatpush3.bf16.msra.mxu0 %v8151_v3  ;;  %v9407_v11 = vsel %vm9189_vm5, %v6479_v58, %v3430_v27  ;;  %v3432_v3 = vrot.slane %v3430_v27, 4  ;;  %v3397_v58 = vrot.slane %v3395_v1, 4  ;;  %v9437_v27 = vld [vmem:[%s8805_s13 + $0x7c] sm:$0xf] }
 0x12c   : > { %7606 = vmatprep.subr.bf16.mxu0 %v8155_v33  ;;  %v3398_v23 = vrot.slane %v9015_v12, 5  ;;  %v8268_v12 = vld [vmem:[%s8805_s13 + $0x78] sm:$0xf]  ;;  %v1412_v20 = vld [vmem:[%s8805_s13 + $0x30] sm:$0xe]  ;;  %v1489_v51 = vrot.slane %v9252_v54, 5 }
 0x12d   : > { %7367 = vmatpush3.bf16.msra.mxu1 %v8156_v48  ;;  %v9413_v62 = vsel %vm9189_vm5, %v3432_v3, %v3433_v34  ;;  %v3390_v28 = vrot.slane %v3388_v5, 4  ;;  %v6474_v48 = vrot.slane %v6458_v0, 9  ;;  %v3389_v22 = vsel %vm9189_vm5, %v6473_v21, %v3388_v5  ;;  %v9444_v55 = vld [vmem:[#allocation5 + $0x1c0] sm:$0xff]   ;;  %v1408_v21 = vld [vmem:[%s8805_s13] sm:$0xe] }
 0x12e   : > { %7368 = vmatprep.subr.bf16.mxu1 %v8160_v60  ;;  %v6495_v26 = vcombine.low %v9407_v11, %v9413_v62  ;;  %v3399_v15 = vsel %vm9189_vm5, %v3397_v58, %v3398_v23  ;;  %v8275_v58 = vld [vmem:[%s8805_s13 + $0x2c] sm:$0x1]  ;;  %v1413_v49 = vld [vmem:[%s8805_s13 + $0x3c] sm:$0xe] }
 0x12f   : > { %7337 = vmatmul.mubr.bf16.gmra.mrb[12].mxu1 %v10805_v63  ;;  %7607 = vmatpush3.bf16.msra.mxu0 %v8155_v33  ;;  %v8266_v33 = vld [vmem:[%s8805_s13 + $0x6c] sm:$0xf]  ;;  %v3392_v9 = vsel %vm9189_vm5, %v3390_v28, %v3391_v38  ;;  %v3396_v34 = vsel %vm9189_vm5, %v6474_v48, %v3395_v1  ;;  %v9450_v1 = vld [vmem:[%s8805_s13 + $0x88] sm:$0xf]  ;;  %v1464_v38 = vrot.slane %v8272_v57, 5  ;;  %v6261_v63 = vcombine.low %v9077_v2, %v9082_v16 }
 0x130   : > { %7340 = vmatprep.mubr.bf16.mxu1 %v10806_v19  ;;  %7608 = vmatprep.subr.bf16.mxu0 %v8159_v40  ;;  %v6257_v56 = vcombine.low %v8266_v33, %v9428_v24  ;;  %v6489_v5 = vcombine.low %v3389_v22, %v3392_v9  ;;  %v6490_v0 = vcombine.low %v3396_v34, %v3399_v15  ;;  %v1468_v28 = vrot.slane %v9220_v59, 5  ;;  %v1410_v48 = vld [vmem:[%s8805_s13 + $0x18] sm:$0xe]  ;;  %v1411_v59 = vld [vmem:[%s8805_s13 + $0x24] sm:$0xe] }
 0x131   : > { %7369 = vmatpush3.bf16.msra.mxu1 %v8160_v60  ;;  %v6258_v60 = vcombine.low %v8268_v12, %v9437_v27  ;;  %v6274_v35 = vrot.slane %v1410_v48, 9  ;;  %v8274_v19 = vld [vmem:[%s8805_s13 + $0x20] sm:$0x1]  ;;  %v6275_v17 = vrot.slane %v1411_v59, 9  ;;  %v1485_v23 = vrot.slane %v8275_v58, 5 }
 0x132   : > { %7577 = vmatmul.mubr.bf16.gmra.mrb[12].mxu0 %v6487_v36  ;;  %7370 = vmatprep.subr.bf16.mxu1 %v8164_v47  ;;  %v1461_v36 = vrot.slane %v9179_v42, 5  ;;  %v6272_v42 = vrot.slane %v1408_v21, 9  ;;  %v1478_v53 = vrot.slane %v8274_v19, 5  ;;  %v9502_v22 = vld [vmem:[%s8805_s13 + $0x48] sm:$0xe]  ;;  %v1496_v34 = vrot.slane %v9275_v41, 5 }
 0x133   : > { %7580 = vmatprep.mubr.bf16.mxu0 %v6488_v25  ;;  %7609 = vmatpush3.bf16.msra.mxu0 %v8159_v40  ;;  %v8270_v40 = vld [vmem:[%s8805_s13 + $0x84] sm:$0xf]  ;;  %v1476_v33 = vsel %vm9189_vm5, %v6274_v35, %v1475_v14  ;;  %v9509_v15 = vld [vmem:[%s8805_s13 + $0x54] sm:$0xe]  ;;  %v6278_v57 = vrot.slane %v9502_v22, 9 }
 0x134   : > { %7610 = vmatprep.subr.bf16.mxu0 %v8163_v52  ;;  %v6259_v3 = vcombine.low %v8270_v40, %v9450_v1  ;;  %v1463_v25 = vrot.slane %v1461_v36, 4  ;;  %v1462_v2 = vsel %vm9189_vm5, %v6272_v42, %v1461_v36  ;;  %v1491_v36 = vrot.slane %v1489_v51, 4  ;;  %v8277_v21 = vld [vmem:[%s8805_s13 + $0x44] sm:$0x1]  ;;  %v1419_v48 = vld [vmem:[%s8805_s13 + $0x84] sm:$0xe] }
 0x135   : > { %7371 = vmatpush3.bf16.msra.mxu1 %v8164_v47  ;;  %v6260_v47 = vcombine.low %v9043_v4, %v9049_v10  ;;  %v1409_v4 = vld [vmem:[%s8805_s13 + $0xc] sm:$0xe]  ;;  %v6262_v10 = vcombine.low %v9104_v61, %v9110_v8  ;;  %v1470_v61 = vrot.slane %v1468_v28, 4  ;;  %v1482_v8 = vrot.slane %v9245_v30, 5  ;;  %v8280_v59 = vld [vmem:[%s8805_s13 + $0x68] sm:$0x1] }
 0x136   : > { %7404 = vmatprep.subr.bf16.mxu1 %v9424_v18  ;;  %v1465_v16 = vsel %vm9189_vm5, %v1463_v25, %v1464_v38  ;;  %v1499_v41 = vrot.slane %v8277_v21, 5  ;;  %v1510_v38 = vrot.slane %v9317_v31, 5  ;;  %v8172_v31 = vld [vmem:[#allocation5 + $0xc8] sm:$0xff]   ;;  %v1498_v62 = vrot.slane %v1496_v34, 4  ;;  %v8284_v21 = vld [vmem:[%s8805_s13 + $0x94] sm:$0xf] }
 0x137   : > { %7341 = vmatmul.mubr.bf16.gmra.mrb[16].mxu1 %v6257_v56  ;;  %7611 = vmatpush3.bf16.msra.mxu0 %v8163_v52  ;;  %v1477_v52 = vrot.slane %v1475_v14, 4  ;;  %v1484_v29 = vrot.slane %v1482_v8, 4  ;;  %v6276_v56 = vrot.slane %v1412_v20, 9  ;;  %v9513_v54 = vsel %vm9189_vm5, %v6275_v17, %v1482_v8  ;;  %v8171_v20 = vld [vmem:[#allocation5 + $0x1c8] sm:$0xff]  }
 0x138   : > { %7344 = vmatprep.mubr.bf16.mxu1 %v6258_v60  ;;  %7644 = vmatprep.subr.bf16.mxu0 %v9444_v55  ;;  %v6277_v60 = vrot.slane %v1413_v49, 9  ;;  %v1538_v14 = vrot.slane %v9450_v1, 5  ;;  %v9558_v1 = vsel %vm9189_vm5, %v1498_v62, %v1499_v41  ;;  %v8282_v17 = vld [vmem:[%s8805_s13 + $0x80] sm:$0x1]  ;;  %v1545_v41 = vrot.slane %v8284_v21, 5 }
 0x139   : > { %v1479_v12 = vsel %vm9189_vm5, %v1477_v52, %v1478_v53  ;;  %v8281_v52 = vld [vmem:[%s8805_s13 + $0x74] sm:$0x1] }
 0x13a   : > { %7581 = vmatmul.mubr.bf16.gmra.mrb[16].mxu0 %v6489_v5  ;;  %v9517_v5 = vsel %vm9189_vm5, %v1484_v29, %v1485_v23  ;;  %v9538_v11 = vsel %vm9189_vm5, %v6277_v60, %v1496_v34  ;;  %v1527_v19 = vrot.slane %v8281_v52, 5  ;;  %v8169_v53 = vld [vmem:[%s8805_s13 + $0x30] sm:$0xff]   ;;  %v1534_v29 = vrot.slane %v8282_v17, 5 }
 0x13b   : > { %7584 = vmatprep.mubr.bf16.mxu0 %v6490_v0  ;;  %v8276_v0 = vld [vmem:[%s8805_s13 + $0x38] sm:$0x1]  ;;  %v6291_v42 = vcombine.low %v9513_v54, %v9517_v5  ;;  %v6283_v23 = vrot.slane %v1419_v48, 9  ;;  %v1540_v49 = vrot.slane %v1538_v14, 4  ;;  %v8179_v52 = vld [vmem:[#allocation5 + $0x1d8] sm:$0xff]  }
 0x13c   : > { %v1492_v40 = vrot.slane %v8276_v0, 5  ;;  %v8287_v5 = vld [vmem:[%s8805_s13 + $0xa4] sm:$0x1] }
 0x13f   : > { %7345 = vmatmul.mubr.bf16.gmra.mrb[20].mxu1 %v6259_v3  ;;  %v1503_v3 = vrot.slane %v9283_v43, 5  ;;  %v9530_v43 = vsel %vm9189_vm5, %v6276_v56, %v1489_v51  ;;  %v8283_v51 = vld [vmem:[%s8805_s13 + $0x8c] sm:$0x1] }
 0x140   : > { %7348 = vmatprep.mubr.bf16.mxu1 %v6260_v47  ;;  %v1416_v47 = vld [vmem:[%s8805_s13 + $0x60] sm:$0xe] }
 0x141   : > { %v6280_v8 = vrot.slane %v1416_v47, 9  ;;  %v9565_v56 = vsel %vm9189_vm5, %v6278_v57, %v1503_v3  ;;  %v6293_v47 = vcombine.low %v9538_v11, %v9558_v1  ;;  %v6560_v57 = vld [vmem:[%s8805_s13 + $0x18] sm:$0xf] }
 0x142   : > { %7585 = vmatmul.mubr.bf16.gmra.mrb[20].mxu0 %v6491_v32  ;;  %v6273_v32 = vrot.slane %v1409_v4, 9  ;;  %v1517_v4 = vrot.slane %v9325_v6, 5  ;;  %v8166_v6 = vld [vmem:[%s8805_s13 + $0x24] sm:$0xff]  }
 0x143   : > { %7588 = vmatprep.mubr.bf16.mxu0 %v6492_v46  ;;  %v6288_v46 = vcombine.low %v1462_v2, %v1465_v16  ;;  %v1512_v2 = vrot.slane %v1510_v38, 4  ;;  %v8279_v16 = vld [vmem:[%s8805_s13 + $0x5c] sm:$0x1] }
 0x144   : > { %v9489_v30 = vsel %vm9189_vm5, %v6273_v32, %v1468_v28  ;;  %v1417_v28 = vld [vmem:[%s8805_s13 + $0x6c] sm:$0xe]  ;;  %v1531_v32 = vrot.slane %v9437_v27, 5  ;;  %v1519_v35 = vrot.slane %v1517_v4, 4  ;;  %v9554_v27 = vsel %vm9189_vm5, %v1491_v36, %v1492_v40  ;;  %v1421_v40 = vld [vmem:[%s8805_s13 + $0x9c] sm:$0xe] }
 0x145   : > { %v9582_v60 = vsel %vm9189_vm5, %v6280_v8, %v1517_v4  ;;  %v9617_v4 = vsel %vm9189_vm5, %v6283_v23, %v1538_v14  ;;  %v9636_v14 = vld [vmem:[%s8805_s13 + $0xa8] sm:$0xe] }
 0x146   : > { %v1533_v58 = vrot.slane %v1531_v32, 4  ;;  %v6286_v21 = vrot.slane %v9636_v14, 9  ;;  %v8177_v14 = vld [vmem:[%s8805_s13 + $0x60] sm:$0xff]  }
 0x147   : > { %7349 = vmatmul.mubr.bf16.gmra.mrb[24].mxu1 %v6261_v63  ;;  %v6290_v63 = vcombine.low %v1476_v33, %v1479_v12  ;;  %v8176_v33 = vld [vmem:[#allocation5 + $0xd0] sm:$0xff]   ;;  %v1420_v12 = vld [vmem:[%s8805_s13 + $0x90] sm:$0xe] }
 0x148   : > { %7352 = vmatprep.mubr.bf16.mxu1 %v6262_v10  ;;  %v1524_v10 = vrot.slane %v9428_v24, 5  ;;  %v6279_v24 = vrot.slane %v9509_v15, 9  ;;  %v6284_v62 = vrot.slane %v1420_v12, 9  ;;  %v9667_v12 = vld [vmem:[%s8805_s13 + $0x34] sm:$0xf] }
 0x14a   : > { %7589 = vmatmul.mubr.bf16.gmra.mrb[24].mxu0 %v6493_v50  ;;  %v1472_v50 = vsel %vm9189_vm5, %v1470_v61, %v1471_v37  ;;  %v1505_v37 = vrot.slane %v1503_v3, 4  ;;  %v1513_v61 = vrot.slane %v8279_v16, 5  ;;  %v6292_v3 = vcombine.low %v9530_v43, %v9554_v27 }
 0x14b   : > { %7592 = vmatprep.mubr.bf16.mxu0 %v6494_v44  ;;  %v8165_v44 = vld [vmem:[%s8805_s13 + $0x18] sm:$0xff]   ;;  %v6289_v9 = vcombine.low %v9489_v30, %v1472_v50  ;;  %v1526_v30 = vrot.slane %v1524_v10, 4  ;;  %v6282_v50 = vrot.slane %v1418_v45, 9  ;;  %v9613_v43 = vsel %vm9189_vm5, %v1533_v58, %v1534_v29 }
 0x14c   : > { %v4196_v16 = vshll.u32 %v6560_v57, 16  ;;  %v9652_v54 = vsel %vm9189_vm5, %v6284_v62, %v1545_v41  ;;  %v8184_v58 = vld [vmem:[#allocation5 + $0xe0] sm:$0xff]  }
 0x14d   : > { %v9594_v0 = vsel %vm9189_vm5, %v1526_v30, %v1527_v19  ;;  %v9604_v36 = vsel %vm9189_vm5, %v6282_v50, %v1531_v32  ;;  %v8285_v32 = vld [vmem:[%s8805_s13 + $0xa0] sm:$0xf]  ;;  %v9648_v30 = vld [vmem:[%s8805_s13 + $0xb4] sm:$0xe] }
 0x14e   : > { %v1552_v48 = vrot.slane %v8285_v32, 5  ;;  %v6298_v8 = vcombine.low %v9604_v36, %v9613_v43 }
 0x14f   : > { %7353 = vmatmul.mubr.bf16.gmra.mrb[28].mxu1 %v6263_v7  ;;  %v1520_v7 = vrot.slane %v8280_v59, 5 }
 0x150   : > { %7372 = vmatprep.mubr.bf16.mxu1 %v6288_v46  ;;  %v6281_v46 = vrot.slane %v1417_v28, 9 }
 0x151   : > { %v9586_v34 = vsel %vm9189_vm5, %v1519_v35, %v1520_v7  ;;  %v1547_v7 = vrot.slane %v1545_v41, 4  ;;  %v8286_v35 = vld [vmem:[%s8805_s13 + $0x98] sm:$0x1]  ;;  %v8288_v41 = vld [vmem:[%s8805_s13 + $0xac] sm:$0xf] }
 0x152   : > { %7593 = vmatmul.mubr.bf16.gmra.mrb[28].mxu0 %v6495_v26  ;;  %v8278_v26 = vld [vmem:[%s8805_s13 + $0x50] sm:$0x1]  ;;  %v9590_v15 = vsel %vm9189_vm5, %v6281_v46, %v1524_v10  ;;  %v6296_v28 = vcombine.low %v9582_v60, %v9586_v34  ;;  %v1548_v46 = vrot.slane %v8286_v35, 5  ;;  %v8188_v35 = vld [vmem:[#allocation5 + $0xe8] sm:$0xff]  }
 0x153   : > { %7612 = vmatprep.mubr.bf16.mxu0 %v8165_v44  ;;  %v1506_v25 = vrot.slane %v8278_v26, 5  ;;  %v1541_v44 = vrot.slane %v8283_v51, 5  ;;  %v6297_v45 = vcombine.low %v9590_v15, %v9594_v0  ;;  %v9778_v60 = vld [vmem:[#allocation7] sm:$0xff]  }
 0x155   : > { %v9569_v22 = vsel %vm9189_vm5, %v1505_v37, %v1506_v25  ;;  %v9621_v10 = vsel %vm9189_vm5, %v1540_v49, %v1541_v44  ;;  %v6563_v37 = vld [vmem:[%s8805_s13 + $0x24] sm:$0xf]  ;;  %v1554_v49 = vrot.slane %v1552_v48, 4  ;;  %v4198_v44 = vrot.slane %v4196_v16, 5 }
 0x156   : > { %v6294_v26 = vcombine.low %v9565_v56, %v9569_v22  ;;  %v4217_v27 = vshrl.u32 %v6563_v37, 16  ;;  %v4220_v50 = vshll.u32 %v6563_v37, 16  ;;  %v8174_v37 = vld [vmem:[%s8805_s13 + $0x54] sm:$0xff]  }
 0x157   : > { %7373 = vmatmul.mubr.bf16.vlgmr.msra.gmra.mrb[0].mxu1 %v6289_v9  ;;  %v9577_v9 = vsel %vm9189_vm5, %v1512_v2, %v1513_v61  ;;  %v4193_v2 = vshrl.u32 %v6560_v57, 16  ;;  %v6564_v61 = vld [vmem:[%s8805_s13 + $0x28] sm:$0xf]  ;;  %v1559_v57 = vrot.slane %v8288_v41, 5  ;;  %v6569_v41 = vld [vmem:[%s8805_s13 + $0x3c] sm:$0xf] }
 0x158   : > { %7405 = vmatpush3.bf16.msra.mxu1 %v9424_v18  ;;  %7376 = vmatprep.mubr.bf16.mxu1 %v6290_v63  ;;  %v9573_v18 = vsel %vm9189_vm5, %v6279_v24, %v1510_v38  ;;  %v8170_v38 = vld [vmem:[%s8805_s13 + $0x3c] sm:$0xff]   ;;  %v9609_v63 = vld [vmem:[#allocation5 + $0xd8] sm:$0xff]   ;;  %v6285_v24 = vrot.slane %v1421_v40, 9  ;;  %v4226_v17 = vshll.u32 %v6564_v61, 16  ;;  %v4230_v29 = vshrl.u32 %v6564_v61, 16 }
 0x159   : > { %7406 = vmatprep.subr.bf16.mxu1 %v8172_v31  ;;  %v6295_v25 = vcombine.low %v9573_v18, %v9577_v9  ;;  %v4195_v51 = vrot.slane %v4193_v2, 4  ;;  %v8183_v40 = vld [vmem:[#allocation5 + $0x1e0] sm:$0xff]   ;;  %v4219_v2 = vrot.slane %v4217_v27, 4  ;;  %v4222_v16 = vrot.slane %v4220_v50, 5  ;;  %v8195_v18 = vld [vmem:[#allocation5 + $0x1f8] sm:$0xff]  }
 0x15a   : > { %7613 = vmatmul.mubr.bf16.vlgmr.msra.gmra.mrb[0].mxu0 %v8166_v6  ;;  %v6561_v6 = vld [vmem:[%s8805_s13 + $0x1c] sm:$0xf]  ;;  %v9661_v23 = vsel %vm9189_vm5, %v6285_v24, %v1552_v48  ;;  %v9690_v61 = vrot.slane %v4226_v17, 5  ;;  %v4250_v50 = vshll.u32 %v9667_v12, 16  ;;  %v4254_v17 = vshrl.u32 %v9667_v12, 16 }
 0x15b   : > { %7645 = vmatpush3.bf16.msra.mxu0 %v9444_v55  ;;  %7616 = vmatprep.mubr.bf16.mxu0 %v8169_v53  ;;  %v8175_v55 = vld [vmem:[#allocation5 + $0x1d0] sm:$0xff]   ;;  %v4202_v19 = vshll.u32 %v6561_v6, 16  ;;  %v4206_v53 = vshrl.u32 %v6561_v6, 16  ;;  %v9712_v11 = vsel %vm9189_vm5, %v6286_v21, %v1559_v57  ;;  %v1561_v1 = vrot.slane %v1559_v57, 4 }
 0x15c   : > { %7646 = vmatprep.subr.bf16.mxu0 %v8171_v20  ;;  %7407 = vmatpush3.bf16.msra.mxu1 %v8172_v31  ;;  %v8173_v31 = vld [vmem:[%s8805_s13 + $0x48] sm:$0xff]   ;;  %v4265_v56 = vshrl.u32 %v6569_v41, 16  ;;  %v4268_v22 = vshll.u32 %v6569_v41, 16 }
 0x15d   : > { %7408 = vmatprep.subr.bf16.mxu1 %v8176_v33  ;;  %v6565_v6 = vld [vmem:[%s8805_s13 + $0x2c] sm:$0x1]  ;;  %v9686_v32 = vrot.slane %v4202_v19, 5  ;;  %v4208_v48 = vrot.slane %v4206_v53, 4  ;;  %v4199_v19 = vor.u32 %v4198_v44, %v4195_v51  ;;  %v9717_v51 = vld [vmem:[%s8805_s13 + $0x40] sm:$0xf] }
 0x15e   : > { %v4270_v59 = vrot.slane %v4268_v22, 5  ;;  %v9788_v22 = vld [vmem:[%s8805_s13 + $0x58] sm:$0xf] }
 0x15f   : > { %7377 = vmatmul.mubr.bf16.gmra.mrb[4].mxu1 %v6291_v42  ;;  %7647 = vmatpush3.bf16.msra.mxu0 %v8171_v20  ;;  %v1555_v42 = vrot.slane %v8287_v5, 5  ;;  %v9656_v20 = vld [vmem:[%s8805_s13 + $0x20] sm:$0x1]  ;;  %v4200_v57 = vrot.slane %v4199_v19, 4  ;;  %v6572_v19 = vld [vmem:[%s8805_s13 + $0x48] sm:$0xf] }
 0x160   : > { %7380 = vmatprep.mubr.bf16.mxu1 %v6292_v3  ;;  %7648 = vmatprep.subr.bf16.mxu0 %v8175_v55  ;;  %v9671_v3 = vsel %vm9189_vm5, %v1547_v7, %v1548_v46  ;;  %v4232_v7 = vrot.slane %v4230_v29, 4  ;;  %v4212_v53 = vshll.u32 %v9656_v20, 16  ;;  %v8192_v20 = vld [vmem:[#allocation5 + $0xf0] sm:$0xff]   ;;  %v4223_v29 = vor.u32 %v4222_v16, %v4219_v2 }
 0x161   : > { %7409 = vmatpush3.bf16.msra.mxu1 %v8176_v33  ;;  %v9664_v33 = vld [vmem:[%s8805_s13 + $0x30] sm:$0xf]  ;;  %v9696_v5 = vsel %vm9189_vm5, %v1554_v49, %v1555_v42  ;;  %v8187_v42 = vld [vmem:[#allocation5 + $0x1e8] sm:$0xff]   ;;  %v9725_v16 = vrot.slane %v4250_v50, 5  ;;  %v4274_v46 = vshll.u32 %v9717_v51, 16 }
 0x162   : > { %7617 = vmatmul.mubr.bf16.gmra.mrb[4].mxu0 %v8170_v38  ;;  %7410 = vmatprep.subr.bf16.mxu1 %v9609_v63  ;;  %v9676_v38 = vld [vmem:[%s8805_s13 + $0xb0] sm:$0x1]  ;;  %v4244_v27 = vshll.u32 %v9664_v33, 16  ;;  %v4233_v49 = vor.u32 %v4232_v7, %v9690_v61 }
 0x163   : > { %7620 = vmatprep.mubr.bf16.mxu0 %v8173_v31  ;;  %7649 = vmatpush3.bf16.msra.mxu0 %v8175_v55  ;;  %v1562_v62 = vrot.slane %v9676_v38, 5  ;;  %v6287_v31 = vrot.slane %v9648_v30, 9  ;;  %v9683_v55 = vld [vmem:[%s8805_s13 + $0xb8] sm:$0xf] }
 0x164   : > { %7650 = vmatprep.subr.bf16.mxu0 %v8179_v52  ;;  %v1566_v24 = vrot.slane %v9683_v55, 5  ;;  %v4246_v2 = vrot.slane %v4244_v27, 5  ;;  %v8181_v38 = vld [vmem:[%s8805_s13 + $0x78] sm:$0xff]  }
 0x165   : > { %7411 = vmatpush3.bf16.msra.mxu1 %v9609_v63  ;;  %v4241_v63 = vshrl.u32 %v9664_v33, 16  ;;  %v8291_v33 = vld [vmem:[%s8805_s13 + $0xbc] sm:$0x1]  ;;  %v9737_v50 = vsel %vm9189_vm5, %v1561_v1, %v1562_v62  ;;  %v4205_v62 = vsel %vm8825_vm2, %v4200_v57, %v9686_v32  ;;  %v9764_v1 = vld [vmem:[%s8805_s13 + $0x4c] sm:$0xf] }
 0x166   : > { %7412 = vmatprep.subr.bf16.mxu1 %v8184_v58  ;;  %v1568_v44 = vrot.slane %v1566_v24, 4  ;;  %v1569_v21 = vrot.slane %v8291_v33, 5  ;;  %v4278_v33 = vshrl.u32 %v9717_v51, 16  ;;  %v9875_v27 = vld [vmem:[%s8805_s13 + $0x7c] sm:$0xf] }
 0x167   : > { %7381 = vmatmul.mubr.bf16.gmra.mrb[8].mxu1 %v6293_v47  ;;  %7651 = vmatpush3.bf16.msra.mxu0 %v8179_v52  ;;  %v4209_v47 = vor.u32 %v4208_v48, %v9686_v32  ;;  %v4236_v52 = vshll.u32 %v6565_v6, 16  ;;  %v4214_v6 = vrot.slane %v4212_v53, 5  ;;  %v4243_v48 = vrot.slane %v4241_v63, 4  ;;  %v8178_v63 = vld [vmem:[%s8805_s13 + $0x6c] sm:$0xff]  }
 0x168   : > { %7384 = vmatprep.mubr.bf16.mxu1 %v6294_v26  ;;  %7652 = vmatprep.subr.bf16.mxu0 %v8183_v40  ;;  %v8191_v26 = vld [vmem:[#allocation5 + $0x1f0] sm:$0xff]   ;;  %v4267_v53 = vrot.slane %v4265_v56, 4  ;;  %v4280_v32 = vrot.slane %v4278_v33, 4  ;;  %v4302_v56 = vshrl.u32 %v9764_v1, 16 }
 0x169   : > { %7413 = vmatpush3.bf16.msra.mxu1 %v8184_v58  ;;  %v9723_v58 = vld [vmem:[%s8805_s13 + $0x38] sm:$0x1]  ;;  %v4210_v7 = vrot.slane %v4209_v47, 4  ;;  %v4238_v41 = vrot.slane %v4236_v52, 5  ;;  %v8196_v47 = vld [vmem:[#allocation5 + $0xf8] sm:$0xff]   ;;  %v4247_v30 = vor.u32 %v4246_v2, %v4243_v48 }
 0x16a   : > { %7621 = vmatmul.mubr.bf16.gmra.mrb[8].mxu0 %v8174_v37  ;;  %7414 = vmatprep.subr.bf16.mxu1 %v8188_v35  ;;  %v4256_v37 = vrot.slane %v4254_v17, 4  ;;  %v9749_v17 = vsel %vm9189_vm5, %v1568_v44, %v1569_v21  ;;  %v4271_v34 = vor.u32 %v4270_v59, %v4267_v53  ;;  %v9792_v44 = vld [vmem:[#allocation5 + $0x200] sm:$0xff]   ;;  %v6578_v2 = vld [vmem:[%s8805_s13 + $0x60] sm:$0xf] }
 0x16b   : > { %7624 = vmatprep.mubr.bf16.mxu0 %v8177_v14  ;;  %7653 = vmatpush3.bf16.msra.mxu0 %v8183_v40  ;;  %v4224_v14 = vrot.slane %v4223_v29, 4  ;;  %v4234_v40 = vrot.slane %v4233_v49, 4  ;;  %v4215_v9 = vsel %vm8825_vm2, %v4210_v7, %v4214_v6  ;;  %v6575_v49 = vld [vmem:[%s8805_s13 + $0x54] sm:$0xf]  ;;  %10807 = vst [vmem:[#allocation35_spill] sm:$0xff] %v9792_v44  ;;  %v9794_v21 = vrot.slane %v4247_v30, 4 }
 0x16c   : > { %7654 = vmatprep.subr.bf16.mxu0 %v8187_v42  ;;  %v4257_v55 = vor.u32 %v4256_v37, %v9725_v16  ;;  %v9790_v59 = vcombine.low %v4205_v62, %v4215_v9  ;;  %v9801_v48 = vld [vmem:[%s8805_s13 + $0x50] sm:$0x1]  ;;  %v8182_v37 = vld [vmem:[%s8805_s13 + $0x84] sm:$0xff]   ;;  %v4304_v30 = vrot.slane %v4302_v56, 4  ;;  %v6581_v9 = vld [vmem:[%s8805_s13 + $0x6c] sm:$0xf] }
 0x16d   : > { %7415 = vmatpush3.bf16.msra.mxu1 %v8188_v35  ;;  %v9745_v35 = vsel %vm9189_vm5, %v6287_v31, %v1566_v24  ;;  %v4260_v31 = vshll.u32 %v9723_v58, 16  ;;  %v9761_v24 = vld [vmem:[%s8805_s13 + $0x44] sm:$0x1]  ;;  %v4229_v52 = vsel %vm8825_vm2, %v4224_v14, %v9690_v61  ;;  %v4239_v29 = vsel %vm8825_vm2, %v4234_v40, %v4238_v41  ;;  %v8185_v14 = vld [vmem:[%s8805_s13 + $0x90] sm:$0xff]  }
 0x16e   : > { %7416 = vmatprep.subr.bf16.mxu1 %v8192_v20  ;;  %v4298_v61 = vshll.u32 %v9764_v1, 16  ;;  %v9796_v57 = vrot.slane %v4257_v55, 4  ;;  %v9805_v7 = vcombine.low %v4229_v52, %v4239_v29  ;;  %v4284_v41 = vshll.u32 %v9761_v24, 16  ;;  %v9833_v29 = vld [vmem:[%s8805_s13 + $0x70] sm:$0xf] }
 0x16f   : > { %7385 = vmatmul.mubr.bf16.gmra.mrb[12].mxu1 %v6295_v25  ;;  %7655 = vmatpush3.bf16.msra.mxu0 %v8187_v42  ;;  %v9771_v25 = vrot.slane %v4274_v46, 5  ;;  %v4289_v42 = vshrl.u32 %v6572_v19, 16  ;;  %v9798_v6 = vrot.slane %v4260_v31, 5  ;;  %v9813_v40 = vrot.slane %v4271_v34, 4 }
 0x170   : > { %7388 = vmatprep.mubr.bf16.mxu1 %v6296_v28  ;;  %7656 = vmatprep.subr.bf16.mxu0 %v8191_v26  ;;  %v4292_v28 = vshll.u32 %v6572_v19, 16  ;;  %10808 = vst [vmem:[#allocation36_spill] sm:$0xff] %v9805_v7  ;;  %v9810_v19 = vld [vmem:[%s8805_s13 + $0x64] sm:$0xf]  ;;  %v9816_v62 = vrot.slane %v4298_v61, 5  ;;  %v4322_v55 = vshll.u32 %v9788_v22, 16 }
 0x171   : > { %7417 = vmatpush3.bf16.msra.mxu1 %v8192_v20  ;;  %v4291_v33 = vrot.slane %v4289_v42, 4  ;;  %v4326_v31 = vshrl.u32 %v9788_v22, 16  ;;  %v4337_v42 = vshrl.u32 %v6578_v2, 16  ;;  %v4340_v52 = vshll.u32 %v6578_v2, 16  ;;  %v9890_v7 = vld [vmem:[%s8805_s13 + $0x74] sm:$0x1] }
 0x172   : > { %7625 = vmatmul.mubr.bf16.gmra.mrb[12].mxu0 %v8178_v63  ;;  %7418 = vmatprep.subr.bf16.mxu1 %v8196_v47  ;;  %v4294_v53 = vrot.slane %v4292_v28, 5  ;;  %v4313_v63 = vshrl.u32 %v6575_v49, 16  ;;  %v9839_v15 = vrot.slane %v4284_v41, 5  ;;  %v4308_v0 = vshll.u32 %v9801_v48, 16 }
 0x173   : > { %7628 = vmatprep.mubr.bf16.mxu0 %v8181_v38  ;;  %7657 = vmatpush3.bf16.msra.mxu0 %v8191_v26  ;;  %v4281_v26 = vor.u32 %v4280_v32, %v9771_v25  ;;  %v4316_v38 = vshll.u32 %v6575_v49, 16  ;;  %v9845_v49 = vld [vmem:[%s8805_s13 + $0x5c] sm:$0x1]  ;;  %v4277_v36 = vsel %vm8825_vm2, %v9813_v40, %v9771_v25  ;;  %v4305_v43 = vor.u32 %v4304_v30, %v9816_v62  ;;  %v8189_v40 = vld [vmem:[%s8805_s13 + $0xa8] sm:$0xff]  }
 0x174   : > { %7658 = vmatprep.subr.bf16.mxu0 %v8195_v18  ;;  %v4295_v28 = vor.u32 %v4294_v53, %v4291_v33  ;;  %v4315_v61 = vrot.slane %v4313_v63, 4  ;;  %v4328_v2 = vrot.slane %v4326_v31, 4  ;;  %v4339_v41 = vrot.slane %v4337_v42, 4 }
 0x175   : > { %7419 = vmatpush3.bf16.msra.mxu1 %v8196_v47  ;;  %v4282_v34 = vrot.slane %v4281_v26, 4  ;;  %v4318_v56 = vrot.slane %v4316_v38, 5  ;;  %v6584_v26 = vld [vmem:[%s8805_s13 + $0x78] sm:$0xf]  ;;  %v4342_v33 = vrot.slane %v4340_v52, 5  ;;  %v4361_v53 = vshrl.u32 %v6581_v9, 16 }
 0x176   : > { %7500 = vmatprep.subr.bf16.mxu1 %v9778_v60  ;;  %v4364_v63 = vshll.u32 %v6581_v9, 16  ;;  %v4370_v46 = vshll.u32 %v9833_v29, 16  ;;  %v4374_v25 = vshrl.u32 %v9833_v29, 16  ;;  %v9861_v30 = vrot.slane %v4295_v28, 4 }
 0x177   : > { %7389 = vmatmul.mubr.bf16.gmra.mrb[16].mxu1 %v6297_v45  ;;  %7659 = vmatpush3.bf16.msra.mxu0 %v8195_v18  ;;  %v4346_v45 = vshll.u32 %v9810_v19, 16  ;;  %v4350_v18 = vshrl.u32 %v9810_v19, 16  ;;  %v4385_v31 = vshrl.u32 %v6584_v26, 16  ;;  %v4388_v42 = vshll.u32 %v6584_v26, 16 }
 0x178   : > { %7392 = vmatprep.mubr.bf16.mxu1 %v6298_v8  ;;  %7692 = vmatprep.subr.bf16.mxu0 %v9792_v44  ;;  %v9852_v8 = vrot.slane %v4322_v55, 5  ;;  %v9863_v55 = vrot.slane %v4308_v0, 5  ;;  %v4287_v9 = vsel %vm8825_vm2, %v4282_v34, %v9839_v15  ;;  %v9871_v52 = vrot.slane %v4305_v43, 4  ;;  %v6587_v44 = vld [vmem:[%s8805_s13 + $0x84] sm:$0xf] }
 0x179   : > { %v9856_v38 = vrot.slane %v4346_v45, 5  ;;  %v4352_v20 = vrot.slane %v4350_v18, 4  ;;  %v4319_v45 = vor.u32 %v4318_v56, %v4315_v61  ;;  %v4332_v18 = vshll.u32 %v9845_v49, 16 }
 0x17a   : > { %7629 = vmatmul.mubr.bf16.gmra.mrb[16].mxu0 %v8182_v37  ;;  %v8186_v37 = vld [vmem:[%s8805_s13 + $0x9c] sm:$0xff]   ;;  %v10809_v0 = vcombine.low %v9617_v4, %v9621_v10  ;;  %v4329_v28 = vor.u32 %v4328_v2, %v9852_v8  ;;  %v4343_v47 = vor.u32 %v4342_v33, %v4339_v41  ;;  %v4363_v26 = vrot.slane %v4361_v53, 4 }
 0x17b   : > { %7632 = vmatprep.mubr.bf16.mxu0 %v8185_v14  ;;  %v9866_v14 = vld [vmem:[%s8805_s13 + $0x68] sm:$0x1]  ;;  %v4366_v32 = vrot.slane %v4364_v63, 5  ;;  %v10810_v15 = vcombine.low %v9652_v54, %v9671_v3  ;;  %v4353_v34 = vor.u32 %v4352_v20, %v9856_v38  ;;  %v9887_v56 = vrot.slane %v4370_v46, 5 }
 0x17c   : > { %v4356_v61 = vshll.u32 %v9866_v14, 16  ;;  %v4376_v43 = vrot.slane %v4374_v25, 4  ;;  %v4387_v4 = vrot.slane %v4385_v31, 4  ;;  %v4390_v10 = vrot.slane %v4388_v42, 5 }
 0x17d   : > { %v4394_v2 = vshll.u32 %v9875_v27, 16  ;;  %v4398_v41 = vshrl.u32 %v9875_v27, 16  ;;  %v4320_v33 = vrot.slane %v4319_v45, 4  ;;  %v4334_v53 = vrot.slane %v4332_v18, 5 }
 0x17e   : > { %v4409_v54 = vshrl.u32 %v6587_v44, 16  ;;  %v4412_v3 = vshll.u32 %v6587_v44, 16  ;;  %v10811_v46 = vsel %vm8825_vm2, %v9796_v57, %v9798_v6  ;;  %v10812_v20 = vsel %vm8825_vm2, %v9794_v21, %v9725_v16  ;;  %v9913_v21 = vld [vmem:[%s8805_s13 + $0x88] sm:$0xf] }
 0x17f   : > { %7393 = vmatmul.mubr.bf16.gmra.mrb[20].mxu1 %v10809_v0  ;;  %v9904_v63 = vcombine.low %v10812_v20, %v10811_v46  ;;  %v4344_v25 = vrot.slane %v4343_v47, 4  ;;  %v4367_v31 = vor.u32 %v4366_v32, %v4363_v26  ;;  %v9906_v42 = vcombine.low %v4277_v36, %v4287_v9  ;;  %v8190_v0 = vld [vmem:[%s8805_s13 + $0xb4] sm:$0xff]   ;;  %v9925_v36 = vld [vmem:[%s8805_s13 + $0x80] sm:$0x1]  ;;  %v8197_v46 = vld [vmem:[%s8805_s13 + $0xc] sm:$0xff]  }
 0x180   : > { %7396 = vmatprep.mubr.bf16.mxu1 %v10810_v15  ;;  %v4354_v44 = vrot.slane %v4353_v34, 4  ;;  %v4380_v45 = vshll.u32 %v9890_v7, 16  ;;  %v4377_v57 = vor.u32 %v4376_v43, %v9887_v56  ;;  %v4391_v6 = vor.u32 %v4390_v10, %v4387_v4  ;;  %v8193_v15 = vld [vmem:[%s8805_s13 + $0xc0] sm:$0xff]  }
 0x181   : > { %v9910_v18 = vrot.slane %v4394_v2, 5  ;;  %v4400_v16 = vrot.slane %v4398_v41, 4  ;;  %v4301_v47 = vsel %vm8825_vm2, %v9861_v30, %v9816_v62  ;;  %v4311_v32 = vsel %vm8825_vm2, %v9871_v52, %v9863_v55  ;;  %v9942_v52 = vld [vmem:[%s8805_s13 + $0x8c] sm:$0x1] }
 0x182   : > { %7633 = vmatmul.mubr.bf16.gmra.mrb[20].mxu0 %v8186_v37  ;;  %v4330_v37 = vrot.slane %v4329_v28, 4  ;;  %v4411_v9 = vrot.slane %v4409_v54, 4  ;;  %v4414_v28 = vrot.slane %v4412_v3, 5  ;;  %v10813_v26 = vcombine.low %v9661_v23, %v9696_v5 }
 0x183   : > { %7636 = vmatprep.mubr.bf16.mxu0 %v8189_v40  ;;  %v4358_v40 = vrot.slane %v4356_v61, 5  ;;  %v4325_v34 = vsel %vm8825_vm2, %v4320_v33, %v9852_v8  ;;  %v4349_v30 = vsel %vm8825_vm2, %v4344_v25, %v9856_v38  ;;  %v9939_v55 = vrot.slane %v4367_v31, 4  ;;  %v6590_v61 = vld [vmem:[%s8805_s13 + $0x90] sm:$0xf]  ;;  %v9955_v38 = vld [vmem:[%s8805_s13 + $0x94] sm:$0xf] }
 0x184   : > { %v4335_v62 = vsel %vm8825_vm2, %v4330_v37, %v4334_v53  ;;  %v10814_v23 = vcombine.low %v9712_v11, %v9737_v50  ;;  %v9950_v8 = vrot.slane %v4380_v45, 5  ;;  %v4418_v43 = vshll.u32 %v9913_v21, 16  ;;  %v6634_v50 = vld [vmem:[%s8805_s13 + $0x30] sm:$0xe] }
 0x185   : > { %v4359_v5 = vsel %vm8825_vm2, %v4354_v44, %v4358_v40  ;;  %v4422_v4 = vshrl.u32 %v9913_v21, 16  ;;  %v9957_v10 = vrot.slane %v4377_v57, 4  ;;  %v9959_v2 = vrot.slane %v4391_v6, 4  ;;  %v6635_v6 = vld [vmem:[%s8805_s13 + $0x3c] sm:$0xe] }
 0x186   : > { %v4401_v41 = vor.u32 %v4400_v16, %v9910_v18  ;;  %v4404_v11 = vshll.u32 %v9925_v36, 16  ;;  %v9964_v33 = vcombine.low %v4301_v47, %v4311_v32  ;;  %v4415_v53 = vor.u32 %v4414_v28, %v4411_v9  ;;  %v8194_v9 = vld [vmem:[%s8805_s13 + $0xcc] sm:$0xff]  }
 0x187   : > { %7397 = vmatmul.mubr.bf16.gmra.mrb[24].mxu1 %v10813_v26  ;;  %v4428_v54 = vshll.u32 %v9942_v52, 16  ;;  %v4433_v3 = vshrl.u32 %v6590_v61, 16  ;;  %v9968_v20 = vcombine.low %v4325_v34, %v4335_v62  ;;  %v9970_v37 = vcombine.low %v4349_v30, %v4359_v5  ;;  %v10146_v16 = vld [vmem:[%s8805_s13 + $0xb0] sm:$0x1] }
 0x188   : > { %7400 = vmatprep.mubr.bf16.mxu1 %v10814_v23  ;;  %v4436_v31 = vshll.u32 %v6590_v61, 16  ;;  %v9976_v44 = vrot.slane %v4418_v43, 5  ;;  %v9978_v40 = vrot.slane %v4422_v4, 4  ;;  %v4442_v45 = vshll.u32 %v9955_v38, 16  ;;  %v6636_v43 = vld [vmem:[%s8805_s13 + $0x48] sm:$0xe] }
 0x189   : > { %v6650_v57 = vrot.slane %v6634_v50, 9  ;;  %v9990_v47 = vrot.slane %v4401_v41, 4  ;;  %v9992_v32 = vrot.slane %v4404_v11, 5  ;;  %v9995_v28 = vrot.slane %v4415_v53, 4  ;;  %v10149_v4 = vld [vmem:[%s8805_s13 + $0xb8] sm:$0xf] }
 0x18a   : > { %7637 = vmatmul.mubr.bf16.gmra.mrb[24].mxu0 %v8190_v0  ;;  %v9997_v26 = vrot.slane %v4428_v54, 5  ;;  %v4978_v34 = vrot.slane %v9667_v12, 5  ;;  %v10815_v62 = vcombine.low %v9745_v35, %v9749_v17  ;;  %v10005_v30 = vrot.slane %v4436_v31, 5  ;;  %v6637_v17 = vld [vmem:[%s8805_s13 + $0x54] sm:$0xe] }
 0x18b   : > { %7640 = vmatprep.mubr.bf16.mxu0 %v8193_v15  ;;  %v9999_v15 = vrot.slane %v4433_v3, 4  ;;  %v4981_v61 = vrot.slane %v9723_v58, 5  ;;  %v6651_v23 = vrot.slane %v6635_v6, 9  ;;  %v4985_v5 = vrot.slane %v9717_v51, 5  ;;  %v6638_v31 = vld [vmem:[%s8805_s13 + $0x60] sm:$0xe] }
 0x18c   : > { %v10012_v41 = vrot.slane %v4442_v45, 5  ;;  %v10016_v12 = vsel %vm9189_vm5, %v6650_v57, %v4978_v34  ;;  %v4980_v35 = vrot.slane %v4978_v34, 4  ;;  %v4988_v50 = vrot.slane %v9761_v24, 5  ;;  %v8198_v45 = vld [vmem:[%s8805_s13 + $0x18] sm:$0xff]   ;;  %v6639_v34 = vld [vmem:[%s8805_s13 + $0x6c] sm:$0xe] }
 0x18d   : > { %v10022_v51 = vsel %vm9189_vm5, %v6651_v23, %v4985_v5  ;;  %v4987_v11 = vrot.slane %v4985_v5, 4  ;;  %v6652_v54 = vrot.slane %v6636_v43, 9  ;;  %v4992_v3 = vrot.slane %v9764_v1, 5  ;;  %v8204_v23 = vld [vmem:[#allocation7 + $0x8] sm:$0xff]   ;;  %v6644_v57 = vld [vmem:[%s8805_s13 + $0xa8] sm:$0xe] }
 0x18e   : > { %v10027_v53 = vsel %vm9189_vm5, %v4980_v35, %v4981_v61  ;;  %v6653_v6 = vrot.slane %v6637_v17, 9  ;;  %v5002_v61 = vrot.slane %v9845_v49, 5  ;;  %v6654_v43 = vrot.slane %v6638_v31, 9  ;;  %v6640_v49 = vld [vmem:[%s8805_s13 + $0x78] sm:$0xe] }
 0x18f   : > { %7401 = vmatmul.mubr.bf16.gmra.mrb[28].mxu1 %v10815_v62  ;;  %v10038_v24 = vsel %vm9189_vm5, %v4987_v11, %v4988_v50  ;;  %v8201_v62 = vld [vmem:[%s8805_s13 + $0x24] sm:$0xff]   ;;  %v5006_v35 = vrot.slane %v9810_v19, 5  ;;  %v5009_v11 = vrot.slane %v9866_v14, 5  ;;  %v6655_v50 = vrot.slane %v6639_v34, 9  ;;  %v10132_v0 = vld [vmem:[%s8805_s13 + $0xac] sm:$0xf] }
 0x190   : > { %7420 = vmatprep.mubr.bf16.mxu1 %v8197_v46  ;;  %v4995_v46 = vrot.slane %v9801_v48, 5  ;;  %v4994_v48 = vrot.slane %v4992_v3, 4  ;;  %v6641_v31 = vld [vmem:[%s8805_s13 + $0x84] sm:$0xe]  ;;  %v5016_v34 = vrot.slane %v9890_v7, 5 }
 0x191   : > { %v10070_v19 = vsel %vm9189_vm5, %v6654_v43, %v5006_v35  ;;  %v6642_v43 = vld [vmem:[%s8805_s13 + $0x90] sm:$0xe]  ;;  %v6646_v58 = vld [vmem:[%s8805_s13 + $0xc0] sm:$0xe] }
 0x192   : > { %7641 = vmatmul.mubr.bf16.gmra.mrb[28].mxu0 %v8194_v9  ;;  %v4999_v9 = vrot.slane %v9788_v22, 5  ;;  %v10057_v17 = vsel %vm9189_vm5, %v4994_v48, %v4995_v46  ;;  %v5008_v46 = vrot.slane %v5006_v35, 4  ;;  %v8208_v48 = vld [vmem:[#allocation7 + $0x10] sm:$0xff]   ;;  %v6658_v7 = vrot.slane %v6642_v43, 9 }
 0x193   : > { %7660 = vmatprep.mubr.bf16.mxu0 %v9790_v59  ;;  %v10047_v59 = vsel %vm9189_vm5, %v6652_v54, %v4992_v3  ;;  %v5013_v54 = vrot.slane %v9833_v29, 5  ;;  %v8203_v29 = vld [vmem:[#allocation5 + $0x208] sm:$0xff]   ;;  %v10818_v35 = vld [vmem:[#allocation36_spill] sm:$0xff]  ;;  %v5048_v43 = vrot.slane %v10132_v0, 5 }
 0x194   : > { %v10052_v5 = vsel %vm9189_vm5, %v6653_v6, %v4999_v9  ;;  %v5001_v22 = vrot.slane %v4999_v9, 4  ;;  %v10843_v13 = vcombine.low %v10047_v59, %v10057_v17 }
 0x195   : > { %v5015_v9 = vrot.slane %v5013_v54, 4 }
 0x196   : > { %v10066_v6 = vsel %vm9189_vm5, %v5001_v22, %v5002_v61  ;;  %v5020_v61 = vrot.slane %v9875_v27, 5  ;;  %v5023_v22 = vrot.slane %v9925_v36, 5  ;;  %v10820_v27 = vld [vmem:[#allocation35_spill] sm:$0xff] }
 0x197   : > { %7421 = vmatmul.mubr.bf16.vlgmr.msra.gmra.mrb[0].mxu1 %v8198_v45  ;;  %v10078_v45 = vsel %vm9189_vm5, %v6655_v50, %v5013_v54  ;;  %v8202_v50 = vld [vmem:[%s8805_s13 + $0x30] sm:$0xff]   ;;  %v8205_v54 = vld [vmem:[%s8805_s13 + $0x3c] sm:$0xff]   ;;  %v10095_v14 = vsel %vm9189_vm5, %v5015_v9, %v5016_v34  ;;  %v10102_v36 = vld [vmem:[%s8805_s13 + $0x98] sm:$0x1] }
 0x198   : > { %7501 = vmatpush3.bf16.msra.mxu1 %v9778_v60  ;;  %7424 = vmatprep.mubr.bf16.mxu1 %v8201_v62  ;;  %10816 = vst [vmem:[#allocation37_spill] sm:$0xff] %v10078_v45  ;;  %v10083_v60 = vsel %vm9189_vm5, %v5008_v46, %v5009_v11  ;;  %v6656_v62 = vrot.slane %v6640_v49, 9  ;;  %10819 = vst [vmem:[#allocation36_spill] sm:$0xff] %v10095_v14  ;;  %v6657_v11 = vrot.slane %v6641_v31, 9  ;;  %v5027_v49 = vrot.slane %v9913_v21, 5  ;;  %v8207_v9 = vld [vmem:[#allocation5 + $0x210] sm:$0xff]  }
 0x199   : > { %7502 = vmatprep.subr.bf16.mxu1 %v8204_v23  ;;  %10817 = vst [vmem:[#allocation38_spill] sm:$0xff] %v10083_v60  ;;  %v6643_v46 = vld [vmem:[%s8805_s13 + $0x9c] sm:$0xe]  ;;  %v5022_v31 = vrot.slane %v5020_v61, 4  ;;  %v5030_v21 = vrot.slane %v9942_v52, 5 }
 0x19a   : > { %7661 = vmatmul.mubr.bf16.vlgmr.msra.gmra.mrb[0].mxu0 %v10818_v35  ;;  %v10105_v35 = vld [vmem:[%s8805_s13 + $0xa0] sm:$0xf]  ;;  %v10111_v3 = vsel %vm9189_vm5, %v6656_v62, %v5020_v61  ;;  %v10119_v34 = vsel %vm9189_vm5, %v6657_v11, %v5027_v49  ;;  %v5034_v62 = vrot.slane %v9955_v38, 5  ;;  %v6659_v61 = vrot.slane %v6643_v46, 9  ;;  %v10129_v11 = vld [vmem:[#allocation5 + $0x218] sm:$0xff]  }
 0x19b   : > { %7693 = vmatpush3.bf16.msra.mxu0 %v10820_v27  ;;  %7664 = vmatprep.mubr.bf16.mxu0 %v9904_v63  ;;  %10821 = vst [vmem:[#allocation35_spill] sm:$0xff] %v10111_v3  ;;  %v10115_v63 = vld [vmem:[%s8805_s13 + $0xa4] sm:$0x1]  ;;  %10822 = vst [vmem:[#allocation39_spill] sm:$0xff] %v10119_v34  ;;  %v5029_v27 = vrot.slane %v5027_v49, 4  ;;  %v10124_v52 = vsel %vm9189_vm5, %v5022_v31, %v5023_v22  ;;  %v5041_v1 = vrot.slane %v10105_v35, 5 }
 0x19c   : > { %7694 = vmatprep.subr.bf16.mxu0 %v8203_v29  ;;  %7503 = vmatpush3.bf16.msra.mxu1 %v8204_v23  ;;  %10823 = vst [vmem:[#allocation40_spill] sm:$0xff] %v10124_v52  ;;  %v5037_v23 = vrot.slane %v10102_v36, 5  ;;  %v8212_v49 = vld [vmem:[#allocation7 + $0x18] sm:$0xff]   ;;  %v10142_v22 = vsel %vm9189_vm5, %v6658_v7, %v5034_v62  ;;  %v5036_v46 = vrot.slane %v5034_v62, 4  ;;  %v6660_v62 = vrot.slane %v6644_v57, 9 }
 0x19d   : > { %7504 = vmatprep.subr.bf16.mxu1 %v8208_v48  ;;  %v10138_v25 = vsel %vm9189_vm5, %v5029_v27, %v5030_v21  ;;  %10825 = vst [vmem:[#allocation42_spill] sm:$0xff] %v10142_v22  ;;  %v6645_v31 = vld [vmem:[%s8805_s13 + $0xb4] sm:$0xe]  ;;  %v10155_v21 = vsel %vm9189_vm5, %v6659_v61, %v5041_v1  ;;  %v5043_v7 = vrot.slane %v5041_v1, 4  ;;  %v5044_v27 = vrot.slane %v10115_v63, 5  ;;  %v8206_v1 = vld [vmem:[%s8805_s13 + $0x48] sm:$0xff]  }
 0x19e   : > { %10824 = vst [vmem:[#allocation41_spill] sm:$0xff] %v10138_v25  ;;  %10826 = vst [vmem:[#allocation43_spill] sm:$0xff] %v10155_v21  ;;  %v5051_v61 = vrot.slane %v10146_v16, 5  ;;  %v10169_v25 = vld [vmem:[%s8805_s13 + $0xbc] sm:$0x1]  ;;  %v5055_v57 = vrot.slane %v10149_v4, 5 }
 0x19f   : > { %7425 = vmatmul.mubr.bf16.gmra.mrb[4].mxu1 %v8202_v50  ;;  %7695 = vmatpush3.bf16.msra.mxu0 %v8203_v29  ;;  %v10158_v50 = vld [vmem:[#allocation7 + $0x20] sm:$0xff]   ;;  %v10162_v29 = vsel %vm9189_vm5, %v5036_v46, %v5037_v23  ;;  %v10175_v23 = vsel %vm9189_vm5, %v5043_v7, %v5044_v27  ;;  %v6661_v46 = vrot.slane %v6645_v31, 9  ;;  %v6647_v34 = vld [vmem:[%s8805_s13 + $0xcc] sm:$0xe]  ;;  %v10181_v52 = vld [vmem:[%s8805_s13 + $0xc4] sm:$0xf] }
 0x1a0   : > { %7428 = vmatprep.mubr.bf16.mxu1 %v8205_v54  ;;  %7696 = vmatprep.subr.bf16.mxu0 %v8207_v9  ;;  %10827 = vst [vmem:[#allocation44_spill] sm:$0xff] %v10162_v29  ;;  %10828 = vst [vmem:[#allocation45_spill] sm:$0xff] %v10175_v23  ;;  %v10190_v29 = vsel %vm9189_vm5, %v6660_v62, %v5048_v43  ;;  %v5050_v7 = vrot.slane %v5048_v43, 4  ;;  %v5058_v31 = vrot.slane %v10169_v25, 5  ;;  %v10196_v27 = vld [vmem:[%s8805_s13 + $0xd0] sm:$0xf] }
 0x1a1   : > { %7505 = vmatpush3.bf16.msra.mxu1 %v8208_v48  ;;  %v10184_v48 = vld [vmem:[%s8805_s13 + $0xc8] sm:$0x1]  ;;  %10829 = vst [vmem:[#allocation46_spill] sm:$0xff] %v10190_v29  ;;  %v10200_v22 = vsel %vm9189_vm5, %v6661_v46, %v5055_v57  ;;  %v5057_v3 = vrot.slane %v5055_v57, 4  ;;  %v6662_v54 = vrot.slane %v6646_v58, 9  ;;  %v5062_v23 = vrot.slane %v10181_v52, 5 }
 0x1a2   : > { %7665 = vmatmul.mubr.bf16.gmra.mrb[4].mxu0 %v9906_v42  ;;  %7506 = vmatprep.subr.bf16.mxu1 %v8212_v49  ;;  %v8209_v42 = vld [vmem:[%s8805_s13 + $0x54] sm:$0xff]   ;;  %v6593_v62 = vld [vmem:[%s8805_s13 + $0x9c] sm:$0xf]  ;;  %v6663_v21 = vrot.slane %v6647_v34, 9  ;;  %v5069_v14 = vrot.slane %v10196_v27, 5 }
 0x1a3   : > { %7668 = vmatprep.mubr.bf16.mxu0 %v9964_v33  ;;  %7697 = vmatpush3.bf16.msra.mxu0 %v8207_v9  ;;  %v8215_v43 = vld [vmem:[#allocation5 + $0x220] sm:$0xff]   ;;  %v10207_v33 = vsel %vm9189_vm5, %v5050_v7, %v5051_v61  ;;  %v5065_v9 = vrot.slane %v10184_v48, 5  ;;  %v10218_v57 = vsel %vm9189_vm5, %v5057_v3, %v5058_v31  ;;  %v10222_v45 = vsel %vm9189_vm5, %v6662_v54, %v5062_v23  ;;  %v8220_v34 = vld [vmem:[#allocation7 + $0x28] sm:$0xff]   ;;  %v6596_v7 = vld [vmem:[%s8805_s13 + $0xa8] sm:$0xf] }
 0x1a4   : > { %7698 = vmatprep.subr.bf16.mxu0 %v10129_v11  ;;  %10830 = vst [vmem:[#allocation47_spill] sm:$0xff] %v10207_v33  ;;  %v10212_v46 = vld [vmem:[%s8805_s13 + $0xd4] sm:$0x1]  ;;  %v5064_v61 = vrot.slane %v5062_v23, 4  ;;  %v10230_v60 = vsel %vm9189_vm5, %v6663_v21, %v5069_v14  ;;  %v5071_v58 = vrot.slane %v5069_v14, 4  ;;  %v10831_v54 = vshrl.u32 %v9955_v38, 16 }
 0x1a5   : > { %7507 = vmatpush3.bf16.msra.mxu1 %v8212_v49  ;;  %v5072_v3 = vrot.slane %v10212_v46, 5  ;;  %v4457_v31 = vshrl.u32 %v6593_v62, 16  ;;  %v4460_v33 = vshll.u32 %v6593_v62, 16  ;;  %v10832_v21 = vor.u32 %v9978_v40, %v9976_v44  ;;  %v10854_v17 = vld [vmem:[#allocation35_spill] sm:$0xff] }
 0x1a6   : > { %7508 = vmatprep.subr.bf16.mxu1 %v10158_v50  ;;  %v4448_v23 = vrot.slane %v10831_v54, 4  ;;  %v10238_v29 = vsel %vm9189_vm5, %v5064_v61, %v5065_v9  ;;  %v4466_v14 = vshll.u32 %v10105_v35, 16  ;;  %v4481_v62 = vshrl.u32 %v6596_v7, 16 }
 0x1a7   : > { %7429 = vmatmul.mubr.bf16.gmra.mrb[8].mxu1 %v8206_v1  ;;  %7699 = vmatpush3.bf16.msra.mxu0 %v10129_v11  ;;  %v4426_v49 = vrot.slane %v10832_v21, 4  ;;  %v8219_v1 = vld [vmem:[#allocation5 + $0x228] sm:$0xff]   ;;  %v6678_v38 = vcombine.low %v10222_v45, %v10238_v29  ;;  %v10248_v11 = vsel %vm9189_vm5, %v5071_v58, %v5072_v3  ;;  %v4484_v9 = vshll.u32 %v6596_v7, 16  ;;  %v8224_v7 = vld [vmem:[#allocation7 + $0x30] sm:$0xff]  }
 0x1a8   : > { %7432 = vmatprep.mubr.bf16.mxu1 %v8209_v42  ;;  %7700 = vmatprep.subr.bf16.mxu0 %v8215_v43  ;;  %v4470_v42 = vshrl.u32 %v10105_v35, 16  ;;  %v4407_v61 = vsel %vm8825_vm2, %v9990_v47, %v9992_v32  ;;  %v4439_v58 = vor.u32 %v10005_v30, %v9999_v15  ;;  %v4494_v35 = vshrl.u32 %v10132_v0, 16  ;;  %v8210_v3 = vld [vmem:[%s8805_s13 + $0x60] sm:$0xff]   ;;  %v8213_v32 = vld [vmem:[%s8805_s13 + $0x6c] sm:$0xff]  }
 0x1a9   : > { %7509 = vmatpush3.bf16.msra.mxu1 %v10158_v50  ;;  %v4490_v50 = vshll.u32 %v10132_v0, 16  ;;  %v4452_v54 = vshll.u32 %v10102_v36, 16  ;;  %v4459_v21 = vrot.slane %v4457_v31, 4  ;;  %v4462_v40 = vrot.slane %v4460_v33, 5  ;;  %v8223_v36 = vld [vmem:[#allocation5 + $0x230] sm:$0xff]  }
 0x1aa   : > { %7669 = vmatmul.mubr.bf16.gmra.mrb[8].mxu0 %v9968_v20  ;;  %7510 = vmatprep.subr.bf16.mxu1 %v8220_v34  ;;  %v4449_v20 = vor.u32 %v4448_v23, %v10012_v41  ;;  %v10833_v47 = vsel %vm8825_vm2, %v9957_v10, %v9950_v8  ;;  %v10834_v0 = vsel %vm8825_vm2, %v9939_v55, %v9887_v56  ;;  %v10285_v8 = vrot.slane %v4466_v14, 5  ;;  %v6599_v31 = vld [vmem:[%s8805_s13 + $0xb4] sm:$0xf] }
 0x1ab   : > { %7672 = vmatprep.mubr.bf16.mxu0 %v9970_v37  ;;  %7701 = vmatpush3.bf16.msra.mxu0 %v8215_v43  ;;  %v6615_v37 = vcombine.low %v10834_v0, %v10833_v47  ;;  %v4421_v15 = vsel %vm8825_vm2, %v9995_v28, %v9976_v44  ;;  %v4431_v30 = vsel %vm8825_vm2, %v4426_v49, %v9997_v26  ;;  %v4472_v10 = vrot.slane %v4470_v42, 4  ;;  %v8228_v26 = vld [vmem:[#allocation7 + $0x38] sm:$0xff]  }
 0x1ac   : > { %7702 = vmatprep.subr.bf16.mxu0 %v8219_v1  ;;  %v4483_v43 = vrot.slane %v4481_v62, 4  ;;  %v4486_v56 = vrot.slane %v4484_v9, 5  ;;  %v10835_v55 = vsel %vm8825_vm2, %v9959_v2, %v9910_v18  ;;  %v4440_v23 = vrot.slane %v4439_v58, 4  ;;  %v8227_v18 = vld [vmem:[#allocation5 + $0x238] sm:$0xff]  }
 0x1ad   : > { %7511 = vmatpush3.bf16.msra.mxu1 %v8220_v34  ;;  %v6616_v33 = vcombine.low %v10835_v55, %v4407_v61  ;;  %v10292_v44 = vrot.slane %v4490_v50, 5  ;;  %v4496_v28 = vrot.slane %v4494_v35, 4  ;;  %v4450_v49 = vrot.slane %v4449_v20, 4  ;;  %v6602_v50 = vld [vmem:[%s8805_s13 + $0xc0] sm:$0xf] }
 0x1ae   : > { %7512 = vmatprep.subr.bf16.mxu1 %v8224_v7  ;;  %v4454_v14 = vrot.slane %v4452_v54, 5  ;;  %v4463_v34 = vor.u32 %v4462_v40, %v4459_v21  ;;  %v4476_v42 = vshll.u32 %v10115_v63, 16  ;;  %v6617_v62 = vcombine.low %v4421_v15, %v4431_v30  ;;  %v8217_v21 = vld [vmem:[%s8805_s13 + $0x84] sm:$0xff]  }
 0x1af   : > { %7433 = vmatmul.mubr.bf16.gmra.mrb[12].mxu1 %v8210_v3  ;;  %7703 = vmatpush3.bf16.msra.mxu0 %v8219_v1  ;;  %v4473_v2 = vor.u32 %v4472_v10, %v10285_v8  ;;  %v4487_v9 = vor.u32 %v4486_v56, %v4483_v43  ;;  %v4500_v61 = vshll.u32 %v10146_v16, 16  ;;  %v4505_v58 = vshrl.u32 %v6599_v31, 16  ;;  %v8214_v3 = vld [vmem:[%s8805_s13 + $0x78] sm:$0xff]  }
 0x1b0   : > { %7436 = vmatprep.mubr.bf16.mxu1 %v8213_v32  ;;  %7704 = vmatprep.subr.bf16.mxu0 %v8223_v36  ;;  %v4497_v40 = vor.u32 %v4496_v28, %v10292_v44  ;;  %v4508_v35 = vshll.u32 %v6599_v31, 16  ;;  %v4514_v63 = vshll.u32 %v10149_v4, 16  ;;  %v4518_v1 = vshrl.u32 %v10149_v4, 16  ;;  %v6605_v31 = vld [vmem:[%s8805_s13 + $0xcc] sm:$0xf] }
 0x1b1   : > { %7513 = vmatpush3.bf16.msra.mxu1 %v8224_v7  ;;  %v4445_v20 = vsel %vm8825_vm2, %v4440_v23, %v10012_v41  ;;  %v4455_v16 = vsel %vm8825_vm2, %v4450_v49, %v4454_v14  ;;  %v4464_v7 = vrot.slane %v4463_v34, 4  ;;  %v4478_v54 = vrot.slane %v4476_v42, 5 }
 0x1b2   : > { %7673 = vmatmul.mubr.bf16.gmra.mrb[12].mxu0 %v6615_v37  ;;  %7514 = vmatprep.subr.bf16.mxu1 %v8228_v26  ;;  %v4529_v47 = vshrl.u32 %v6602_v50, 16  ;;  %v4532_v0 = vshll.u32 %v6602_v50, 16  ;;  %v4538_v37 = vshll.u32 %v10181_v52, 16  ;;  %v4542_v4 = vshrl.u32 %v10181_v52, 16 }
 0x1b3   : > { %7676 = vmatprep.mubr.bf16.mxu0 %v6616_v33  ;;  %7705 = vmatpush3.bf16.msra.mxu0 %v8223_v36  ;;  %v4474_v32 = vrot.slane %v4473_v2, 4  ;;  %v4488_v15 = vrot.slane %v4487_v9, 4  ;;  %v4502_v30 = vrot.slane %v4500_v61, 5  ;;  %v4507_v10 = vrot.slane %v4505_v58, 4  ;;  %v8218_v9 = vld [vmem:[%s8805_s13 + $0x90] sm:$0xff]  }
 0x1b4   : > { %7706 = vmatprep.subr.bf16.mxu0 %v8227_v18  ;;  %v4498_v41 = vrot.slane %v4497_v40, 4  ;;  %v4510_v43 = vrot.slane %v4508_v35, 5  ;;  %v4516_v56 = vrot.slane %v4514_v63, 5  ;;  %v4520_v55 = vrot.slane %v4518_v1, 4  ;;  %v8221_v40 = vld [vmem:[%s8805_s13 + $0x9c] sm:$0xff]  }
 0x1b5   : > { %7515 = vmatpush3.bf16.msra.mxu1 %v8228_v26  ;;  %v6618_v36 = vcombine.low %v4445_v20, %v4455_v16  ;;  %v4531_v33 = vrot.slane %v4529_v47, 4  ;;  %v4534_v23 = vrot.slane %v4532_v0, 5  ;;  %v4540_v28 = vrot.slane %v4538_v37, 5  ;;  %v8222_v37 = vld [vmem:[%s8805_s13 + $0xa8] sm:$0xff]  }
 0x1b6   : > { %v4544_v52 = vrot.slane %v4542_v4, 4  ;;  %v4469_v49 = vsel %vm8825_vm2, %v4464_v7, %v10285_v8  ;;  %v4479_v26 = vsel %vm8825_vm2, %v4474_v32, %v4478_v54  ;;  %v4524_v14 = vshll.u32 %v10169_v25, 16 }
 0x1b7   : > { %7437 = vmatmul.mubr.bf16.gmra.mrb[16].mxu1 %v8214_v3  ;;  %7707 = vmatpush3.bf16.msra.mxu0 %v8227_v18  ;;  %v4493_v34 = vsel %vm8825_vm2, %v4488_v15, %v10292_v44  ;;  %v4503_v42 = vsel %vm8825_vm2, %v4498_v41, %v4502_v30  ;;  %v4511_v18 = vor.u32 %v4510_v43, %v4507_v10  ;;  %v4553_v61 = vshrl.u32 %v6605_v31, 16  ;;  %v8225_v10 = vld [vmem:[%s8805_s13 + $0xb4] sm:$0xff]  }
 0x1b8   : > { %7440 = vmatprep.mubr.bf16.mxu1 %v8217_v21  ;;  %v4521_v2 = vor.u32 %v4520_v55, %v4516_v56  ;;  %v4556_v58 = vshll.u32 %v6605_v31, 16  ;;  %v4562_v8 = vshll.u32 %v10196_v27, 16  ;;  %v4566_v50 = vshrl.u32 %v10196_v27, 16  ;;  %v8292_v55 = vld [vmem:[%s8805_s13 + $0x1c] sm:$0xf] }
 0x1b9   : > { %v4535_v25 = vor.u32 %v4534_v23, %v4531_v33  ;;  %v4548_v35 = vshll.u32 %v10184_v48, 16  ;;  %v6619_v63 = vcombine.low %v4469_v49, %v4479_v26  ;;  %v6620_v44 = vcombine.low %v4493_v34, %v4503_v42  ;;  %v8226_v34 = vld [vmem:[%s8805_s13 + $0xc0] sm:$0xff]  }
 0x1ba   : > { %7677 = vmatmul.mubr.bf16.gmra.mrb[16].mxu0 %v6617_v62  ;;  %v4545_v62 = vor.u32 %v4544_v52, %v4540_v28  ;;  %v4512_v1 = vrot.slane %v4511_v18, 4  ;;  %v4522_v3 = vrot.slane %v4521_v2, 4  ;;  %v4526_v20 = vrot.slane %v4524_v14, 5  ;;  %v8293_v14 = vld [vmem:[%s8805_s13 + $0x20] sm:$0x1] }
 0x1bb   : > { %7680 = vmatprep.mubr.bf16.mxu0 %v6618_v36  ;;  %v4555_v16 = vrot.slane %v4553_v61, 4  ;;  %v4558_v7 = vrot.slane %v4556_v58, 5  ;;  %v4564_v54 = vrot.slane %v4562_v8, 5  ;;  %v4568_v21 = vrot.slane %v4566_v50, 4  ;;  %v6632_v36 = vld [vmem:[%s8805_s13 + $0x18] sm:$0xe] }
 0x1bc   : > { %v4536_v27 = vrot.slane %v4535_v25, 4  ;;  %v4546_v47 = vrot.slane %v4545_v62, 4  ;;  %v4550_v0 = vrot.slane %v4548_v35, 5  ;;  %v4517_v48 = vsel %vm8825_vm2, %v4512_v1, %v4516_v56  ;;  %v8294_v2 = vld [vmem:[%s8805_s13 + $0x28] sm:$0xf] }
 0x1bd   : > { %v4527_v4 = vsel %vm8825_vm2, %v4522_v3, %v4526_v20  ;;  %v4559_v32 = vor.u32 %v4558_v7, %v4555_v16  ;;  %v4569_v15 = vor.u32 %v4568_v21, %v4564_v54  ;;  %v4572_v30 = vshll.u32 %v10212_v46, 16  ;;  %v6633_v8 = vld [vmem:[%s8805_s13 + $0x24] sm:$0xe]  ;;  %v8295_v35 = vld [vmem:[%s8805_s13 + $0x2c] sm:$0x1]  ;;  %s8388_s13 = scalar_lea.vmem %s8387_s17, 4096 }
 0x1be   : > { %v4541_v41 = vsel %vm8825_vm2, %v4536_v27, %v4540_v28  ;;  %v4551_v43 = vsel %vm8825_vm2, %v4546_v47, %v4550_v0  ;;  %v4964_v56 = vrot.slane %v8292_v55, 5  ;;  %v6621_v33 = vcombine.low %v4517_v48, %v4527_v4  ;;  %v10837_v20 = vld [vmem:[#allocation20_spill] sm:$0xff]  ;;  %v10838_v16 = vld [vmem:[#allocation21_spill] sm:$0xff]  ;;  %v10841_v21 = vld [vmem:[#allocation23_spill] sm:$0xff]  ;;  %p8390_p12 = scmp.lt.s32.totalorder %s8388_s13, %s8382_s12 }
 0x1bf   : > { %7441 = vmatmul.mubr.bf16.gmra.mrb[20].mxu1 %v8218_v9  ;;  %v6622_v23 = vcombine.low %v4541_v41, %v4551_v43  ;;  %v4560_v52 = vrot.slane %v4559_v32, 4  ;;  %v4570_v31 = vrot.slane %v4569_v15, 4  ;;  %v4574_v46 = vrot.slane %v4572_v30, 5  ;;  %v10844_v47 = vld [vmem:[#allocation24_spill] sm:$0xff]  ;;  %v10845_v0 = vld [vmem:[#allocation25_spill] sm:$0xff]  ;;  %v10862_v41 = vld [vmem:[#allocation42_spill] sm:$0xff] }
 0x1c0   : > { %7444 = vmatprep.mubr.bf16.mxu1 %v8221_v40  ;;  %v6648_v49 = vrot.slane %v6632_v36, 9  ;;  %v4966_v26 = vrot.slane %v4964_v56, 4  ;;  %v4967_v28 = vrot.slane %v8293_v14, 5  ;;  %v4971_v9 = vrot.slane %v8294_v2, 5  ;;  %v10852_v4 = vld [vmem:[#allocation36_spill] sm:$0xff]  ;;  %v10866_v36 = vld [vmem:[#allocation31_spill] sm:$0xff]  ;;  %p8391_p0 = por %p8390_p12, %p8389_p7 }
 0x1c1   : > { %v4565_v42 = vsel %vm8825_vm2, %v4560_v52, %v4564_v54  ;;  %v4575_v18 = vsel %vm8825_vm2, %v4570_v31, %v4574_v46  ;;  %v6649_v25 = vrot.slane %v6633_v8, 9  ;;  %v10839_v7 = vcombine.low %v10016_v12, %v10027_v53  ;;  %v10840_v54 = vld [vmem:[#allocation22_spill] sm:$0xff]  ;;  %v10855_v32 = vld [vmem:[#allocation40_spill] sm:$0xff]  ;;  %v10871_v46 = vld [vmem:[#allocation47_spill] sm:$0xff] }
 0x1c2   : > { %7681 = vmatmul.mubr.bf16.gmra.mrb[20].mxu0 %v6619_v63  ;;  %v4965_v61 = vsel %vm9189_vm5, %v6648_v49, %v4964_v56  ;;  %v4968_v58 = vsel %vm9189_vm5, %v4966_v26, %v4967_v28  ;;  %v6623_v50 = vcombine.low %v4565_v42, %v4575_v18  ;;  %v4973_v62 = vrot.slane %v4971_v9, 4  ;;  %v10847_v53 = vld [vmem:[#allocation38_spill] sm:$0xff]  ;;  %v10857_v30 = vld [vmem:[#allocation28_spill] sm:$0xff]  ;;  %v10874_v14 = vld [vmem:[#allocation33_spill] sm:$0xff]  ;;  %p8392_p2 = pnand %p8391_p0, %p8385_p5 }
 0x1c3   : > { %7684 = vmatprep.mubr.bf16.mxu0 %v6620_v44  ;;  %v6664_v40 = vcombine.low %v4965_v61, %v4968_v58  ;;  %v4974_v63 = vrot.slane %v8295_v35, 5  ;;  %v10836_v44 = vld [vmem:[#allocation19_spill] sm:$0xff]  ;;  %v4972_v39 = vsel %vm9189_vm5, %v6649_v25, %v4971_v9  ;;  %v10842_v27 = vcombine.low %v10022_v51, %v10038_v24  ;;  %v10851_v24 = vld [vmem:[#allocation37_spill] sm:$0xff]  ;;  %v10863_v43 = vld [vmem:[#allocation44_spill] sm:$0xff] }
 0x1c4   : > { %v10846_v12 = vcombine.low %v10052_v5, %v10066_v6  ;;  %v10848_v48 = vcombine.low %v10070_v19, %v10847_v53  ;;  %v10850_v51 = vld [vmem:[#allocation27_spill] sm:$0xff]  ;;  %v10853_v59 = vcombine.low %v10851_v24, %v10852_v4  ;;  %v10856_v15 = vcombine.low %v10854_v17, %v10855_v32  ;;  %v10858_v5 = vld [vmem:[#allocation29_spill] sm:$0xff]  ;;  %v10865_v56 = vld [vmem:[#allocation30_spill] sm:$0xff] }
 0x1c5   : > { %v4975_v1 = vsel %vm9189_vm5, %v4973_v62, %v4974_v63  ;;  %v10859_v6 = vld [vmem:[#allocation39_spill] sm:$0xff]  ;;  %v10864_v55 = vcombine.low %v10862_v41, %v10863_v43  ;;  %v10870_v31 = vld [vmem:[#allocation46_spill] sm:$0xff]  ;;  %v10873_v26 = vld [vmem:[#allocation32_spill] sm:$0xff]  ;;  %v10875_v28 = vcombine.low %v10200_v22, %v10218_v57  ;;  %v10877_v42 = vcombine.low %v10230_v60, %v10248_v11 }
 0x1c6   : > { %v6665_v3 = vcombine.low %v4972_v39, %v4975_v1  ;;  %v10872_v49 = vcombine.low %v10870_v31, %v10871_v46 }
 0x1c7   : > { %7445 = vmatmul.mubr.bf16.gmra.mrb[24].mxu1 %v8222_v37  ;;  %v10849_v37 = vld [vmem:[#allocation26_spill] sm:$0xff] }
 0x1c8   : > { %7448 = vmatprep.mubr.bf16.mxu1 %v8225_v10  ;;  %v10860_v10 = vld [vmem:[#allocation41_spill] sm:$0xff] }
 0x1c9   : > { %v10861_v19 = vcombine.low %v10859_v6, %v10860_v10 }
 0x1ca   : > { %7685 = vmatmul.mubr.bf16.gmra.mrb[24].mxu0 %v6621_v33  ;;  %v10867_v33 = vld [vmem:[#allocation43_spill] sm:$0xff] }
 0x1cb   : > { %7688 = vmatprep.mubr.bf16.mxu0 %v6622_v23  ;;  %v10868_v23 = vld [vmem:[#allocation45_spill] sm:$0xff] }
 0x1cc   : > { %v10869_v52 = vcombine.low %v10867_v33, %v10868_v23 }
 0x1cf   : > { %7449 = vmatmul.mubr.bf16.gmra.mrb[28].mxu1 %v8226_v34  ;;  %v10876_v34 = vld [vmem:[#allocation34_spill] sm:$0xff] }
 0x1d0   : > { %7516 = vmatprep.mubr.bf16.mxu1 %v10836_v44 }
 0x1d2   : > { %7689 = vmatmul.mubr.bf16.gmra.mrb[28].mxu0 %v6623_v50 }
 0x1d3   : > { %7708 = vmatprep.mubr.bf16.mxu0 %v6664_v40 }
 0x1d7   : > { %7517 = vmatmul.mubr.bf16.vlgmr.msra.gmra.mrb[32].mxu1 %v10837_v20 }
 0x1d8   : > { %7520 = vmatprep.mubr.bf16.mxu1 %v10838_v16 }
 0x1da   : > { %7709 = vmatmul.mubr.bf16.vlgmr.msra.gmra.mrb[0].mxu0 %v6665_v3 }
 0x1db   : > { %7712 = vmatprep.mubr.bf16.mxu0 %v10839_v7 }
 0x1df   : > { %7521 = vmatmul.mubr.bf16.gmra.mrb[36].mxu1 %v10840_v54 }
 0x1e0   : > { %7524 = vmatprep.mubr.bf16.mxu1 %v10841_v21 }
 0x1e2   : > { %7713 = vmatmul.mubr.bf16.gmra.mrb[4].mxu0 %v10842_v27 }
 0x1e3   : > { %7716 = vmatprep.mubr.bf16.mxu0 %v10843_v13 }
 0x1e7   : > { %7525 = vmatmul.mubr.bf16.gmra.mrb[40].mxu1 %v10844_v47 }
 0x1e8   : > { %7528 = vmatprep.mubr.bf16.mxu1 %v10845_v0 }
 0x1ea   : > { %7717 = vmatmul.mubr.bf16.gmra.mrb[8].mxu0 %v10846_v12 }
 0x1eb   : > { %7720 = vmatprep.mubr.bf16.mxu0 %v10848_v48 }
 0x1ef   : > { %7529 = vmatmul.mubr.bf16.gmra.mrb[44].mxu1 %v10849_v37 }
 0x1f0   : > { %7532 = vmatprep.mubr.bf16.mxu1 %v10850_v51 }
 0x1f2   : > { %7721 = vmatmul.mubr.bf16.gmra.mrb[12].mxu0 %v10853_v59 }
 0x1f3   : > { %7724 = vmatprep.mubr.bf16.mxu0 %v10856_v15 }
 0x1f7   : > { %7533 = vmatmul.mubr.bf16.gmra.mrb[48].mxu1 %v10857_v30 }
 0x1f8   : > { %7536 = vmatprep.mubr.bf16.mxu1 %v10858_v5 }
 0x1fa   : > { %7725 = vmatmul.mubr.bf16.gmra.mrb[16].mxu0 %v10861_v19 }
 0x1fb   : > { %7728 = vmatprep.mubr.bf16.mxu0 %v10864_v55 }
 0x1ff   : > { %7537 = vmatmul.mubr.bf16.gmra.mrb[52].mxu1 %v10865_v56 }
 0x200   : > { %7540 = vmatprep.mubr.bf16.mxu1 %v10866_v36 }
 0x202   : > { %7729 = vmatmul.mubr.bf16.gmra.mrb[20].mxu0 %v10869_v52 }
 0x203   : > { %7732 = vmatprep.mubr.bf16.mxu0 %v10872_v49 }
 0x207   : > { %7541 = vmatmul.mubr.bf16.gmra.mrb[56].mxu1 %v10873_v26 }
 0x208   : > { %7544 = vmatprep.mubr.bf16.mxu1 %v10874_v14 }
 0x20a   : > { %7733 = vmatmul.mubr.bf16.gmra.mrb[24].mxu0 %v10875_v28 }
 0x20b   : > { %7736 = vmatprep.mubr.bf16.mxu0 %v6678_v38 }
 0x20f   : > { %7545 = vmatmul.mubr.bf16.gmra.mrb[60].mxu1 %v10876_v34 }
 0x212   : > { %7737 = vmatmul.mubr.bf16.gmra.mrb[28].mxu0 %v10877_v42 }
 0x26a   : > { %v7422_v18 = vpop.f32.mrb[0].mxu1 }
 0x26b   : > { %v2121_v2 = vpop.f32.mrb[1].mxu1 }
 0x26c   : > { %v7423_v9 = vpop.f32.mrb[2].mxu1 }
 0x26d   : > { %v2124_v61 = vpop.f32.mrb[3].mxu1 }
 0x272   : > { %v10416_v58 = vpop.f32.mrb[4].mxu1 }
 0x273   : > { %v10418_v8 = vpop.f32.mrb[5].mxu1 }
 0x274   : > { %v10420_v22 = vpop.f32.mrb[6].mxu1 }
 0x275   : > { %v10422_v57 = vpop.f32.mrb[7].mxu1 }
 0x27a   : > { %v10424_v45 = vpop.f32.mrb[8].mxu1 }
 0x27b   : > { %v10426_v29 = vpop.f32.mrb[9].mxu1 }
 0x27c   : > { %v10428_v38 = vpop.f32.mrb[10].mxu1 }
 0x27d   : > { %v10430_v60 = vpop.f32.mrb[11].mxu1 }
 0x282   : > { %v10432_v11 = vpop.f32.mrb[12].mxu1 }
 0x283   : > { %v10434_v50 = vpop.f32.mrb[13].mxu1 }
 0x284   : > { %v10436_v40 = vpop.f32.mrb[14].mxu1 }
 0x285   : > { %v10438_v25 = vpop.f32.mrb[15].mxu1 }
 0x28a   : > { %v10440_v62 = vpop.f32.mrb[16].mxu1 }
 0x28b   : > { %v10442_v35 = vpop.f32.mrb[17].mxu1 }
 0x28c   : > { %v10444_v63 = vpop.f32.mrb[18].mxu1 }
 0x28d   : > { %v10446_v44 = vpop.f32.mrb[19].mxu1 }
 0x292   : > { %v10448_v39 = vpop.f32.mrb[20].mxu1 }
 0x293   : > { %v10450_v1 = vpop.f32.mrb[21].mxu1 }
 0x294   : > { %v10452_v3 = vpop.f32.mrb[22].mxu1 }
 0x295   : > { %v10454_v20 = vpop.f32.mrb[23].mxu1 }
 0x29a   : > { %v10456_v16 = vpop.f32.mrb[24].mxu1 }
 0x29b   : > { %v10458_v7 = vpop.f32.mrb[25].mxu1 }
 0x29c   : > { %v10460_v54 = vpop.f32.mrb[26].mxu1 }
 0x29d   : > { %v10462_v21 = vpop.f32.mrb[27].mxu1 }
 0x2a2   : > { %v10464_v27 = vpop.f32.mrb[28].mxu1 }
 0x2a3   : > { %v10466_v13 = vpop.f32.mrb[29].mxu1 }
 0x2a4   : > { %v10468_v47 = vpop.f32.mrb[30].mxu1 }
 0x2a5   : > { %v10470_v0 = vpop.f32.mrb[31].mxu1 }
 0x2aa   : > { %v7518_v12 = vpop.f32.mrb[32].mxu1 }
 0x2ab   : > { %v3132_v53 = vpop.f32.mrb[33].mxu1  ;;  %v5704_v10 = vmul.f32 %v7518_v12, %v7518_v12 }
 0x2ac   : > { %v5702_v48 = vmul.f32 %v3132_v53, %v3132_v53  ;;  %v7519_v37 = vpop.f32.mrb[34].mxu1 }
 0x2ad   : > { %v7710_v51 = vpop.f32.mrb[0].mxu0  ;;  %v6918_v24 = vpack.c.bf16 %v7519_v37, %v7518_v12  ;;  %v3135_v4 = vpop.f32.mrb[35].mxu1  ;;  %v5705_v36 = vmul.f32 %v7519_v37, %v7519_v37 }
 0x2ae   : > { %v7740_v59 = vadd.f32 %v7710_v51, %v7422_v18  ;;  %v5237_v17 = vpop.f32.mrb[1].mxu0  ;;  %v5664_v32 = vadd.f32 %v3135_v4, %v3132_v53  ;;  %v5703_v15 = vmul.f32 %v3135_v4, %v3135_v4  ;;  %v6913_v30 = vpack.c.bf16 %v3135_v4, %v3132_v53 }
 0x2af   : > { %v7741_v5 = vadd.f32 %v5237_v17, %v2121_v2  ;;  %7005 = vst [vmem:[%s10475_s7 + $0x8] sm:$0xff] %v6918_v24   ;;  %v7711_v6 = vpop.f32.mrb[2].mxu0 }
 0x2b0   : > { %v7742_v19 = vadd.f32 %v7711_v6, %v7423_v9  ;;  %v5665_v41 = vadd.f32 %v7518_v12, %v5664_v32  ;;  %v5734_v43 = vadd.f32 %v5703_v15, %v5702_v48  ;;  %6914 = vst [vmem:[%s10475_s7] sm:$0xff] %v6913_v30   ;;  %v5240_v55 = vpop.f32.mrb[3].mxu0  ;;  %v5436_v34 = vmul.f32 %v7740_v59, %v7740_v59 }
 0x2b1   : > { %v7743_v56 = vadd.f32 %v5240_v55, %v2124_v61  ;;  %v5434_v46 = vmul.f32 %v7741_v5, %v7741_v5 }
 0x2b2   : > { %v6838_v33 = vpack.c.bf16 %v7742_v19, %v7740_v59  ;;  %v5735_v23 = vadd.f32 %v5734_v43, %v5704_v10  ;;  %v7522_v52 = vpop.f32.mrb[36].mxu1  ;;  %v5666_v31 = vadd.f32 %v7519_v37, %v5665_v41  ;;  %v5437_v61 = vmul.f32 %v7742_v19, %v7742_v19 }
 0x2b3   : > { %v5396_v49 = vadd.f32 %v7743_v56, %v7741_v5  ;;  %v5435_v26 = vmul.f32 %v7743_v56, %v7743_v56  ;;  %v6833_v14 = vpack.c.bf16 %v7743_v56, %v7741_v5  ;;  %v3148_v28 = vpop.f32.mrb[37].mxu1 }
 0x2b4   : > { %6990 = vst [vmem:[%s10481_s11 + $0x8] sm:$0xff] %v6838_v33   ;;  %v5667_v42 = vadd.f32 %v5666_v31, %v3148_v28  ;;  %v5706_v18 = vmul.f32 %v3148_v28, %v3148_v28  ;;  %v5736_v2 = vadd.f32 %v5735_v23, %v5705_v36  ;;  %v7523_v9 = vpop.f32.mrb[38].mxu1 }
 0x2b5   : > { %v5397_v12 = vadd.f32 %v7740_v59, %v5396_v49  ;;  %v5466_v53 = vadd.f32 %v5435_v26, %v5434_v46  ;;  %6834 = vst [vmem:[%s10481_s11] sm:$0xff] %v6833_v14   ;;  %v7714_v48 = vpop.f32.mrb[4].mxu0  ;;  %v6928_v37 = vpack.c.bf16 %v7523_v9, %v7522_v52  ;;  %v3151_v51 = vpop.f32.mrb[39].mxu1  ;;  %v5708_v59 = vmul.f32 %v7522_v52, %v7522_v52 }
 0x2b6   : > { %v7744_v24 = vadd.f32 %v7714_v48, %v10416_v58  ;;  %v5737_v4 = vadd.f32 %v5736_v2, %v5706_v18  ;;  %v5253_v17 = vpop.f32.mrb[5].mxu0  ;;  %v5668_v32 = vadd.f32 %v5667_v42, %v3151_v51  ;;  %v5707_v15 = vmul.f32 %v3151_v51, %v3151_v51 }
 0x2b7   : > { %v5467_v30 = vadd.f32 %v5466_v53, %v5436_v34  ;;  %v7745_v5 = vadd.f32 %v5253_v17, %v10418_v8  ;;  %v5398_v6 = vadd.f32 %v7742_v19, %v5397_v12  ;;  %7007 = vst [vmem:[%s10475_s7 + $0x18] sm:$0xff] %v6928_v37   ;;  %v7715_v10 = vpop.f32.mrb[6].mxu0  ;;  %v6923_v41 = vpack.c.bf16 %v3151_v51, %v3148_v28 }
 0x2b8   : > { %v7746_v43 = vadd.f32 %v7715_v10, %v10420_v22  ;;  %v5669_v55 = vadd.f32 %v7522_v52, %v5668_v32  ;;  %v5738_v56 = vadd.f32 %v5737_v4, %v5707_v15  ;;  %v5256_v36 = vpop.f32.mrb[7].mxu0  ;;  %v5709_v46 = vmul.f32 %v7523_v9, %v7523_v9 }
 0x2b9   : > { %v5399_v33 = vadd.f32 %v7745_v5, %v5398_v6  ;;  %v5438_v58 = vmul.f32 %v7745_v5, %v7745_v5  ;;  %v5468_v23 = vadd.f32 %v5467_v30, %v5437_v61  ;;  %7006 = vst [vmem:[%s10475_s7 + $0x10] sm:$0xff] %v6923_v41   ;;  %v7747_v31 = vadd.f32 %v5256_v36, %v10422_v57 }
 0x2ba   : > { %v6848_v49 = vpack.c.bf16 %v7746_v43, %v7744_v24  ;;  %v5739_v8 = vadd.f32 %v5738_v56, %v5708_v59  ;;  %v7526_v19 = vpop.f32.mrb[40].mxu1  ;;  %v5670_v26 = vadd.f32 %v7523_v9, %v5669_v55  ;;  %v5440_v42 = vmul.f32 %v7744_v24, %v7744_v24 }
 0x2bb   : > { %v5469_v14 = vadd.f32 %v5468_v23, %v5438_v58  ;;  %v5400_v28 = vadd.f32 %v7747_v31, %v5399_v33  ;;  %v5439_v34 = vmul.f32 %v7747_v31, %v7747_v31  ;;  %v6843_v22 = vpack.c.bf16 %v7747_v31, %v7745_v5  ;;  %v3164_v52 = vpop.f32.mrb[41].mxu1 }
 0x2bc   : > { %6992 = vst [vmem:[%s10481_s11 + $0x18] sm:$0xff] %v6848_v49   ;;  %v5671_v18 = vadd.f32 %v5670_v26, %v3164_v52  ;;  %v5710_v2 = vmul.f32 %v3164_v52, %v3164_v52  ;;  %v5740_v12 = vadd.f32 %v5739_v8, %v5709_v46  ;;  %v7527_v61 = vpop.f32.mrb[42].mxu1  ;;  %v5441_v53 = vmul.f32 %v7746_v43, %v7746_v43 }
 0x2bd   : > { %v5401_v57 = vadd.f32 %v7744_v24, %v5400_v28  ;;  %v5470_v48 = vadd.f32 %v5469_v14, %v5439_v34  ;;  %6991 = vst [vmem:[%s10481_s11 + $0x10] sm:$0xff] %v6843_v22   ;;  %v7718_v37 = vpop.f32.mrb[8].mxu0  ;;  %v6938_v51 = vpack.c.bf16 %v7527_v61, %v7526_v19  ;;  %v3167_v4 = vpop.f32.mrb[43].mxu1  ;;  %v5712_v24 = vmul.f32 %v7526_v19, %v7526_v19 }
 0x2be   : > { %v7748_v9 = vadd.f32 %v7718_v37, %v10424_v45  ;;  %v5741_v17 = vadd.f32 %v5740_v12, %v5710_v2  ;;  %v5269_v32 = vpop.f32.mrb[9].mxu0  ;;  %v5672_v15 = vadd.f32 %v5671_v18, %v3167_v4  ;;  %v5711_v30 = vmul.f32 %v3167_v4, %v3167_v4 }
 0x2bf   : > { %v5471_v5 = vadd.f32 %v5470_v48, %v5440_v42  ;;  %v7749_v6 = vadd.f32 %v5269_v32, %v10426_v29  ;;  %v5402_v10 = vadd.f32 %v7746_v43, %v5401_v57  ;;  %7009 = vst [vmem:[%s10475_s7 + $0x28] sm:$0xff] %v6938_v51   ;;  %v7719_v41 = vpop.f32.mrb[10].mxu0  ;;  %v6933_v59 = vpack.c.bf16 %v3167_v4, %v3164_v52 }
 0x2c0   : > { %v7750_v55 = vadd.f32 %v7719_v41, %v10428_v38  ;;  %v5673_v56 = vadd.f32 %v7526_v19, %v5672_v15  ;;  %v5742_v36 = vadd.f32 %v5741_v17, %v5711_v30  ;;  %v5272_v33 = vpop.f32.mrb[11].mxu0  ;;  %v5713_v46 = vmul.f32 %v7527_v61, %v7527_v61 }
 0x2c1   : > { %v5403_v58 = vadd.f32 %v7749_v6, %v5402_v10  ;;  %v5442_v45 = vmul.f32 %v7749_v6, %v7749_v6  ;;  %v5472_v23 = vadd.f32 %v5471_v5, %v5441_v53  ;;  %7008 = vst [vmem:[%s10475_s7 + $0x20] sm:$0xff] %v6933_v59   ;;  %v7751_v31 = vadd.f32 %v5272_v33, %v10430_v60 }
 0x2c2   : > { %v6858_v49 = vpack.c.bf16 %v7750_v55, %v7748_v9  ;;  %v5743_v29 = vadd.f32 %v5742_v36, %v5712_v24  ;;  %v7530_v43 = vpop.f32.mrb[44].mxu1  ;;  %v5674_v8 = vadd.f32 %v7527_v61, %v5673_v56  ;;  %v5444_v34 = vmul.f32 %v7748_v9, %v7748_v9 }
 0x2c3   : > { %v5473_v26 = vadd.f32 %v5472_v23, %v5442_v45  ;;  %v5404_v14 = vadd.f32 %v7751_v31, %v5403_v58  ;;  %v5443_v28 = vmul.f32 %v7751_v31, %v7751_v31  ;;  %v6853_v38 = vpack.c.bf16 %v7751_v31, %v7749_v6  ;;  %v3180_v19 = vpop.f32.mrb[45].mxu1 }
 0x2c4   : > { %6994 = vst [vmem:[%s10481_s11 + $0x28] sm:$0xff] %v6858_v49   ;;  %v5675_v22 = vadd.f32 %v5674_v8, %v3180_v19  ;;  %v5714_v52 = vmul.f32 %v3180_v19, %v3180_v19  ;;  %v5744_v42 = vadd.f32 %v5743_v29, %v5713_v46  ;;  %v7531_v18 = vpop.f32.mrb[46].mxu1  ;;  %v5445_v2 = vmul.f32 %v7750_v55, %v7750_v55 }
 0x2c5   : > { %v5405_v60 = vadd.f32 %v7748_v9, %v5404_v14  ;;  %v5474_v12 = vadd.f32 %v5473_v26, %v5443_v28  ;;  %6993 = vst [vmem:[%s10481_s11 + $0x20] sm:$0xff] %v6853_v38   ;;  %v7722_v53 = vpop.f32.mrb[12].mxu0  ;;  %v6948_v57 = vpack.c.bf16 %v7531_v18, %v7530_v43  ;;  %v3183_v48 = vpop.f32.mrb[47].mxu1  ;;  %v5716_v9 = vmul.f32 %v7530_v43, %v7530_v43 }
 0x2c6   : > { %v7752_v61 = vadd.f32 %v7722_v53, %v10432_v11  ;;  %v5745_v37 = vadd.f32 %v5744_v42, %v5714_v52  ;;  %v5285_v51 = vpop.f32.mrb[13].mxu0  ;;  %v5676_v4 = vadd.f32 %v5675_v22, %v3183_v48  ;;  %v5715_v17 = vmul.f32 %v3183_v48, %v3183_v48 }
 0x2c7   : > { %v5475_v32 = vadd.f32 %v5474_v12, %v5444_v34  ;;  %v7753_v15 = vadd.f32 %v5285_v51, %v10434_v50  ;;  %v5406_v30 = vadd.f32 %v7750_v55, %v5405_v60  ;;  %7011 = vst [vmem:[%s10475_s7 + $0x38] sm:$0xff] %v6948_v57   ;;  %v7723_v5 = vpop.f32.mrb[14].mxu0  ;;  %v6943_v6 = vpack.c.bf16 %v3183_v48, %v3180_v19 }
 0x2c8   : > { %v7754_v10 = vadd.f32 %v7723_v5, %v10436_v40  ;;  %v5677_v41 = vadd.f32 %v7530_v43, %v5676_v4  ;;  %v5746_v59 = vadd.f32 %v5745_v37, %v5715_v17  ;;  %v5288_v24 = vpop.f32.mrb[15].mxu0  ;;  %v5717_v58 = vmul.f32 %v7531_v18, %v7531_v18 }
 0x2c9   : > { %v5407_v56 = vadd.f32 %v7753_v15, %v5406_v30  ;;  %v5446_v11 = vmul.f32 %v7753_v15, %v7753_v15  ;;  %v5476_v36 = vadd.f32 %v5475_v32, %v5445_v2  ;;  %7010 = vst [vmem:[%s10475_s7 + $0x30] sm:$0xff] %v6943_v6   ;;  %v7755_v33 = vadd.f32 %v5288_v24, %v10438_v25 }
 0x2ca   : > { %v6868_v45 = vpack.c.bf16 %v7754_v10, %v7752_v61  ;;  %v5747_v50 = vadd.f32 %v5746_v59, %v5716_v9  ;;  %v7534_v55 = vpop.f32.mrb[48].mxu1  ;;  %v5678_v23 = vadd.f32 %v7531_v18, %v5677_v41  ;;  %v5448_v43 = vmul.f32 %v7752_v61, %v7752_v61 }
 0x2cb   : > { %v5477_v31 = vadd.f32 %v5476_v36, %v5446_v11  ;;  %v5408_v46 = vadd.f32 %v7755_v33, %v5407_v56  ;;  %v5447_v49 = vmul.f32 %v7755_v33, %v7755_v33  ;;  %v6863_v40 = vpack.c.bf16 %v7755_v33, %v7753_v15  ;;  %v3196_v29 = vpop.f32.mrb[49].mxu1 }
 0x2cc   : > { %6996 = vst [vmem:[%s10481_s11 + $0x38] sm:$0xff] %v6868_v45   ;;  %v5679_v8 = vadd.f32 %v5678_v23, %v3196_v29  ;;  %v5718_v26 = vmul.f32 %v3196_v29, %v3196_v29  ;;  %v5748_v14 = vadd.f32 %v5747_v50, %v5717_v58  ;;  %v7535_v28 = vpop.f32.mrb[50].mxu1  ;;  %v5449_v38 = vmul.f32 %v7754_v10, %v7754_v10 }
 0x2cd   : > { %v5409_v25 = vadd.f32 %v7752_v61, %v5408_v46  ;;  %v5478_v19 = vadd.f32 %v5477_v31, %v5447_v49  ;;  %6995 = vst [vmem:[%s10481_s11 + $0x30] sm:$0xff] %v6863_v40   ;;  %v7726_v34 = vpop.f32.mrb[16].mxu0  ;;  %v6958_v22 = vpack.c.bf16 %v7535_v28, %v7534_v55  ;;  %v3199_v52 = vpop.f32.mrb[51].mxu1  ;;  %v5720_v61 = vmul.f32 %v7534_v55, %v7534_v55 }
 0x2ce   : > { %v7756_v42 = vadd.f32 %v7726_v34, %v10440_v62  ;;  %v5749_v18 = vadd.f32 %v5748_v14, %v5718_v26  ;;  %v5301_v2 = vpop.f32.mrb[17].mxu0  ;;  %v5680_v60 = vadd.f32 %v5679_v8, %v3199_v52  ;;  %v5719_v12 = vmul.f32 %v3199_v52, %v3199_v52 }
 0x2cf   : > { %v5479_v53 = vadd.f32 %v5478_v19, %v5448_v43  ;;  %v7757_v57 = vadd.f32 %v5301_v2, %v10442_v35  ;;  %v5410_v48 = vadd.f32 %v7754_v10, %v5409_v25  ;;  %7013 = vst [vmem:[%s10475_s7 + $0x48] sm:$0xff] %v6958_v22   ;;  %v7727_v37 = vpop.f32.mrb[18].mxu0  ;;  %v6953_v51 = vpack.c.bf16 %v3199_v52, %v3196_v29 }
 0x2d0   : > { %v7758_v4 = vadd.f32 %v7727_v37, %v10444_v63  ;;  %v5681_v17 = vadd.f32 %v7534_v55, %v5680_v60  ;;  %v5750_v32 = vadd.f32 %v5749_v18, %v5719_v12  ;;  %v5304_v15 = vpop.f32.mrb[19].mxu0  ;;  %v5721_v9 = vmul.f32 %v7535_v28, %v7535_v28 }
 0x2d1   : > { %v5411_v30 = vadd.f32 %v7757_v57, %v5410_v48  ;;  %v5450_v62 = vmul.f32 %v7757_v57, %v7757_v57  ;;  %v5480_v5 = vadd.f32 %v5479_v53, %v5449_v38  ;;  %7012 = vst [vmem:[%s10475_s7 + $0x40] sm:$0xff] %v6953_v51   ;;  %v7759_v6 = vadd.f32 %v5304_v15, %v10446_v44 }
 0x2d2   : > { %v6878_v41 = vpack.c.bf16 %v7758_v4, %v7756_v42  ;;  %v5751_v35 = vadd.f32 %v5750_v32, %v5720_v61  ;;  %v7538_v10 = vpop.f32.mrb[52].mxu1  ;;  %v5682_v59 = vadd.f32 %v7535_v28, %v5681_v17  ;;  %v5452_v33 = vmul.f32 %v7756_v42, %v7756_v42 }
 0x2d3   : > { %v5481_v24 = vadd.f32 %v5480_v5, %v5450_v62  ;;  %v5412_v56 = vadd.f32 %v7759_v6, %v5411_v30  ;;  %v5451_v11 = vmul.f32 %v7759_v6, %v7759_v6  ;;  %v6873_v63 = vpack.c.bf16 %v7759_v6, %v7757_v57  ;;  %v3212_v36 = vpop.f32.mrb[53].mxu1 }
 0x2d4   : > { %6998 = vst [vmem:[%s10481_s11 + $0x48] sm:$0xff] %v6878_v41   ;;  %v5683_v58 = vadd.f32 %v5682_v59, %v3212_v36  ;;  %v5722_v45 = vmul.f32 %v3212_v36, %v3212_v36  ;;  %v5752_v50 = vadd.f32 %v5751_v35, %v5721_v9  ;;  %v7539_v55 = vpop.f32.mrb[54].mxu1  ;;  %v5453_v23 = vmul.f32 %v7758_v4, %v7758_v4 }
 0x2d5   : > { %v5413_v44 = vadd.f32 %v7756_v42, %v5412_v56  ;;  %v5482_v31 = vadd.f32 %v5481_v24, %v5451_v11  ;;  %6997 = vst [vmem:[%s10481_s11 + $0x40] sm:$0xff] %v6873_v63   ;;  %v7730_v46 = vpop.f32.mrb[20].mxu0  ;;  %v6968_v49 = vpack.c.bf16 %v7539_v55, %v7538_v10  ;;  %v3215_v40 = vpop.f32.mrb[55].mxu1  ;;  %v5724_v22 = vmul.f32 %v7538_v10, %v7538_v10 }
 0x2d6   : > { %v7760_v29 = vadd.f32 %v7730_v46, %v10448_v39  ;;  %v5753_v43 = vadd.f32 %v5752_v50, %v5722_v45  ;;  %v5317_v8 = vpop.f32.mrb[21].mxu0  ;;  %v5684_v26 = vadd.f32 %v5683_v58, %v3215_v40  ;;  %v5723_v14 = vmul.f32 %v3215_v40, %v3215_v40 }
 0x2d7   : > { %v5483_v28 = vadd.f32 %v5482_v31, %v5452_v33  ;;  %v7761_v38 = vadd.f32 %v5317_v8, %v10450_v1  ;;  %v5414_v25 = vadd.f32 %v7758_v4, %v5413_v44  ;;  %7015 = vst [vmem:[%s10475_s7 + $0x58] sm:$0xff] %v6968_v49   ;;  %v7731_v19 = vpop.f32.mrb[22].mxu0  ;;  %v6963_v34 = vpack.c.bf16 %v3215_v40, %v3212_v36 }
 0x2d8   : > { %v7762_v52 = vadd.f32 %v7731_v19, %v10452_v3  ;;  %v5685_v42 = vadd.f32 %v7538_v10, %v5684_v26  ;;  %v5754_v18 = vadd.f32 %v5753_v43, %v5723_v14  ;;  %v5320_v2 = vpop.f32.mrb[23].mxu0  ;;  %v5725_v57 = vmul.f32 %v7539_v55, %v7539_v55 }
 0x2d9   : > { %v5415_v60 = vadd.f32 %v7761_v38, %v5414_v25  ;;  %v5454_v39 = vmul.f32 %v7761_v38, %v7761_v38  ;;  %v5484_v12 = vadd.f32 %v5483_v28, %v5453_v23  ;;  %7014 = vst [vmem:[%s10475_s7 + $0x50] sm:$0xff] %v6963_v34   ;;  %v7763_v53 = vadd.f32 %v5320_v2, %v10454_v20 }
 0x2da   : > { %v6888_v48 = vpack.c.bf16 %v7762_v52, %v7760_v29  ;;  %v5755_v1 = vadd.f32 %v5754_v18, %v5724_v22  ;;  %v7542_v37 = vpop.f32.mrb[56].mxu1  ;;  %v5686_v51 = vadd.f32 %v7539_v55, %v5685_v42  ;;  %v5456_v15 = vmul.f32 %v7760_v29, %v7760_v29 }
 0x2db   : > { %v5485_v61 = vadd.f32 %v5484_v12, %v5454_v39  ;;  %v5416_v4 = vadd.f32 %v7763_v53, %v5415_v60  ;;  %v5455_v17 = vmul.f32 %v7763_v53, %v7763_v53  ;;  %v6883_v3 = vpack.c.bf16 %v7763_v53, %v7761_v38  ;;  %v3228_v32 = vpop.f32.mrb[57].mxu1 }
 0x2dc   : > { %7000 = vst [vmem:[%s10481_s11 + $0x58] sm:$0xff] %v6888_v48   ;;  %v5687_v30 = vadd.f32 %v5686_v51, %v3228_v32  ;;  %v5726_v62 = vmul.f32 %v3228_v32, %v3228_v32  ;;  %v5756_v5 = vadd.f32 %v5755_v1, %v5725_v57  ;;  %v7543_v6 = vpop.f32.mrb[58].mxu1  ;;  %v5457_v9 = vmul.f32 %v7762_v52, %v7762_v52 }
 0x2dd   : > { %v5417_v20 = vadd.f32 %v7760_v29, %v5416_v4  ;;  %v5486_v41 = vadd.f32 %v5485_v61, %v5455_v17  ;;  %6999 = vst [vmem:[%s10481_s11 + $0x50] sm:$0xff] %v6883_v3   ;;  %v7734_v35 = vpop.f32.mrb[24].mxu0  ;;  %v6978_v10 = vpack.c.bf16 %v7543_v6, %v7542_v37  ;;  %v3231_v59 = vpop.f32.mrb[59].mxu1  ;;  %v5728_v23 = vmul.f32 %v7542_v37, %v7542_v37 }
 0x2de   : > { %v7764_v24 = vadd.f32 %v7734_v35, %v10456_v16  ;;  %v5757_v56 = vadd.f32 %v5756_v5, %v5726_v62  ;;  %v5333_v11 = vpop.f32.mrb[25].mxu0  ;;  %v5688_v63 = vadd.f32 %v5687_v30, %v3231_v59  ;;  %v5727_v36 = vmul.f32 %v3231_v59, %v3231_v59 }
 0x2df   : > { %v5487_v33 = vadd.f32 %v5486_v41, %v5456_v15  ;;  %v7765_v58 = vadd.f32 %v5333_v11, %v10458_v7  ;;  %v5418_v45 = vadd.f32 %v7762_v52, %v5417_v20  ;;  %7017 = vst [vmem:[%s10475_s7 + $0x68] sm:$0xff] %v6978_v10   ;;  %v7735_v50 = vpop.f32.mrb[26].mxu0  ;;  %v6973_v55 = vpack.c.bf16 %v3231_v59, %v3228_v32 }
 0x2e0   : > { %v7766_v44 = vadd.f32 %v7735_v50, %v10460_v54  ;;  %v5689_v31 = vadd.f32 %v7542_v37, %v5688_v63  ;;  %v5758_v46 = vadd.f32 %v5757_v56, %v5727_v36  ;;  %v5336_v49 = vpop.f32.mrb[27].mxu0  ;;  %v5729_v8 = vmul.f32 %v7543_v6, %v7543_v6 }
 0x2e1   : > { %v5419_v40 = vadd.f32 %v7765_v58, %v5418_v45  ;;  %v5458_v16 = vmul.f32 %v7765_v58, %v7765_v58  ;;  %v5488_v29 = vadd.f32 %v5487_v33, %v5457_v9  ;;  %7016 = vst [vmem:[%s10475_s7 + $0x60] sm:$0xff] %v6973_v55   ;;  %v7767_v43 = vadd.f32 %v5336_v49, %v10462_v21 }
 0x2e2   : > { %v6898_v26 = vpack.c.bf16 %v7766_v44, %v7764_v24  ;;  %v5759_v7 = vadd.f32 %v5758_v46, %v5728_v23  ;;  %v7546_v14 = vpop.f32.mrb[60].mxu1  ;;  %v5690_v28 = vadd.f32 %v7543_v6, %v5689_v31  ;;  %v5460_v22 = vmul.f32 %v7764_v24, %v7764_v24 }
 0x2e3   : > { %v5489_v38 = vadd.f32 %v5488_v29, %v5458_v16  ;;  %v5420_v25 = vadd.f32 %v7767_v43, %v5419_v40  ;;  %v5459_v19 = vmul.f32 %v7767_v43, %v7767_v43  ;;  %v6893_v54 = vpack.c.bf16 %v7767_v43, %v7765_v58  ;;  %v3244_v34 = vpop.f32.mrb[61].mxu1 }
 0x2e4   : > { %7002 = vst [vmem:[%s10481_s11 + $0x68] sm:$0xff] %v6898_v26   ;;  %v5691_v52 = vadd.f32 %v5690_v28, %v3244_v34  ;;  %v5730_v42 = vmul.f32 %v3244_v34, %v3244_v34  ;;  %v5760_v18 = vadd.f32 %v5759_v7, %v5729_v8  ;;  %v7547_v2 = vpop.f32.mrb[62].mxu1  ;;  %v5461_v60 = vmul.f32 %v7766_v44, %v7766_v44 }
 0x2e5   : > { %v5421_v21 = vadd.f32 %v7764_v24, %v5420_v25  ;;  %v5490_v39 = vadd.f32 %v5489_v38, %v5459_v19  ;;  %7001 = vst [vmem:[%s10481_s11 + $0x60] sm:$0xff] %v6893_v54   ;;  %v7738_v12 = vpop.f32.mrb[28].mxu0  ;;  %v6988_v53 = vpack.c.bf16 %v7547_v2, %v7546_v14  ;;  %v3247_v57 = vpop.f32.mrb[63].mxu1  ;;  %v5732_v30 = vmul.f32 %v7546_v14, %v7546_v14 }
 0x2e6   : > { %v7768_v48 = vadd.f32 %v7738_v12, %v10464_v27  ;;  %v5761_v1 = vadd.f32 %v5760_v18, %v5730_v42  ;;  %v5349_v37 = vpop.f32.mrb[29].mxu0  ;;  %v5692_v51 = vadd.f32 %v5691_v52, %v3247_v57  ;;  %v5731_v61 = vmul.f32 %v3247_v57, %v3247_v57 }
 0x2e7   : > { %v5491_v4 = vadd.f32 %v5490_v39, %v5460_v22  ;;  %v7769_v17 = vadd.f32 %v5349_v37, %v10466_v13  ;;  %v5422_v3 = vadd.f32 %v7766_v44, %v5421_v21  ;;  %7019 = vst [vmem:[%s10475_s7 + $0x78] sm:$0xff] %v6988_v53   ;;  %v7739_v32 = vpop.f32.mrb[30].mxu0  ;;  %v6983_v15 = vpack.c.bf16 %v3247_v57, %v3244_v34 }
 0x2e8   : > { %v7770_v62 = vadd.f32 %v7739_v32, %v10468_v47  ;;  %v5693_v5 = vadd.f32 %v7546_v14, %v5692_v51  ;;  %v5762_v27 = vadd.f32 %v5761_v1, %v5731_v61  ;;  %v5352_v6 = vpop.f32.mrb[31].mxu0  ;;  %v5733_v35 = vmul.f32 %v7547_v2, %v7547_v2 }
 0x2e9   : > { %v5423_v9 = vadd.f32 %v7769_v17, %v5422_v3  ;;  %v5462_v20 = vmul.f32 %v7769_v17, %v7769_v17  ;;  %v5492_v41 = vadd.f32 %v5491_v4, %v5461_v60  ;;  %7018 = vst [vmem:[%s10475_s7 + $0x70] sm:$0xff] %v6983_v15   ;;  %v7771_v13 = vadd.f32 %v5352_v6, %v10470_v0 }
 0x2ea   : > { %v6908_v10 = vpack.c.bf16 %v7770_v62, %v7768_v48  ;;  %v5694_v59 = vadd.f32 %v7547_v2, %v5693_v5  ;;  %v5763_v24 = vadd.f32 %v5762_v27, %v5732_v30  ;;  %v5464_v33 = vmul.f32 %v7768_v48, %v7768_v48 }
 0x2eb   : > { %v5493_v47 = vadd.f32 %v5492_v41, %v5462_v20  ;;  %v5424_v56 = vadd.f32 %v7771_v13, %v5423_v9  ;;  %v5463_v0 = vmul.f32 %v7771_v13, %v7771_v13  ;;  %v6903_v11 = vpack.c.bf16 %v7771_v13, %v7769_v17 }
 0x2ec   : > { %7004 = vst [vmem:[%s10481_s11 + $0x78] sm:$0xff] %v6908_v10   ;;  %v5695_v63 = vrot.slane %v5694_v59, 4  ;;  %v5764_v36 = vadd.f32 %v5763_v24, %v5733_v35 }
 0x2ed   : > { %v5425_v58 = vadd.f32 %v7768_v48, %v5424_v56  ;;  %v5494_v45 = vadd.f32 %v5493_v47, %v5463_v0  ;;  %7003 = vst [vmem:[%s10481_s11 + $0x70] sm:$0xff] %v6903_v11  }
 0x2ee   : > { %v5696_v50 = vadd.f32 %v5695_v63, %v5694_v59  ;;  %v5765_v55 = vrot.slane %v5764_v36, 4 }
 0x2ef   : > { %8395 = shalt.err (!%p8392_p2)
}
 0x2f0   : > { %s8396_s29 = scalar_lea.hbm %s10546_s8, 2048  ;;  %s8400_s14 = scalar_lea.hbm %s10720_s3, 4096 }
 0x2f1   : > { %p8397_p6 = scmp.ne.s32.totalorder %s10546_s8, %s8396_s29  ;;  %p8401_p4 = scmp.lt.u32.totalorder %s10546_s8, %s10720_s3 }
 0x2f2   : > { %p8402_p9 = scmp.lt.u32.totalorder %s8400_s14, %s8396_s29  ;;  %p8404_p11 = scmp.lt.u32.totalorder %s8396_s29, %s10546_s8 }
 0x2f3   : > { %p8398_p10 = pnand %p8397_p6, %p10878_p1 }
 0x2f4   : > { %p8403_p8 = por %p8402_p9, %p8401_p4 }
 0x2f5   : > { %p8399_p3 = pneg %p8398_p10 }
 0x2f6   : > { %p8405_p13 = por %p8404_p11, %p8403_p8 }
 0x2f8   : > { %p8406_p5 = pnand %p8405_p13, %p8399_p3 }
 0x2fa   : > { %8409 = shalt.err (!%p8406_p5)
}
 0x2fb   : > { %s10761_s12 = smov 64   ;;  %s10762_s13 = smov 4   ;;  %v5465_v23 = vmul.f32 %v7770_v62, %v7770_v62  ;;  %v5426_v44 = vadd.f32 %v7770_v62, %v5425_v58  ;;  %v5495_v31 = vadd.f32 %v5494_v45, %v5464_v33  ;;  %v5697_v46 = vrot.slane %v5696_v50, 2 }
 0x2fc   : > { %8009 = dma.vmem_to_hbm [thread:$0]  (%p10878_p1), %s10548_s28, 2048, %s10546_s8, %s5933_s1, %s10761_s12, %s10761_s12, %s10762_s13   ;;  %v5766_v49 = vadd.f32 %v5765_v55, %v5764_v36 }
 0x2fd   : > { %v5427_v40 = vrot.slane %v5426_v44, 4  ;;  %v5496_v16 = vadd.f32 %v5495_v31, %v5465_v23  ;;  %s6221_s29 = sshll.u32 %s8801_s20, 1  ;;  %v5698_v29 = vadd.f32 %v5697_v46, %v5696_v50  ;;  %s10764_s28 = sshll.u32 %s8552_s24, 5 }
 0x2fe   : > { %v5767_v43 = vrot.slane %v5766_v49, 2  ;;  %s360_s8 = scalar_lea.vmem [#allocation12], %s6221_s29  ;;  %s10586_s14 = scalar_lea.hbm %s10723_s6, %s10764_s28 }
 0x2ff   : > { %v5428_v8 = vadd.f32 %v5427_v40, %v5426_v44  ;;  %v5497_v26 = vrot.slane %v5496_v16, 4  ;;  %v5699_v7 = vrot.slane %v5698_v29, 1  ;;  %s6010_s1 = sshll.u32 %s360_s8, 4  ;;  %s10591_s17 = scalar_lea.vmem [#allocation9], %s6221_s29  ;;  %s10588_s1 = int_to_ptr.vmem [resolvable:$true] %s6010_s1 }
 0x300   : > { %v5768_v14 = vadd.f32 %v5767_v43, %v5766_v49  ;;  %s5979_s12 = sshll.u32 %s10591_s17, 4  ;;  %s5993_s13 = sshll.u32 %s10475_s7, 4  ;;  %s10627_s12 = int_to_ptr.vmem [resolvable:$true] %s5979_s12  ;;  %s10638_s13 = int_to_ptr.vmem [resolvable:$true] %s5993_s13 }
 0x301   : > { %v5429_v28 = vrot.slane %v5428_v8, 2  ;;  %v5498_v38 = vadd.f32 %v5497_v26, %v5496_v16  ;;  %v5700_v25 = vadd.f32 %v5699_v7, %v5698_v29  ;;  %s5948_s18 = scalar_lea.sflag [#allocation13], %s8801_s20  ;;  %s8410_s11 = scalar_lea.vmem %s10588_s1, 32 }
 0x302   : > { %v5769_v19 = vrot.slane %v5768_v14, 1  ;;  %p8411_p7 = scmp.ne.s32.totalorder %s10588_s1, %s8410_s11  ;;  %s8570_s16 = smov [#allocation12]  }
 0x303   : > { %v5430_v54 = vadd.f32 %v5429_v28, %v5428_v8  ;;  %v5499_v34 = vrot.slane %v5498_v38, 2  ;;  %5701 = vst [vmem:[%s360_s8] sm:$0x1] %v5700_v25  ;;  %s8414_s28 = sshll.u32 %s8570_s16, 4  ;;  %s8415_s28 = int_to_ptr.vmem [resolvable:$false] %s8414_s28 }
 0x304   : > { %v5770_v22 = vadd.f32 %v5769_v19, %v5768_v14  ;;  %p8412_p12 = pnand %p8411_p7, %p10878_p1  ;;  %s8416_s0 = scalar_lea.vmem %s8415_s28, 64 }
 0x305   : > { %v5431_v52 = vrot.slane %v5430_v54, 1  ;;  %v5500_v42 = vadd.f32 %v5499_v34, %v5498_v38  ;;  %p8417_p2 = scmp.lt.s32.totalorder %s10588_s1, %s8415_s28  ;;  %p8418_p6 = scmp.lt.s32.totalorder %s8416_s0, %s8410_s11 }
 0x306   : > { %5771 = vst [vmem:[%s360_s8 + $0x1] sm:$0x1] %v5770_v22  ;;  %p8413_p0 = pneg %p8412_p12 }
 0x307   : > { %v5432_v18 = vadd.f32 %v5431_v52, %v5430_v54  ;;  %v5501_v2 = vrot.slane %v5500_v42, 1  ;;  %p8419_p10 = por %p8418_p6, %p8417_p2 }
 0x309   : > { %p8420_p3 = pnand %p8419_p10, %p8413_p0 }
 0x30b   : > { %8423 = shalt.err (!%p8420_p3)
}
 0x30c   : > { %s8424_s20 = scalar_lea.hbm %s10586_s14, 32  ;;  %s8428_s16 = scalar_lea.hbm %s10723_s6, 64 }
 0x30d   : > { %p8425_p4 = scmp.ne.s32.totalorder %s10586_s14, %s8424_s20  ;;  %p8429_p11 = scmp.lt.u32.totalorder %s10586_s14, %s10723_s6 }
 0x30e   : > { %p8430_p13 = scmp.lt.u32.totalorder %s8428_s16, %s8424_s20  ;;  %p8432_p7 = scmp.lt.u32.totalorder %s8424_s20, %s10586_s14 }
 0x30f   : > { %p8426_p9 = pnand %p8425_p4, %p10878_p1 }
 0x310   : > { %p8431_p5 = por %p8430_p13, %p8429_p11 }
 0x311   : > { %p8427_p8 = pneg %p8426_p9 }
 0x312   : > { %p8433_p12 = por %p8432_p7, %p8431_p5 }
 0x314   : > { %p8434_p0 = pnand %p8433_p12, %p8427_p8 }
 0x316   : > { %8437 = shalt.err (!%p8434_p0)
}
 0x317   : > { %8012 = dma.vmem_to_hbm [thread:$0]  (%p10878_p1), %s10588_s1, 32, %s10586_s14, %s5948_s18   ;;  %5433 = vst [vmem:[%s10591_s17] sm:$0x1] %v5432_v18  ;;  %v5502_v60 = vadd.f32 %v5501_v2, %v5500_v42 }
 0x318   : > { %s10879_s0 = sshll.u32 %s8552_s24, 5  ;;  %s10880_s29 = sshll.u32 %s8552_s24, 11 }
 0x319   : > { %s10623_s20 = scalar_lea.hbm %s10721_s4, %s10879_s0  ;;  %s10634_s28 = scalar_lea.hbm %s10722_s5, %s10880_s29  ;;  %5503 = vst [vmem:[%s10591_s17 + $0x1] sm:$0x1] %v5502_v60 }
 0x31a   : > { %s10881_s18 = sand.u32 1, %s8639_s27   ;;  %s8438_s14 = scalar_lea.vmem %s10627_s12, 32 }
 0x31b   : > { %s10643_s1 = scalar_lea.sflag [#allocation10], %s10881_s18  ;;  %p8439_p2 = scmp.ne.s32.totalorder %s10627_s12, %s8438_s14 }
 0x31c   : > { %s8571_s24 = smov [#allocation9]  }
 0x31d   : > { %p8440_p6 = pnand %p8439_p2, %p10878_p1  ;;  %s8442_s0 = sshll.u32 %s8571_s24, 4  ;;  %s8443_s0 = int_to_ptr.vmem [resolvable:$false] %s8442_s0 }
 0x31e   : > { %s8444_s9 = scalar_lea.vmem %s8443_s0, 64  ;;  %p8445_p3 = scmp.lt.s32.totalorder %s10627_s12, %s8443_s0 }
 0x31f   : > { %p8441_p10 = pneg %p8440_p6  ;;  %p8446_p4 = scmp.lt.s32.totalorder %s8444_s9, %s8438_s14 }
 0x321   : > { %p8447_p9 = por %p8446_p4, %p8445_p3 }
 0x323   : > { %p8448_p8 = pnand %p8447_p9, %p8441_p10 }
 0x325   : > { %8451 = shalt.err (!%p8448_p8)
}
 0x326   : > { %s8452_s27 = scalar_lea.hbm %s10623_s20, 32  ;;  %s8456_s11 = scalar_lea.hbm %s10721_s4, 64 }
 0x327   : > { %p8453_p11 = scmp.ne.s32.totalorder %s10623_s20, %s8452_s27  ;;  %p8457_p7 = scmp.lt.u32.totalorder %s10623_s20, %s10721_s4 }
 0x328   : > { %p8458_p12 = scmp.lt.u32.totalorder %s8456_s11, %s8452_s27  ;;  %p8460_p2 = scmp.lt.u32.totalorder %s8452_s27, %s10623_s20 }
 0x329   : > { %p8454_p13 = pnand %p8453_p11, %p10878_p1 }
 0x32a   : > { %p8459_p0 = por %p8458_p12, %p8457_p7 }
 0x32b   : > { %p8455_p5 = pneg %p8454_p13 }
 0x32c   : > { %p8461_p6 = por %p8460_p2, %p8459_p0 }
 0x32e   : > { %p8462_p10 = pnand %p8461_p6, %p8455_p5 }
 0x330   : > { %8465 = shalt.err (!%p8462_p10)
}
 0x331   : > { %8010 = dma.vmem_to_hbm [thread:$0]  (%p10878_p1), %s10627_s12, 32, %s10623_s20, %s10643_s1  }
 0x332   : > { %s8466_s16 = scalar_lea.vmem %s10638_s13, 2048  ;;  %s8572_s18 = smov [#allocation11]  }
 0x333   : > { %p8467_p3 = scmp.ne.s32.totalorder %s10638_s13, %s8466_s16  ;;  %s8470_s14 = sshll.u32 %s8572_s18, 4  ;;  %s8471_s14 = int_to_ptr.vmem [resolvable:$false] %s8470_s14 }
 0x334   : > { %s8472_s24 = scalar_lea.vmem %s8471_s14, 4096  ;;  %p8473_p8 = scmp.lt.s32.totalorder %s10638_s13, %s8471_s14 }
 0x335   : > { %p8468_p4 = pnand %p8467_p3, %p10878_p1  ;;  %p8474_p11 = scmp.lt.s32.totalorder %s8472_s24, %s8466_s16 }
 0x337   : > { %p8469_p9 = pneg %p8468_p4  ;;  %p8475_p13 = por %p8474_p11, %p8473_p8 }
 0x339   : > { %p8476_p5 = pnand %p8475_p13, %p8469_p9 }
 0x33b   : > { %8479 = shalt.err (!%p8476_p5)
}
 0x33c   : > { %s8480_s12 = scalar_lea.hbm %s10634_s28, 2048  ;;  %s8484_s9 = scalar_lea.hbm %s10722_s5, 4096 }
 0x33d   : > { %p8481_p7 = scmp.ne.s32.totalorder %s10634_s28, %s8480_s12  ;;  %p8485_p2 = scmp.lt.u32.totalorder %s10634_s28, %s10722_s5 }
 0x33e   : > { %p8486_p6 = scmp.lt.u32.totalorder %s8484_s9, %s8480_s12  ;;  %p8488_p3 = scmp.lt.u32.totalorder %s8480_s12, %s10634_s28 }
 0x33f   : > { %p8482_p12 = pnand %p8481_p7, %p10878_p1 }
 0x340   : > { %p8487_p10 = por %p8486_p6, %p8485_p2 }
 0x341   : > { %p8483_p0 = pneg %p8482_p12 }
 0x342   : > { %p8489_p4 = por %p8488_p3, %p8487_p10 }
 0x344   : > { %p8490_p9 = pnand %p8489_p4, %p8483_p0 }
 0x346   : > { %8493 = shalt.err (!%p8490_p9)
}
 0x347   : > { %s10882_s17 = smov 4   ;;  %s10883_s11 = smov 64  }
 0x348   : > { %8011 = dma.vmem_to_hbm [thread:$0]  (%p10878_p1), %s10638_s13, 2048, %s10634_s28, %s10643_s1, %s10883_s11, %s10883_s11, %s10882_s17  }
 0x349 PF: > { %s6022_s29 = sand.u32 1, %s8540_s21   ;;  %p10884_p8 = scmp.ne.s32.totalorder %s10768_s30, 0 }
 0x34a   : > { %p10885_p11 = scmp.ge.s32.totalorder %s8560_s26, 2  ;;  %s6023_s8 = scalar_lea.sflag [#allocation4], %s6022_s29 }
 0x34c   : > { %p8029_p13 = pnand %p10885_p11, %p10884_p8 }
 0x34e   : > { %8527 = dma.done.wait (!%p8029_p13), %s6023_s8, 2048  }
 0x34f   : > { %8529 = vsyncadd (!%p8029_p13), %s6023_s8, 4294965248  ;;  %s10886_s15 = sadd.s32 4294967294, %s8560_s26  }
 0x350   : > { %s6031_s16 = sand.u32 1, %s10886_s15  }
 0x351   : > { %s6032_s18 = scalar_lea.sflag [#allocation10], %s6031_s16 }
 0x352   : > { %8531 = dma.done.wait (!%p8029_p13), %s6032_s18, 2080  }
 0x353   : > { %8533 = vsyncadd (!%p8029_p13), %s6032_s18, 4294965216  ;;  %s6050_s14 = scalar_lea.sflag [#allocation13], %s6022_s29 }
 0x354   : > { %8535 = dma.done.wait (!%p8029_p13), %s6050_s14, 32  }
 0x355   : > { %8537 = vsyncadd (!%p8029_p13), %s6050_s14, 4294967264  ;;  %s30_s26 = sadd.s32 1, %s8560_s26   ;;  %s10887_s21 = smov %s8544_s22 }
 0x356   : > { %p27_p1 = scmp.ge.s32.totalorder %s30_s26, 4   ;;  %s10888_s22 = smov %s8548_s23 }
 0x357   : > { %s10889_s23 = smov %s8757_s19  ;;  %s10890_s24 = smov %s8556_s25 }
 0x358   : > { %s10891_s25 = smov %s10893_s10  ;;  %29 = sbr.rel (!%p27_p1) target bundleno = 14 (0xe), region = 146 }
 0x35f   :  { %6055 = vsyncpa [#allocation3], 1 }
 0x360   :  { %6057 = vsyncpa [#allocation3 + $0x1], 1 }
 0x361   :  { %6058 = vsyncpa [#allocation6], 1 }
 0x362   :  { %6059 = vsyncpa [#allocation4], 1 }
 0x363   :  { %6061 = vsyncpa [#allocation4 + $0x1], 1 }
 0x364   :  { %6062 = vsyncpa [#allocation10], 1 }
 0x365   :  { %6064 = vsyncpa [#allocation10 + $0x1], 1 }
 0x366   :  { %6065 = vsyncpa [#allocation13], 1 }
 0x367   :  { %6067 = vsyncpa [#allocation13 + $0x1], 1 }

</bundles_post_ra>
